<compile_context>
chip_gen: v7x
topology: tpu7x:2x2x1
jax: 0.10.0
libtpu: 0.0.40
codegen_flags: <defaults>
</compile_context>

<pallas_src>
import functools

import jax
import jax.numpy as jnp
import numpy as np
from jax.experimental import pallas as pl
from jax.experimental.pallas import tpu as pltpu

_VMEM_LIMIT = 32 * 1024 * 1024  # safe scoped-VMEM budget across v5e/v6e/v7x


# ----------------------------------------------------------------------------
# Pallas kernels
# ----------------------------------------------------------------------------
def _conv_fused_kernel(x_ref, w_ref, b_ref, y_ref, sum_ref, sq_ref,
                       *, KH, KW, TOH, OW, Cin):
    # x_ref:   (Hp, Wp, Cin)       padded image of one sample, bf16
    # w_ref:   (KH*KW, Cin, Cout)  bf16
    # b_ref:   (1, Cout)           f32
    # y_ref:   (TOH*OW, Cout)      conv output rows for this (sample, row-tile)
    # sum_ref: (1, Cout)           per-tile channel sum      (f32)
    # sq_ref:  (1, Cout)           per-tile channel sum-sq   (f32)
    t = pl.program_id(1)
    row0 = t * TOH
    cout = y_ref.shape[-1]
    acc = jnp.zeros((TOH * OW, cout), jnp.float32)
    # Fused im2col: KH*KW shifted slices of the VMEM-resident image, each
    # contracted against the corresponding (Cin, Cout) weight tap on the MXU.
    for dh in range(KH):
        for dw in range(KW):
            xs = x_ref[pl.ds(row0 + dh, TOH), dw:dw + OW, :]   # (TOH, OW, Cin)
            xs = xs.reshape(TOH * OW, Cin)
            acc = acc + jnp.dot(xs, w_ref[dh * KW + dw],
                                preferred_element_type=jnp.float32)
    acc = acc + b_ref[...]
    y_ref[...] = acc.astype(y_ref.dtype)
    # BatchNorm statistics fused into the conv epilogue (from the f32 acc).
    sum_ref[...] = jnp.sum(acc, axis=0, keepdims=True)
    sq_ref[...] = jnp.sum(acc * acc, axis=0, keepdims=True)


def _bn_relu_kernel(y_ref, scale_ref, shift_ref, o_ref):
    # y_ref: (TM, C) f32, scale/shift: (1, C) f32 (precomputed global stats).
    o_ref[...] = jnp.maximum(y_ref[...] * scale_ref[...] + shift_ref[...], 0.0)


# ----------------------------------------------------------------------------
# Wrappers
# ----------------------------------------------------------------------------
def conv2d_nhwc_pallas(x, weight, bias, padding, out_dtype):
    """Conv2d (stride=1, PyTorch semantics) in NHWC.

    x:      (N, H, W, Cin)  bf16 (cast if needed)
    weight: (Cout, Cin, KH, KW) f32 (PyTorch layout)
    bias:   (Cout,) f32
    Returns (y_nhwc[out_dtype], partial_sum, partial_sumsq).
    """
    x = x.astype(jnp.bfloat16)
    N, H, W, Cin = x.shape
    Cout, Cin2, KH, KW = weight.shape
    assert Cin == Cin2
    OH = H + 2 * padding - KH + 1
    OW = W + 2 * padding - KW + 1

    # Row tile over output rows (oh).  TODO(synk): re-derive tile size per
    # generation / VMEM budget for large UNet layers (v7x ~half of v6e).
    if OH % 2 == 0 and ((OH // 2) * OW) % 8 == 0 and N * 2 >= 4:
        TOH = OH // 2
    else:
        TOH = OH
    n_t = OH // TOH

    Hp, Wp = H + 2 * padding, W + 2 * padding
    xp = jnp.pad(x, ((0, 0), (padding, padding), (padding, padding), (0, 0)))
    w_k = jnp.transpose(weight, (2, 3, 1, 0)).reshape(KH * KW, Cin, Cout)
    w_k = w_k.astype(jnp.bfloat16)
    b2 = bias.reshape(1, Cout).astype(jnp.float32)

    kernel = functools.partial(_conv_fused_kernel,
                               KH=KH, KW=KW, TOH=TOH, OW=OW, Cin=Cin)
    y, psum, psq = pl.pallas_call(
        kernel,
        out_shape=(
            jax.ShapeDtypeStruct((N, OH * OW, Cout), out_dtype),
            jax.ShapeDtypeStruct((N, n_t, 1, Cout), jnp.float32),
            jax.ShapeDtypeStruct((N, n_t, 1, Cout), jnp.float32),
        ),
        grid_spec=pl.GridSpec(
            grid=(N, n_t),
            in_specs=[
                # Whole padded image per sample; block index is constant in t,
                # so Pallas does not re-DMA it across row tiles.
                pl.BlockSpec((None, Hp, Wp, Cin), lambda n, t: (n, 0, 0, 0)),
                pl.BlockSpec((KH * KW, Cin, Cout), lambda n, t: (0, 0, 0)),
                pl.BlockSpec((1, Cout), lambda n, t: (0, 0)),
            ],
            out_specs=(
                pl.BlockSpec((None, TOH * OW, Cout), lambda n, t: (n, t, 0)),
                pl.BlockSpec((None, None, 1, Cout), lambda n, t: (n, t, 0, 0)),
                pl.BlockSpec((None, None, 1, Cout), lambda n, t: (n, t, 0, 0)),
            ),
        ),
        compiler_params=pltpu.CompilerParams(
            dimension_semantics=("parallel", "parallel"),
            vmem_limit_bytes=_VMEM_LIMIT),
    )(xp, w_k, b2)
    y = y.reshape(N, OH, OW, Cout)
    return y, psum, psq


def _pick_row_tile(total, target):
    t = min(total, max(8, target))
    for cand in range(t, 7, -1):
        if total % cand == 0 and cand % 8 == 0:
            return cand
    return total


def bn_relu_nhwc_pallas(y, ch_sum, ch_sumsq, gamma, beta, eps=1e-5):
    """Training-mode BatchNorm2d + ReLU on an NHWC tensor, using per-channel
    sum / sum-of-squares accumulated in the conv epilogue."""
    N, OH, OW, C = y.shape
    M = N * OH * OW
    mean = ch_sum / M
    var = ch_sumsq / M - mean * mean                      # biased, as PyTorch
    inv = jax.lax.rsqrt(var + eps)
    scale = (gamma * inv).astype(jnp.float32)             # (C,)
    shift = (beta - mean * scale).astype(jnp.float32)     # (C,)

    y2 = y.reshape(M, C).astype(jnp.float32)
    TM = _pick_row_tile(M, M // 4)
    out = pl.pallas_call(
        _bn_relu_kernel,
        out_shape=jax.ShapeDtypeStruct((M, C), jnp.float32),
        grid_spec=pl.GridSpec(
            grid=(M // TM,),
            in_specs=[
                pl.BlockSpec((TM, C), lambda i: (i, 0)),
                pl.BlockSpec((1, C), lambda i: (0, 0)),
                pl.BlockSpec((1, C), lambda i: (0, 0)),
            ],
            out_specs=pl.BlockSpec((TM, C), lambda i: (i, 0)),
        ),
        compiler_params=pltpu.CompilerParams(
            dimension_semantics=("parallel",),
            vmem_limit_bytes=_VMEM_LIMIT),
    )(y2, scale.reshape(1, C), shift.reshape(1, C))
    return out.reshape(N, OH, OW, C)


class ConvLayerPallas:
    """Mirror of the PyTorch ConvLayer module (forward pass, training-mode BN)."""

    def __init__(self, channels, kernel_size, padding, key):
        self.padding = padding
        self.params = []
        for i in range(1, len(channels)):
            cin, cout = channels[i - 1], channels[i]
            key, kw_, kb_ = jax.random.split(key, 3)
            fan_in = cin * kernel_size * kernel_size
            bound = 1.0 / np.sqrt(fan_in)
            w = jax.random.uniform(kw_, (cout, cin, kernel_size, kernel_size),
                                   jnp.float32, -bound, bound)
            b = jax.random.uniform(kb_, (cout,), jnp.float32, -bound, bound)
            self.params.append((w, b))
        # BatchNorm2d affine params (PyTorch init: gamma=1, beta=0).
        self.gamma = jnp.ones((channels[-1],), jnp.float32)
        self.beta = jnp.zeros((channels[-1],), jnp.float32)
        # TODO(synk): BatchNorm running_mean/var tracking (training-time side
        # effect) is not materialized; the forward output matches PyTorch's
        # training-mode batch-stat normalization.

    def __call__(self, x_nchw):
        # Single layout change at entry: NCHW -> NHWC (+ bf16 for the MXU).
        h = jnp.transpose(x_nchw, (0, 2, 3, 1)).astype(jnp.bfloat16)
        n_layers = len(self.params)
        psum = psq = None
        for idx, (w, b) in enumerate(self.params):
            last = idx == n_layers - 1
            h, psum, psq = conv2d_nhwc_pallas(
                h, w, b, self.padding,
                out_dtype=jnp.float32 if last else jnp.bfloat16)
        ch_sum = jnp.sum(psum, axis=(0, 1, 2))      # (Cout,)
        ch_sq = jnp.sum(psq, axis=(0, 1, 2))        # (Cout,)
        out = bn_relu_nhwc_pallas(h, ch_sum, ch_sq, self.gamma, self.beta)
        # Single layout change at exit: NHWC -> NCHW (PyTorch semantics).
        return jnp.transpose(out, (0, 3, 1, 2))


# ----------------------------------------------------------------------------
# Pure-JAX reference (mirrors the bf16 MXU casts of the kernel pipeline)
# ----------------------------------------------------------------------------
def _reference(layer, x, eps=1e-5):
    h = x
    n_layers = len(layer.params)
    for idx, (w, b) in enumerate(layer.params):
        y = jax.lax.conv_general_dilated(
            h.astype(jnp.bfloat16), w.astype(jnp.bfloat16),
            window_strides=(1, 1),
            padding=[(layer.padding, layer.padding)] * 2,
            dimension_numbers=("NCHW", "OIHW", "NCHW"),
            preferred_element_type=jnp.float32)
        y = y + b.reshape(1, -1, 1, 1)
        h = y if idx == n_layers - 1 else y.astype(jnp.bfloat16)
    mean = jnp.mean(h, axis=(0, 2, 3), keepdims=True)
    var = jnp.mean((h - mean) ** 2, axis=(0, 2, 3), keepdims=True)
    out = (h - mean) * jax.lax.rsqrt(var + eps)
    out = out * layer.gamma.reshape(1, -1, 1, 1) + layer.beta.reshape(1, -1, 1, 1)
    return jnp.maximum(out, 0.0)


if __name__ == "__main__":
    key = jax.random.PRNGKey(0)
    k_in, k_par = jax.random.split(key)

    channels = [4, 8, 8]
    kernel_size = 3
    padding = 1
    x = jax.random.normal(k_in, (2, 4, 16, 16), jnp.float32)  # NCHW

    layer = ConvLayerPallas(channels, kernel_size, padding, k_par)

    fwd = jax.jit(lambda inp: layer(inp))
    out = jax.block_until_ready(fwd(x))

    ref = jax.block_until_ready(_reference(layer, x))
    np.testing.assert_allclose(np.asarray(out), np.asarray(ref),
                               rtol=2e-3, atol=2e-3)
    print("KERNEL_OK")
</pallas_src>

<mosaic_0001>
module attributes {stable_mosaic.version = 11 : i64} {
  func.func @_conv_fused_kernel(%arg0: i32, %arg1: i32, %arg2: memref<1x18x18x4xbf16, #tpu.memory_space<vmem>>, %arg3: memref<9x4x8xbf16, #tpu.memory_space<vmem>>, %arg4: memref<1x8xf32, #tpu.memory_space<vmem>>, %arg5: memref<1x128x8xbf16, #tpu.memory_space<vmem>>, %arg6: memref<1x1x1x8xf32, #tpu.memory_space<vmem>>, %arg7: memref<1x1x1x8xf32, #tpu.memory_space<vmem>>) attributes {dimension_semantics = [#tpu.dimension_semantics<parallel>, #tpu.dimension_semantics<parallel>], iteration_bounds = array<i64: 2, 2>, scalar_prefetch = 0 : i64, scratch_operands = 0 : i64, tpu.core_type = #tpu.core_type<tc>, window_params = [{transform_indices = @transform_0, window_bounds = array<i64: 1, 18, 18, 4>}, {pipeline_mode = #tpu.pipeline_mode<synchronous>, transform_indices = @transform_1, window_bounds = array<i64: 9, 4, 8>}, {pipeline_mode = #tpu.pipeline_mode<synchronous>, transform_indices = @transform_2, window_bounds = array<i64: 1, 8>}, {transform_indices = @transform_3, window_bounds = array<i64: 1, 128, 8>}, {transform_indices = @transform_4, window_bounds = array<i64: 1, 1, 1, 8>}, {transform_indices = @transform_5, window_bounds = array<i64: 1, 1, 1, 8>}]} {
    %c8_i32 = arith.constant 8 : i32
    %0 = arith.muli %arg1, %c8_i32 : i32
    %cst = arith.constant 0.000000e+00 : f32
    %1 = vector.broadcast %cst : f32 to vector<128x8xf32>
    %c0_i32 = arith.constant 0 : i32
    %2 = arith.addi %0, %c0_i32 : i32
    %c0 = arith.constant 0 : index
    %3 = arith.index_cast %2 : i32 to index
    %c0_0 = arith.constant 0 : index
    %c0_1 = arith.constant 0 : index
    %4 = vector.load %arg2[%c0, %3, %c0_0, %c0_1] : memref<1x18x18x4xbf16, #tpu.memory_space<vmem>>, vector<1x8x16x4xbf16>
    %5 = vector.shape_cast %4 : vector<1x8x16x4xbf16> to vector<8x16x4xbf16>
    %6 = vector.shape_cast %5 : vector<8x16x4xbf16> to vector<128x4xbf16>
    %c0_2 = arith.constant 0 : index
    %c0_3 = arith.constant 0 : index
    %c0_4 = arith.constant 0 : index
    %7 = vector.load %arg3[%c0_2, %c0_3, %c0_4] : memref<9x4x8xbf16, #tpu.memory_space<vmem>>, vector<1x4x8xbf16>
    %8 = vector.shape_cast %7 : vector<1x4x8xbf16> to vector<4x8xbf16>
    %cst_5 = arith.constant dense<0.000000e+00> : vector<128x8xf32>
    %9 = tpu.matmul %6, %8, %cst_5 {dimension_numbers = #tpu.dot_dimension_numbers<[1], [0], [0], [1], [0, 0, 1, 1], [], []>} : vector<128x4xbf16>, vector<4x8xbf16>, vector<128x8xf32> -> vector<128x8xf32>
    %10 = arith.addf %1, %9 : vector<128x8xf32>
    %c0_i32_6 = arith.constant 0 : i32
    %11 = arith.addi %0, %c0_i32_6 : i32
    %c0_7 = arith.constant 0 : index
    %12 = arith.index_cast %11 : i32 to index
    %c1 = arith.constant 1 : index
    %c0_8 = arith.constant 0 : index
    %13 = vector.load %arg2[%c0_7, %12, %c1, %c0_8] : memref<1x18x18x4xbf16, #tpu.memory_space<vmem>>, vector<1x8x16x4xbf16>
    %14 = vector.shape_cast %13 : vector<1x8x16x4xbf16> to vector<8x16x4xbf16>
    %15 = vector.shape_cast %14 : vector<8x16x4xbf16> to vector<128x4xbf16>
    %c1_9 = arith.constant 1 : index
    %c0_10 = arith.constant 0 : index
    %c0_11 = arith.constant 0 : index
    %16 = vector.load %arg3[%c1_9, %c0_10, %c0_11] : memref<9x4x8xbf16, #tpu.memory_space<vmem>>, vector<1x4x8xbf16>
    %17 = vector.shape_cast %16 : vector<1x4x8xbf16> to vector<4x8xbf16>
    %cst_12 = arith.constant dense<0.000000e+00> : vector<128x8xf32>
    %18 = tpu.matmul %15, %17, %cst_12 {dimension_numbers = #tpu.dot_dimension_numbers<[1], [0], [0], [1], [0, 0, 1, 1], [], []>} : vector<128x4xbf16>, vector<4x8xbf16>, vector<128x8xf32> -> vector<128x8xf32>
    %19 = arith.addf %10, %18 : vector<128x8xf32>
    %c0_i32_13 = arith.constant 0 : i32
    %20 = arith.addi %0, %c0_i32_13 : i32
    %c0_14 = arith.constant 0 : index
    %21 = arith.index_cast %20 : i32 to index
    %c2 = arith.constant 2 : index
    %c0_15 = arith.constant 0 : index
    %22 = vector.load %arg2[%c0_14, %21, %c2, %c0_15] : memref<1x18x18x4xbf16, #tpu.memory_space<vmem>>, vector<1x8x16x4xbf16>
    %23 = vector.shape_cast %22 : vector<1x8x16x4xbf16> to vector<8x16x4xbf16>
    %24 = vector.shape_cast %23 : vector<8x16x4xbf16> to vector<128x4xbf16>
    %c2_16 = arith.constant 2 : index
    %c0_17 = arith.constant 0 : index
    %c0_18 = arith.constant 0 : index
    %25 = vector.load %arg3[%c2_16, %c0_17, %c0_18] : memref<9x4x8xbf16, #tpu.memory_space<vmem>>, vector<1x4x8xbf16>
    %26 = vector.shape_cast %25 : vector<1x4x8xbf16> to vector<4x8xbf16>
    %cst_19 = arith.constant dense<0.000000e+00> : vector<128x8xf32>
    %27 = tpu.matmul %24, %26, %cst_19 {dimension_numbers = #tpu.dot_dimension_numbers<[1], [0], [0], [1], [0, 0, 1, 1], [], []>} : vector<128x4xbf16>, vector<4x8xbf16>, vector<128x8xf32> -> vector<128x8xf32>
    %28 = arith.addf %19, %27 : vector<128x8xf32>
    %c1_i32 = arith.constant 1 : i32
    %29 = arith.addi %0, %c1_i32 : i32
    %c0_20 = arith.constant 0 : index
    %30 = arith.index_cast %29 : i32 to index
    %c0_21 = arith.constant 0 : index
    %c0_22 = arith.constant 0 : index
    %31 = vector.load %arg2[%c0_20, %30, %c0_21, %c0_22] : memref<1x18x18x4xbf16, #tpu.memory_space<vmem>>, vector<1x8x16x4xbf16>
    %32 = vector.shape_cast %31 : vector<1x8x16x4xbf16> to vector<8x16x4xbf16>
    %33 = vector.shape_cast %32 : vector<8x16x4xbf16> to vector<128x4xbf16>
    %c3 = arith.constant 3 : index
    %c0_23 = arith.constant 0 : index
    %c0_24 = arith.constant 0 : index
    %34 = vector.load %arg3[%c3, %c0_23, %c0_24] : memref<9x4x8xbf16, #tpu.memory_space<vmem>>, vector<1x4x8xbf16>
    %35 = vector.shape_cast %34 : vector<1x4x8xbf16> to vector<4x8xbf16>
    %cst_25 = arith.constant dense<0.000000e+00> : vector<128x8xf32>
    %36 = tpu.matmul %33, %35, %cst_25 {dimension_numbers = #tpu.dot_dimension_numbers<[1], [0], [0], [1], [0, 0, 1, 1], [], []>} : vector<128x4xbf16>, vector<4x8xbf16>, vector<128x8xf32> -> vector<128x8xf32>
    %37 = arith.addf %28, %36 : vector<128x8xf32>
    %c1_i32_26 = arith.constant 1 : i32
    %38 = arith.addi %0, %c1_i32_26 : i32
    %c0_27 = arith.constant 0 : index
    %39 = arith.index_cast %38 : i32 to index
    %c1_28 = arith.constant 1 : index
    %c0_29 = arith.constant 0 : index
    %40 = vector.load %arg2[%c0_27, %39, %c1_28, %c0_29] : memref<1x18x18x4xbf16, #tpu.memory_space<vmem>>, vector<1x8x16x4xbf16>
    %41 = vector.shape_cast %40 : vector<1x8x16x4xbf16> to vector<8x16x4xbf16>
    %42 = vector.shape_cast %41 : vector<8x16x4xbf16> to vector<128x4xbf16>
    %c4 = arith.constant 4 : index
    %c0_30 = arith.constant 0 : index
    %c0_31 = arith.constant 0 : index
    %43 = vector.load %arg3[%c4, %c0_30, %c0_31] : memref<9x4x8xbf16, #tpu.memory_space<vmem>>, vector<1x4x8xbf16>
    %44 = vector.shape_cast %43 : vector<1x4x8xbf16> to vector<4x8xbf16>
    %cst_32 = arith.constant dense<0.000000e+00> : vector<128x8xf32>
    %45 = tpu.matmul %42, %44, %cst_32 {dimension_numbers = #tpu.dot_dimension_numbers<[1], [0], [0], [1], [0, 0, 1, 1], [], []>} : vector<128x4xbf16>, vector<4x8xbf16>, vector<128x8xf32> -> vector<128x8xf32>
    %46 = arith.addf %37, %45 : vector<128x8xf32>
    %c1_i32_33 = arith.constant 1 : i32
    %47 = arith.addi %0, %c1_i32_33 : i32
    %c0_34 = arith.constant 0 : index
    %48 = arith.index_cast %47 : i32 to index
    %c2_35 = arith.constant 2 : index
    %c0_36 = arith.constant 0 : index
    %49 = vector.load %arg2[%c0_34, %48, %c2_35, %c0_36] : memref<1x18x18x4xbf16, #tpu.memory_space<vmem>>, vector<1x8x16x4xbf16>
    %50 = vector.shape_cast %49 : vector<1x8x16x4xbf16> to vector<8x16x4xbf16>
    %51 = vector.shape_cast %50 : vector<8x16x4xbf16> to vector<128x4xbf16>
    %c5 = arith.constant 5 : index
    %c0_37 = arith.constant 0 : index
    %c0_38 = arith.constant 0 : index
    %52 = vector.load %arg3[%c5, %c0_37, %c0_38] : memref<9x4x8xbf16, #tpu.memory_space<vmem>>, vector<1x4x8xbf16>
    %53 = vector.shape_cast %52 : vector<1x4x8xbf16> to vector<4x8xbf16>
    %cst_39 = arith.constant dense<0.000000e+00> : vector<128x8xf32>
    %54 = tpu.matmul %51, %53, %cst_39 {dimension_numbers = #tpu.dot_dimension_numbers<[1], [0], [0], [1], [0, 0, 1, 1], [], []>} : vector<128x4xbf16>, vector<4x8xbf16>, vector<128x8xf32> -> vector<128x8xf32>
    %55 = arith.addf %46, %54 : vector<128x8xf32>
    %c2_i32 = arith.constant 2 : i32
    %56 = arith.addi %0, %c2_i32 : i32
    %c0_40 = arith.constant 0 : index
    %57 = arith.index_cast %56 : i32 to index
    %c0_41 = arith.constant 0 : index
    %c0_42 = arith.constant 0 : index
    %58 = vector.load %arg2[%c0_40, %57, %c0_41, %c0_42] : memref<1x18x18x4xbf16, #tpu.memory_space<vmem>>, vector<1x8x16x4xbf16>
    %59 = vector.shape_cast %58 : vector<1x8x16x4xbf16> to vector<8x16x4xbf16>
    %60 = vector.shape_cast %59 : vector<8x16x4xbf16> to vector<128x4xbf16>
    %c6 = arith.constant 6 : index
    %c0_43 = arith.constant 0 : index
    %c0_44 = arith.constant 0 : index
    %61 = vector.load %arg3[%c6, %c0_43, %c0_44] : memref<9x4x8xbf16, #tpu.memory_space<vmem>>, vector<1x4x8xbf16>
    %62 = vector.shape_cast %61 : vector<1x4x8xbf16> to vector<4x8xbf16>
    %cst_45 = arith.constant dense<0.000000e+00> : vector<128x8xf32>
    %63 = tpu.matmul %60, %62, %cst_45 {dimension_numbers = #tpu.dot_dimension_numbers<[1], [0], [0], [1], [0, 0, 1, 1], [], []>} : vector<128x4xbf16>, vector<4x8xbf16>, vector<128x8xf32> -> vector<128x8xf32>
    %64 = arith.addf %55, %63 : vector<128x8xf32>
    %c2_i32_46 = arith.constant 2 : i32
    %65 = arith.addi %0, %c2_i32_46 : i32
    %c0_47 = arith.constant 0 : index
    %66 = arith.index_cast %65 : i32 to index
    %c1_48 = arith.constant 1 : index
    %c0_49 = arith.constant 0 : index
    %67 = vector.load %arg2[%c0_47, %66, %c1_48, %c0_49] : memref<1x18x18x4xbf16, #tpu.memory_space<vmem>>, vector<1x8x16x4xbf16>
    %68 = vector.shape_cast %67 : vector<1x8x16x4xbf16> to vector<8x16x4xbf16>
    %69 = vector.shape_cast %68 : vector<8x16x4xbf16> to vector<128x4xbf16>
    %c7 = arith.constant 7 : index
    %c0_50 = arith.constant 0 : index
    %c0_51 = arith.constant 0 : index
    %70 = vector.load %arg3[%c7, %c0_50, %c0_51] : memref<9x4x8xbf16, #tpu.memory_space<vmem>>, vector<1x4x8xbf16>
    %71 = vector.shape_cast %70 : vector<1x4x8xbf16> to vector<4x8xbf16>
    %cst_52 = arith.constant dense<0.000000e+00> : vector<128x8xf32>
    %72 = tpu.matmul %69, %71, %cst_52 {dimension_numbers = #tpu.dot_dimension_numbers<[1], [0], [0], [1], [0, 0, 1, 1], [], []>} : vector<128x4xbf16>, vector<4x8xbf16>, vector<128x8xf32> -> vector<128x8xf32>
    %73 = arith.addf %64, %72 : vector<128x8xf32>
    %c2_i32_53 = arith.constant 2 : i32
    %74 = arith.addi %0, %c2_i32_53 : i32
    %c0_54 = arith.constant 0 : index
    %75 = arith.index_cast %74 : i32 to index
    %c2_55 = arith.constant 2 : index
    %c0_56 = arith.constant 0 : index
    %76 = vector.load %arg2[%c0_54, %75, %c2_55, %c0_56] : memref<1x18x18x4xbf16, #tpu.memory_space<vmem>>, vector<1x8x16x4xbf16>
    %77 = vector.shape_cast %76 : vector<1x8x16x4xbf16> to vector<8x16x4xbf16>
    %78 = vector.shape_cast %77 : vector<8x16x4xbf16> to vector<128x4xbf16>
    %c8 = arith.constant 8 : index
    %c0_57 = arith.constant 0 : index
    %c0_58 = arith.constant 0 : index
    %79 = vector.load %arg3[%c8, %c0_57, %c0_58] : memref<9x4x8xbf16, #tpu.memory_space<vmem>>, vector<1x4x8xbf16>
    %80 = vector.shape_cast %79 : vector<1x4x8xbf16> to vector<4x8xbf16>
    %cst_59 = arith.constant dense<0.000000e+00> : vector<128x8xf32>
    %81 = tpu.matmul %78, %80, %cst_59 {dimension_numbers = #tpu.dot_dimension_numbers<[1], [0], [0], [1], [0, 0, 1, 1], [], []>} : vector<128x4xbf16>, vector<4x8xbf16>, vector<128x8xf32> -> vector<128x8xf32>
    %82 = arith.addf %73, %81 : vector<128x8xf32>
    %c0_60 = arith.constant 0 : index
    %c0_61 = arith.constant 0 : index
    %83 = vector.load %arg4[%c0_60, %c0_61] : memref<1x8xf32, #tpu.memory_space<vmem>>, vector<1x8xf32>
    %84 = vector.broadcast %83 : vector<1x8xf32> to vector<128x8xf32>
    %85 = arith.addf %82, %84 : vector<128x8xf32>
    %86 = arith.truncf %85 : vector<128x8xf32> to vector<128x8xbf16>
    %c0_62 = arith.constant 0 : index
    %c0_63 = arith.constant 0 : index
    %c0_64 = arith.constant 0 : index
    %87 = vector.load %arg5[%c0_62, %c0_63, %c0_64] : memref<1x128x8xbf16, #tpu.memory_space<vmem>>, vector<1x128x8xbf16>
    %88 = vector.shape_cast %87 : vector<1x128x8xbf16> to vector<128x8xbf16>
    %89 = vector.shape_cast %86 : vector<128x8xbf16> to vector<1x128x8xbf16>
    tpu.vector_store %arg5[%c0_62, %c0_63, %c0_64], %89 {strides = array<i32>} : memref<1x128x8xbf16, #tpu.memory_space<vmem>>, vector<1x128x8xbf16>,
    %cst_65 = arith.constant dense<0.000000e+00> : vector<8xf32>
    %90 = vector.multi_reduction <add>, %85, %cst_65 [0] : vector<128x8xf32> to vector<8xf32>
    %91 = vector.shape_cast %90 : vector<8xf32> to vector<1x8xf32>
    %c0_66 = arith.constant 0 : index
    %c0_67 = arith.constant 0 : index
    %c0_68 = arith.constant 0 : index
    %c0_69 = arith.constant 0 : index
    %92 = vector.load %arg6[%c0_66, %c0_67, %c0_68, %c0_69] : memref<1x1x1x8xf32, #tpu.memory_space<vmem>>, vector<1x1x1x8xf32>
    %93 = vector.shape_cast %92 : vector<1x1x1x8xf32> to vector<1x8xf32>
    %94 = vector.shape_cast %91 : vector<1x8xf32> to vector<1x1x1x8xf32>
    tpu.vector_store %arg6[%c0_66, %c0_67, %c0_68, %c0_69], %94 {strides = array<i32>} : memref<1x1x1x8xf32, #tpu.memory_space<vmem>>, vector<1x1x1x8xf32>,
    %95 = arith.mulf %85, %85 : vector<128x8xf32>
    %cst_70 = arith.constant dense<0.000000e+00> : vector<8xf32>
    %96 = vector.multi_reduction <add>, %95, %cst_70 [0] : vector<128x8xf32> to vector<8xf32>
    %97 = vector.shape_cast %96 : vector<8xf32> to vector<1x8xf32>
    %c0_71 = arith.constant 0 : index
    %c0_72 = arith.constant 0 : index
    %c0_73 = arith.constant 0 : index
    %c0_74 = arith.constant 0 : index
    %98 = vector.load %arg7[%c0_71, %c0_72, %c0_73, %c0_74] : memref<1x1x1x8xf32, #tpu.memory_space<vmem>>, vector<1x1x1x8xf32>
    %99 = vector.shape_cast %98 : vector<1x1x1x8xf32> to vector<1x8xf32>
    %100 = vector.shape_cast %97 : vector<1x8xf32> to vector<1x1x1x8xf32>
    tpu.vector_store %arg7[%c0_71, %c0_72, %c0_73, %c0_74], %100 {strides = array<i32>} : memref<1x1x1x8xf32, #tpu.memory_space<vmem>>, vector<1x1x1x8xf32>,
    return
  }
  func.func @transform_0(%arg0: i32, %arg1: i32) -> (i32, i32, i32, i32) {
    %c0_i32 = arith.constant 0 : i32
    %c0_i32_0 = arith.constant 0 : i32
    %c0_i32_1 = arith.constant 0 : i32
    %c0_i32_2 = arith.constant 0 : i32
    return %arg0, %c0_i32, %c0_i32_0, %c0_i32_1 : i32, i32, i32, i32
  }
  func.func @transform_1(%arg0: i32, %arg1: i32) -> (i32, i32, i32) {
    %c0_i32 = arith.constant 0 : i32
    %c0_i32_0 = arith.constant 0 : i32
    %c0_i32_1 = arith.constant 0 : i32
    %c0_i32_2 = arith.constant 0 : i32
    return %c0_i32, %c0_i32_0, %c0_i32_1 : i32, i32, i32
  }
  func.func @transform_2(%arg0: i32, %arg1: i32) -> (i32, i32) {
    %c0_i32 = arith.constant 0 : i32
    %c0_i32_0 = arith.constant 0 : i32
    %c0_i32_1 = arith.constant 0 : i32
    return %c0_i32, %c0_i32_0 : i32, i32
  }
  func.func @transform_3(%arg0: i32, %arg1: i32) -> (i32, i32, i32) {
    %c0_i32 = arith.constant 0 : i32
    %c0_i32_0 = arith.constant 0 : i32
    return %arg0, %arg1, %c0_i32 : i32, i32, i32
  }
  func.func @transform_4(%arg0: i32, %arg1: i32) -> (i32, i32, i32, i32) {
    %c0_i32 = arith.constant 0 : i32
    %c0_i32_0 = arith.constant 0 : i32
    %c0_i32_1 = arith.constant 0 : i32
    return %arg0, %arg1, %c0_i32, %c0_i32_0 : i32, i32, i32, i32
  }
  func.func @transform_5(%arg0: i32, %arg1: i32) -> (i32, i32, i32, i32) {
    %c0_i32 = arith.constant 0 : i32
    %c0_i32_0 = arith.constant 0 : i32
    %c0_i32_1 = arith.constant 0 : i32
    return %arg0, %arg1, %c0_i32, %c0_i32_0 : i32, i32, i32, i32
  }
}

module attributes {stable_mosaic.version = 11 : i64} {
  func.func @_conv_fused_kernel(%arg0: i32, %arg1: i32, %arg2: memref<1x18x18x8xbf16, #tpu.memory_space<vmem>>, %arg3: memref<9x8x8xbf16, #tpu.memory_space<vmem>>, %arg4: memref<1x8xf32, #tpu.memory_space<vmem>>, %arg5: memref<1x128x8xf32, #tpu.memory_space<vmem>>, %arg6: memref<1x1x1x8xf32, #tpu.memory_space<vmem>>, %arg7: memref<1x1x1x8xf32, #tpu.memory_space<vmem>>) attributes {dimension_semantics = [#tpu.dimension_semantics<parallel>, #tpu.dimension_semantics<parallel>], iteration_bounds = array<i64: 2, 2>, scalar_prefetch = 0 : i64, scratch_operands = 0 : i64, tpu.core_type = #tpu.core_type<tc>, window_params = [{transform_indices = @transform_0, window_bounds = array<i64: 1, 18, 18, 8>}, {pipeline_mode = #tpu.pipeline_mode<synchronous>, transform_indices = @transform_1, window_bounds = array<i64: 9, 8, 8>}, {pipeline_mode = #tpu.pipeline_mode<synchronous>, transform_indices = @transform_2, window_bounds = array<i64: 1, 8>}, {transform_indices = @transform_3, window_bounds = array<i64: 1, 128, 8>}, {transform_indices = @transform_4, window_bounds = array<i64: 1, 1, 1, 8>}, {transform_indices = @transform_5, window_bounds = array<i64: 1, 1, 1, 8>}]} {
    %c8_i32 = arith.constant 8 : i32
    %0 = arith.muli %arg1, %c8_i32 : i32
    %cst = arith.constant 0.000000e+00 : f32
    %1 = vector.broadcast %cst : f32 to vector<128x8xf32>
    %c0_i32 = arith.constant 0 : i32
    %2 = arith.addi %0, %c0_i32 : i32
    %c0 = arith.constant 0 : index
    %3 = arith.index_cast %2 : i32 to index
    %c0_0 = arith.constant 0 : index
    %c0_1 = arith.constant 0 : index
    %4 = vector.load %arg2[%c0, %3, %c0_0, %c0_1] : memref<1x18x18x8xbf16, #tpu.memory_space<vmem>>, vector<1x8x16x8xbf16>
    %5 = vector.shape_cast %4 : vector<1x8x16x8xbf16> to vector<8x16x8xbf16>
    %6 = vector.shape_cast %5 : vector<8x16x8xbf16> to vector<128x8xbf16>
    %c0_2 = arith.constant 0 : index
    %c0_3 = arith.constant 0 : index
    %c0_4 = arith.constant 0 : index
    %7 = vector.load %arg3[%c0_2, %c0_3, %c0_4] : memref<9x8x8xbf16, #tpu.memory_space<vmem>>, vector<1x8x8xbf16>
    %8 = vector.shape_cast %7 : vector<1x8x8xbf16> to vector<8x8xbf16>
    %cst_5 = arith.constant dense<0.000000e+00> : vector<128x8xf32>
    %9 = tpu.matmul %6, %8, %cst_5 {dimension_numbers = #tpu.dot_dimension_numbers<[1], [0], [0], [1], [0, 0, 1, 1], [], []>} : vector<128x8xbf16>, vector<8x8xbf16>, vector<128x8xf32> -> vector<128x8xf32>
    %10 = arith.addf %1, %9 : vector<128x8xf32>
    %c0_i32_6 = arith.constant 0 : i32
    %11 = arith.addi %0, %c0_i32_6 : i32
    %c0_7 = arith.constant 0 : index
    %12 = arith.index_cast %11 : i32 to index
    %c1 = arith.constant 1 : index
    %c0_8 = arith.constant 0 : index
    %13 = vector.load %arg2[%c0_7, %12, %c1, %c0_8] : memref<1x18x18x8xbf16, #tpu.memory_space<vmem>>, vector<1x8x16x8xbf16>
    %14 = vector.shape_cast %13 : vector<1x8x16x8xbf16> to vector<8x16x8xbf16>
    %15 = vector.shape_cast %14 : vector<8x16x8xbf16> to vector<128x8xbf16>
    %c1_9 = arith.constant 1 : index
    %c0_10 = arith.constant 0 : index
    %c0_11 = arith.constant 0 : index
    %16 = vector.load %arg3[%c1_9, %c0_10, %c0_11] : memref<9x8x8xbf16, #tpu.memory_space<vmem>>, vector<1x8x8xbf16>
    %17 = vector.shape_cast %16 : vector<1x8x8xbf16> to vector<8x8xbf16>
    %cst_12 = arith.constant dense<0.000000e+00> : vector<128x8xf32>
    %18 = tpu.matmul %15, %17, %cst_12 {dimension_numbers = #tpu.dot_dimension_numbers<[1], [0], [0], [1], [0, 0, 1, 1], [], []>} : vector<128x8xbf16>, vector<8x8xbf16>, vector<128x8xf32> -> vector<128x8xf32>
    %19 = arith.addf %10, %18 : vector<128x8xf32>
    %c0_i32_13 = arith.constant 0 : i32
    %20 = arith.addi %0, %c0_i32_13 : i32
    %c0_14 = arith.constant 0 : index
    %21 = arith.index_cast %20 : i32 to index
    %c2 = arith.constant 2 : index
    %c0_15 = arith.constant 0 : index
    %22 = vector.load %arg2[%c0_14, %21, %c2, %c0_15] : memref<1x18x18x8xbf16, #tpu.memory_space<vmem>>, vector<1x8x16x8xbf16>
    %23 = vector.shape_cast %22 : vector<1x8x16x8xbf16> to vector<8x16x8xbf16>
    %24 = vector.shape_cast %23 : vector<8x16x8xbf16> to vector<128x8xbf16>
    %c2_16 = arith.constant 2 : index
    %c0_17 = arith.constant 0 : index
    %c0_18 = arith.constant 0 : index
    %25 = vector.load %arg3[%c2_16, %c0_17, %c0_18] : memref<9x8x8xbf16, #tpu.memory_space<vmem>>, vector<1x8x8xbf16>
    %26 = vector.shape_cast %25 : vector<1x8x8xbf16> to vector<8x8xbf16>
    %cst_19 = arith.constant dense<0.000000e+00> : vector<128x8xf32>
    %27 = tpu.matmul %24, %26, %cst_19 {dimension_numbers = #tpu.dot_dimension_numbers<[1], [0], [0], [1], [0, 0, 1, 1], [], []>} : vector<128x8xbf16>, vector<8x8xbf16>, vector<128x8xf32> -> vector<128x8xf32>
    %28 = arith.addf %19, %27 : vector<128x8xf32>
    %c1_i32 = arith.constant 1 : i32
    %29 = arith.addi %0, %c1_i32 : i32
    %c0_20 = arith.constant 0 : index
    %30 = arith.index_cast %29 : i32 to index
    %c0_21 = arith.constant 0 : index
    %c0_22 = arith.constant 0 : index
    %31 = vector.load %arg2[%c0_20, %30, %c0_21, %c0_22] : memref<1x18x18x8xbf16, #tpu.memory_space<vmem>>, vector<1x8x16x8xbf16>
    %32 = vector.shape_cast %31 : vector<1x8x16x8xbf16> to vector<8x16x8xbf16>
    %33 = vector.shape_cast %32 : vector<8x16x8xbf16> to vector<128x8xbf16>
    %c3 = arith.constant 3 : index
    %c0_23 = arith.constant 0 : index
    %c0_24 = arith.constant 0 : index
    %34 = vector.load %arg3[%c3, %c0_23, %c0_24] : memref<9x8x8xbf16, #tpu.memory_space<vmem>>, vector<1x8x8xbf16>
    %35 = vector.shape_cast %34 : vector<1x8x8xbf16> to vector<8x8xbf16>
    %cst_25 = arith.constant dense<0.000000e+00> : vector<128x8xf32>
    %36 = tpu.matmul %33, %35, %cst_25 {dimension_numbers = #tpu.dot_dimension_numbers<[1], [0], [0], [1], [0, 0, 1, 1], [], []>} : vector<128x8xbf16>, vector<8x8xbf16>, vector<128x8xf32> -> vector<128x8xf32>
    %37 = arith.addf %28, %36 : vector<128x8xf32>
    %c1_i32_26 = arith.constant 1 : i32
    %38 = arith.addi %0, %c1_i32_26 : i32
    %c0_27 = arith.constant 0 : index
    %39 = arith.index_cast %38 : i32 to index
    %c1_28 = arith.constant 1 : index
    %c0_29 = arith.constant 0 : index
    %40 = vector.load %arg2[%c0_27, %39, %c1_28, %c0_29] : memref<1x18x18x8xbf16, #tpu.memory_space<vmem>>, vector<1x8x16x8xbf16>
    %41 = vector.shape_cast %40 : vector<1x8x16x8xbf16> to vector<8x16x8xbf16>
    %42 = vector.shape_cast %41 : vector<8x16x8xbf16> to vector<128x8xbf16>
    %c4 = arith.constant 4 : index
    %c0_30 = arith.constant 0 : index
    %c0_31 = arith.constant 0 : index
    %43 = vector.load %arg3[%c4, %c0_30, %c0_31] : memref<9x8x8xbf16, #tpu.memory_space<vmem>>, vector<1x8x8xbf16>
    %44 = vector.shape_cast %43 : vector<1x8x8xbf16> to vector<8x8xbf16>
    %cst_32 = arith.constant dense<0.000000e+00> : vector<128x8xf32>
    %45 = tpu.matmul %42, %44, %cst_32 {dimension_numbers = #tpu.dot_dimension_numbers<[1], [0], [0], [1], [0, 0, 1, 1], [], []>} : vector<128x8xbf16>, vector<8x8xbf16>, vector<128x8xf32> -> vector<128x8xf32>
    %46 = arith.addf %37, %45 : vector<128x8xf32>
    %c1_i32_33 = arith.constant 1 : i32
    %47 = arith.addi %0, %c1_i32_33 : i32
    %c0_34 = arith.constant 0 : index
    %48 = arith.index_cast %47 : i32 to index
    %c2_35 = arith.constant 2 : index
    %c0_36 = arith.constant 0 : index
    %49 = vector.load %arg2[%c0_34, %48, %c2_35, %c0_36] : memref<1x18x18x8xbf16, #tpu.memory_space<vmem>>, vector<1x8x16x8xbf16>
    %50 = vector.shape_cast %49 : vector<1x8x16x8xbf16> to vector<8x16x8xbf16>
    %51 = vector.shape_cast %50 : vector<8x16x8xbf16> to vector<128x8xbf16>
    %c5 = arith.constant 5 : index
    %c0_37 = arith.constant 0 : index
    %c0_38 = arith.constant 0 : index
    %52 = vector.load %arg3[%c5, %c0_37, %c0_38] : memref<9x8x8xbf16, #tpu.memory_space<vmem>>, vector<1x8x8xbf16>
    %53 = vector.shape_cast %52 : vector<1x8x8xbf16> to vector<8x8xbf16>
    %cst_39 = arith.constant dense<0.000000e+00> : vector<128x8xf32>
    %54 = tpu.matmul %51, %53, %cst_39 {dimension_numbers = #tpu.dot_dimension_numbers<[1], [0], [0], [1], [0, 0, 1, 1], [], []>} : vector<128x8xbf16>, vector<8x8xbf16>, vector<128x8xf32> -> vector<128x8xf32>
    %55 = arith.addf %46, %54 : vector<128x8xf32>
    %c2_i32 = arith.constant 2 : i32
    %56 = arith.addi %0, %c2_i32 : i32
    %c0_40 = arith.constant 0 : index
    %57 = arith.index_cast %56 : i32 to index
    %c0_41 = arith.constant 0 : index
    %c0_42 = arith.constant 0 : index
    %58 = vector.load %arg2[%c0_40, %57, %c0_41, %c0_42] : memref<1x18x18x8xbf16, #tpu.memory_space<vmem>>, vector<1x8x16x8xbf16>
    %59 = vector.shape_cast %58 : vector<1x8x16x8xbf16> to vector<8x16x8xbf16>
    %60 = vector.shape_cast %59 : vector<8x16x8xbf16> to vector<128x8xbf16>
    %c6 = arith.constant 6 : index
    %c0_43 = arith.constant 0 : index
    %c0_44 = arith.constant 0 : index
    %61 = vector.load %arg3[%c6, %c0_43, %c0_44] : memref<9x8x8xbf16, #tpu.memory_space<vmem>>, vector<1x8x8xbf16>
    %62 = vector.shape_cast %61 : vector<1x8x8xbf16> to vector<8x8xbf16>
    %cst_45 = arith.constant dense<0.000000e+00> : vector<128x8xf32>
    %63 = tpu.matmul %60, %62, %cst_45 {dimension_numbers = #tpu.dot_dimension_numbers<[1], [0], [0], [1], [0, 0, 1, 1], [], []>} : vector<128x8xbf16>, vector<8x8xbf16>, vector<128x8xf32> -> vector<128x8xf32>
    %64 = arith.addf %55, %63 : vector<128x8xf32>
    %c2_i32_46 = arith.constant 2 : i32
    %65 = arith.addi %0, %c2_i32_46 : i32
    %c0_47 = arith.constant 0 : index
    %66 = arith.index_cast %65 : i32 to index
    %c1_48 = arith.constant 1 : index
    %c0_49 = arith.constant 0 : index
    %67 = vector.load %arg2[%c0_47, %66, %c1_48, %c0_49] : memref<1x18x18x8xbf16, #tpu.memory_space<vmem>>, vector<1x8x16x8xbf16>
    %68 = vector.shape_cast %67 : vector<1x8x16x8xbf16> to vector<8x16x8xbf16>
    %69 = vector.shape_cast %68 : vector<8x16x8xbf16> to vector<128x8xbf16>
    %c7 = arith.constant 7 : index
    %c0_50 = arith.constant 0 : index
    %c0_51 = arith.constant 0 : index
    %70 = vector.load %arg3[%c7, %c0_50, %c0_51] : memref<9x8x8xbf16, #tpu.memory_space<vmem>>, vector<1x8x8xbf16>
    %71 = vector.shape_cast %70 : vector<1x8x8xbf16> to vector<8x8xbf16>
    %cst_52 = arith.constant dense<0.000000e+00> : vector<128x8xf32>
    %72 = tpu.matmul %69, %71, %cst_52 {dimension_numbers = #tpu.dot_dimension_numbers<[1], [0], [0], [1], [0, 0, 1, 1], [], []>} : vector<128x8xbf16>, vector<8x8xbf16>, vector<128x8xf32> -> vector<128x8xf32>
    %73 = arith.addf %64, %72 : vector<128x8xf32>
    %c2_i32_53 = arith.constant 2 : i32
    %74 = arith.addi %0, %c2_i32_53 : i32
    %c0_54 = arith.constant 0 : index
    %75 = arith.index_cast %74 : i32 to index
    %c2_55 = arith.constant 2 : index
    %c0_56 = arith.constant 0 : index
    %76 = vector.load %arg2[%c0_54, %75, %c2_55, %c0_56] : memref<1x18x18x8xbf16, #tpu.memory_space<vmem>>, vector<1x8x16x8xbf16>
    %77 = vector.shape_cast %76 : vector<1x8x16x8xbf16> to vector<8x16x8xbf16>
    %78 = vector.shape_cast %77 : vector<8x16x8xbf16> to vector<128x8xbf16>
    %c8 = arith.constant 8 : index
    %c0_57 = arith.constant 0 : index
    %c0_58 = arith.constant 0 : index
    %79 = vector.load %arg3[%c8, %c0_57, %c0_58] : memref<9x8x8xbf16, #tpu.memory_space<vmem>>, vector<1x8x8xbf16>
    %80 = vector.shape_cast %79 : vector<1x8x8xbf16> to vector<8x8xbf16>
    %cst_59 = arith.constant dense<0.000000e+00> : vector<128x8xf32>
    %81 = tpu.matmul %78, %80, %cst_59 {dimension_numbers = #tpu.dot_dimension_numbers<[1], [0], [0], [1], [0, 0, 1, 1], [], []>} : vector<128x8xbf16>, vector<8x8xbf16>, vector<128x8xf32> -> vector<128x8xf32>
    %82 = arith.addf %73, %81 : vector<128x8xf32>
    %c0_60 = arith.constant 0 : index
    %c0_61 = arith.constant 0 : index
    %83 = vector.load %arg4[%c0_60, %c0_61] : memref<1x8xf32, #tpu.memory_space<vmem>>, vector<1x8xf32>
    %84 = vector.broadcast %83 : vector<1x8xf32> to vector<128x8xf32>
    %85 = arith.addf %82, %84 : vector<128x8xf32>
    %c0_62 = arith.constant 0 : index
    %c0_63 = arith.constant 0 : index
    %c0_64 = arith.constant 0 : index
    %86 = vector.load %arg5[%c0_62, %c0_63, %c0_64] : memref<1x128x8xf32, #tpu.memory_space<vmem>>, vector<1x128x8xf32>
    %87 = vector.shape_cast %86 : vector<1x128x8xf32> to vector<128x8xf32>
    %88 = vector.shape_cast %85 : vector<128x8xf32> to vector<1x128x8xf32>
    tpu.vector_store %arg5[%c0_62, %c0_63, %c0_64], %88 {strides = array<i32>} : memref<1x128x8xf32, #tpu.memory_space<vmem>>, vector<1x128x8xf32>,
    %cst_65 = arith.constant dense<0.000000e+00> : vector<8xf32>
    %89 = vector.multi_reduction <add>, %85, %cst_65 [0] : vector<128x8xf32> to vector<8xf32>
    %90 = vector.shape_cast %89 : vector<8xf32> to vector<1x8xf32>
    %c0_66 = arith.constant 0 : index
    %c0_67 = arith.constant 0 : index
    %c0_68 = arith.constant 0 : index
    %c0_69 = arith.constant 0 : index
    %91 = vector.load %arg6[%c0_66, %c0_67, %c0_68, %c0_69] : memref<1x1x1x8xf32, #tpu.memory_space<vmem>>, vector<1x1x1x8xf32>
    %92 = vector.shape_cast %91 : vector<1x1x1x8xf32> to vector<1x8xf32>
    %93 = vector.shape_cast %90 : vector<1x8xf32> to vector<1x1x1x8xf32>
    tpu.vector_store %arg6[%c0_66, %c0_67, %c0_68, %c0_69], %93 {strides = array<i32>} : memref<1x1x1x8xf32, #tpu.memory_space<vmem>>, vector<1x1x1x8xf32>,
    %94 = arith.mulf %85, %85 : vector<128x8xf32>
    %cst_70 = arith.constant dense<0.000000e+00> : vector<8xf32>
    %95 = vector.multi_reduction <add>, %94, %cst_70 [0] : vector<128x8xf32> to vector<8xf32>
    %96 = vector.shape_cast %95 : vector<8xf32> to vector<1x8xf32>
    %c0_71 = arith.constant 0 : index
    %c0_72 = arith.constant 0 : index
    %c0_73 = arith.constant 0 : index
    %c0_74 = arith.constant 0 : index
    %97 = vector.load %arg7[%c0_71, %c0_72, %c0_73, %c0_74] : memref<1x1x1x8xf32, #tpu.memory_space<vmem>>, vector<1x1x1x8xf32>
    %98 = vector.shape_cast %97 : vector<1x1x1x8xf32> to vector<1x8xf32>
    %99 = vector.shape_cast %96 : vector<1x8xf32> to vector<1x1x1x8xf32>
    tpu.vector_store %arg7[%c0_71, %c0_72, %c0_73, %c0_74], %99 {strides = array<i32>} : memref<1x1x1x8xf32, #tpu.memory_space<vmem>>, vector<1x1x1x8xf32>,
    return
  }
  func.func @transform_0(%arg0: i32, %arg1: i32) -> (i32, i32, i32, i32) {
    %c0_i32 = arith.constant 0 : i32
    %c0_i32_0 = arith.constant 0 : i32
    %c0_i32_1 = arith.constant 0 : i32
    %c0_i32_2 = arith.constant 0 : i32
    return %arg0, %c0_i32, %c0_i32_0, %c0_i32_1 : i32, i32, i32, i32
  }
  func.func @transform_1(%arg0: i32, %arg1: i32) -> (i32, i32, i32) {
    %c0_i32 = arith.constant 0 : i32
    %c0_i32_0 = arith.constant 0 : i32
    %c0_i32_1 = arith.constant 0 : i32
    %c0_i32_2 = arith.constant 0 : i32
    return %c0_i32, %c0_i32_0, %c0_i32_1 : i32, i32, i32
  }
  func.func @transform_2(%arg0: i32, %arg1: i32) -> (i32, i32) {
    %c0_i32 = arith.constant 0 : i32
    %c0_i32_0 = arith.constant 0 : i32
    %c0_i32_1 = arith.constant 0 : i32
    return %c0_i32, %c0_i32_0 : i32, i32
  }
  func.func @transform_3(%arg0: i32, %arg1: i32) -> (i32, i32, i32) {
    %c0_i32 = arith.constant 0 : i32
    %c0_i32_0 = arith.constant 0 : i32
    return %arg0, %arg1, %c0_i32 : i32, i32, i32
  }
  func.func @transform_4(%arg0: i32, %arg1: i32) -> (i32, i32, i32, i32) {
    %c0_i32 = arith.constant 0 : i32
    %c0_i32_0 = arith.constant 0 : i32
    %c0_i32_1 = arith.constant 0 : i32
    return %arg0, %arg1, %c0_i32, %c0_i32_0 : i32, i32, i32, i32
  }
  func.func @transform_5(%arg0: i32, %arg1: i32) -> (i32, i32, i32, i32) {
    %c0_i32 = arith.constant 0 : i32
    %c0_i32_0 = arith.constant 0 : i32
    %c0_i32_1 = arith.constant 0 : i32
    return %arg0, %arg1, %c0_i32, %c0_i32_0 : i32, i32, i32, i32
  }
}

module attributes {stable_mosaic.version = 11 : i64} {
  func.func @_bn_relu_kernel(%arg0: i32, %arg1: memref<128x8xf32, #tpu.memory_space<vmem>>, %arg2: memref<1x8xf32, #tpu.memory_space<vmem>>, %arg3: memref<1x8xf32, #tpu.memory_space<vmem>>, %arg4: memref<128x8xf32, #tpu.memory_space<vmem>>) attributes {dimension_semantics = [#tpu.dimension_semantics<parallel>], iteration_bounds = array<i64: 4>, scalar_prefetch = 0 : i64, scratch_operands = 0 : i64, tpu.core_type = #tpu.core_type<tc>, window_params = [{transform_indices = @transform_0, window_bounds = array<i64: 128, 8>}, {pipeline_mode = #tpu.pipeline_mode<synchronous>, transform_indices = @transform_1, window_bounds = array<i64: 1, 8>}, {pipeline_mode = #tpu.pipeline_mode<synchronous>, transform_indices = @transform_2, window_bounds = array<i64: 1, 8>}, {transform_indices = @transform_3, window_bounds = array<i64: 128, 8>}]} {
    %c0 = arith.constant 0 : index
    %c0_0 = arith.constant 0 : index
    %0 = vector.load %arg1[%c0, %c0_0] : memref<128x8xf32, #tpu.memory_space<vmem>>, vector<128x8xf32>
    %c0_1 = arith.constant 0 : index
    %c0_2 = arith.constant 0 : index
    %1 = vector.load %arg2[%c0_1, %c0_2] : memref<1x8xf32, #tpu.memory_space<vmem>>, vector<1x8xf32>
    %2 = vector.broadcast %1 : vector<1x8xf32> to vector<128x8xf32>
    %3 = arith.mulf %0, %2 : vector<128x8xf32>
    %c0_3 = arith.constant 0 : index
    %c0_4 = arith.constant 0 : index
    %4 = vector.load %arg3[%c0_3, %c0_4] : memref<1x8xf32, #tpu.memory_space<vmem>>, vector<1x8xf32>
    %5 = vector.broadcast %4 : vector<1x8xf32> to vector<128x8xf32>
    %6 = arith.addf %3, %5 : vector<128x8xf32>
    %cst = arith.constant 0.000000e+00 : f32
    %7 = vector.broadcast %cst : f32 to vector<128x8xf32>
    %8 = arith.maximumf %6, %7 : vector<128x8xf32>
    %c0_5 = arith.constant 0 : index
    %c0_6 = arith.constant 0 : index
    %9 = vector.load %arg4[%c0_5, %c0_6] : memref<128x8xf32, #tpu.memory_space<vmem>>, vector<128x8xf32>
    tpu.vector_store %arg4[%c0_5, %c0_6], %8 {strides = array<i32>} : memref<128x8xf32, #tpu.memory_space<vmem>>, vector<128x8xf32>,
    return
  }
  func.func @transform_0(%arg0: i32) -> (i32, i32) {
    %c0_i32 = arith.constant 0 : i32
    %c0_i32_0 = arith.constant 0 : i32
    return %arg0, %c0_i32 : i32, i32
  }
  func.func @transform_1(%arg0: i32) -> (i32, i32) {
    %c0_i32 = arith.constant 0 : i32
    %c0_i32_0 = arith.constant 0 : i32
    %c0_i32_1 = arith.constant 0 : i32
    return %c0_i32, %c0_i32_0 : i32, i32
  }
  func.func @transform_2(%arg0: i32) -> (i32, i32) {
    %c0_i32 = arith.constant 0 : i32
    %c0_i32_0 = arith.constant 0 : i32
    %c0_i32_1 = arith.constant 0 : i32
    return %c0_i32, %c0_i32_0 : i32, i32
  }
  func.func @transform_3(%arg0: i32) -> (i32, i32) {
    %c0_i32 = arith.constant 0 : i32
    %c0_i32_0 = arith.constant 0 : i32
    return %arg0, %c0_i32 : i32, i32
  }
}

</mosaic_0001>

<bundles_post_ra>
// kernel: _lambda_.5
= control target key start
LH: loop header
LB: loop body
LE: loop exit
PB: predicated region body
PF: predicated region fallthrough
CT: control target
= control target key end

     0   :  { %s374_s12 = smov 0   ;;  %s485_s0 = inlined_call_operand.vmem [shape: f32[512,8], index: 0, kind: input, shape index: {}]   ;;  %s486_s1 = inlined_call_operand.vmem [shape: f32[1,8], index: 1, kind: input, shape index: {}]   ;;  %s487_s2 = inlined_call_operand.vmem [shape: f32[1,8], index: 2, kind: input, shape index: {}]   ;;  %s488_s3 = inlined_call_operand.vmem [shape: f32[512,8], index: 3, kind: output, shape index: {}]  }
   0x1 LB: > { %s325_s13 = sadd.s32 4294967295, %s352_s12   ;;  %p329_p0 = scmp.ge.s32.totalorder %s352_s12, 1  ;;  %s352_s12 = sphi %s374_s12, %s13_s12  }
   0x2   : > { %p138_p1 = scmp.lt.s32.totalorder %s352_s12, 5 }
   0x4   : > { %p139_p2 = pnand %p329_p0, %p138_p1 }
   0x5   : > { %s330_s14 = sshll.u32 (!%p139_p2), %s325_s13, 4  ;;  %v385_v0 = vld [vmem:[%s486_s1] ss:$0 sm:$0xff] (!%p139_p2)  ;;  %vm252_vm0 = vcmask (!%p139_p2), 64512  }
   0x6   : > { %142 = sbr.rel (%p139_p2) target bundleno = 34 (0x22), region = 32  ;;  %p163_p3 = scmp.lt.s32.totalorder (!%p139_p2), %s330_s14, 63  ;;  %v395_v1 = vld [vmem:[%s487_s2] ss:$0 sm:$0xff] (!%p139_p2) }
   0xd   : > { %s490_s14 = smov (!%p163_p3, %s330_s14), 63 }
   0xe   : > { %s331_s15 = sshll.u32 %s490_s14, 3 }
   0xf   : > { %s390_s20 = scalar_lea.vmem %s485_s0, %s331_s15  ;;  %s418_s25 = scalar_lea.vmem %s488_s3, %s331_s15 }
  0x10   : > { %v174_v2 = vld [vmem:[%s390_s20] sm:$0xff]  ;;  %v175_v3 = vld [vmem:[%s390_s20 + $0x8] sm:$0xff]  ;;  %v176_v4 = vld [vmem:[%s390_s20 + $0x10] sm:$0xff] }
  0x11   : > { %v197_v5 = vmul.f32 %v385_v0, %v174_v2  ;;  %v198_v6 = vmul.f32 %v385_v0, %v175_v3  ;;  %v199_v7 = vmul.f32 %v385_v0, %v176_v4  ;;  %v177_v8 = vld [vmem:[%s390_s20 + $0x18] sm:$0xff]  ;;  %v178_v9 = vld [vmem:[%s390_s20 + $0x20] sm:$0xff]  ;;  %v179_v10 = vld [vmem:[%s390_s20 + $0x28] sm:$0xff] }
  0x12   : > { %v200_v11 = vmul.f32 %v385_v0, %v177_v8  ;;  %v201_v12 = vmul.f32 %v385_v0, %v178_v9  ;;  %v202_v13 = vmul.f32 %v385_v0, %v179_v10  ;;  %v180_v14 = vld [vmem:[%s390_s20 + $0x30] sm:$0xff]  ;;  %v181_v15 = vld [vmem:[%s390_s20 + $0x38] sm:$0xff]  ;;  %v182_v24 = vld [vmem:[%s390_s20 + $0x40] sm:$0xff] }
  0x13   : > { %v220_v16 = vadd.f32 %v395_v1, %v197_v5  ;;  %v221_v17 = vadd.f32 %v395_v1, %v198_v6  ;;  %v222_v18 = vadd.f32 %v395_v1, %v199_v7  ;;  %v203_v19 = vmul.f32 %v385_v0, %v180_v14  ;;  %v183_v25 = vld [vmem:[%s390_s20 + $0x48] sm:$0xff]  ;;  %v184_v26 = vld [vmem:[%s390_s20 + $0x50] sm:$0xff]  ;;  %v185_v31 = vld [vmem:[%s390_s20 + $0x58] sm:$0xff] }
  0x14   : > { %v223_v20 = vadd.f32 %v395_v1, %v200_v11  ;;  %v224_v21 = vadd.f32 %v395_v1, %v201_v12  ;;  %v225_v22 = vadd.f32 %v395_v1, %v202_v13  ;;  %v204_v23 = vmul.f32 %v385_v0, %v181_v15  ;;  %v186_v32 = vld [vmem:[%s390_s20 + $0x60] sm:$0xff]  ;;  %v187_v33 = vld [vmem:[%s390_s20 + $0x68] sm:$0xff]  ;;  %v188_v38 = vld [vmem:[%s390_s20 + $0x70] sm:$0xff] }
  0x15   : > { %v236_v27 = vmax.f32 %v220_v16, 0.0  ;;  %v237_v28 = vmax.f32 %v221_v17, 0.0  ;;  %v238_v29 = vmax.f32 %v222_v18, 0.0  ;;  %v226_v30 = vadd.f32 %v395_v1, %v203_v19  ;;  %v189_v43 = vld [vmem:[%s390_s20 + $0x78] sm:$0xff] }
  0x16   : > { %v239_v34 = vmax.f32 %v223_v20, 0.0  ;;  %v240_v35 = vmax.f32 %v224_v21, 0.0  ;;  %v241_v36 = vmax.f32 %v225_v22, 0.0  ;;  %v227_v37 = vadd.f32 %v395_v1, %v204_v23 }
  0x17   : > { %253 = vst.msk [vmem:[%s418_s25] sm:$0xff] %vm252_vm0, %v236_v27  ;;  %254 = vst.msk [vmem:[%s418_s25 + $0x8] sm:$0xff] %vm252_vm0, %v237_v28  ;;  %v242_v39 = vmax.f32 %v226_v30, 0.0  ;;  %v205_v40 = vmul.f32 %v385_v0, %v182_v24  ;;  %v206_v41 = vmul.f32 %v385_v0, %v183_v25  ;;  %v207_v42 = vmul.f32 %v385_v0, %v184_v26 }
  0x18   : > { %255 = vst.msk [vmem:[%s418_s25 + $0x10] sm:$0xff] %vm252_vm0, %v238_v29  ;;  %256 = vst.msk [vmem:[%s418_s25 + $0x18] sm:$0xff] %vm252_vm0, %v239_v34  ;;  %v243_v44 = vmax.f32 %v227_v37, 0.0  ;;  %v208_v45 = vmul.f32 %v385_v0, %v185_v31  ;;  %v209_v46 = vmul.f32 %v385_v0, %v186_v32  ;;  %v210_v47 = vmul.f32 %v385_v0, %v187_v33 }
  0x19   : > { %257 = vst.msk [vmem:[%s418_s25 + $0x20] sm:$0xff] %vm252_vm0, %v240_v35  ;;  %258 = vst.msk [vmem:[%s418_s25 + $0x28] sm:$0xff] %vm252_vm0, %v241_v36  ;;  %v228_v48 = vadd.f32 %v395_v1, %v205_v40  ;;  %v229_v49 = vadd.f32 %v395_v1, %v206_v41  ;;  %v230_v50 = vadd.f32 %v395_v1, %v207_v42 }
  0x1a   : > { %259 = vst.msk [vmem:[%s418_s25 + $0x30] sm:$0xff] %vm252_vm0, %v242_v39  ;;  %v211_v51 = vmul.f32 %v385_v0, %v188_v38  ;;  %260 = vst.msk [vmem:[%s418_s25 + $0x38] sm:$0xff] %vm252_vm0, %v243_v44  ;;  %v231_v52 = vadd.f32 %v395_v1, %v208_v45  ;;  %v232_v53 = vadd.f32 %v395_v1, %v209_v46 }
  0x1b   : > { %v233_v54 = vadd.f32 %v395_v1, %v210_v47  ;;  %v212_v55 = vmul.f32 %v385_v0, %v189_v43  ;;  %v244_v56 = vmax.f32 %v228_v48, 0.0  ;;  %v245_v57 = vmax.f32 %v229_v49, 0.0 }
  0x1c   : > { %v246_v58 = vmax.f32 %v230_v50, 0.0  ;;  %v234_v59 = vadd.f32 %v395_v1, %v211_v51  ;;  %v247_v60 = vmax.f32 %v231_v52, 0.0  ;;  %v248_v61 = vmax.f32 %v232_v53, 0.0 }
  0x1d   : > { %v249_v62 = vmax.f32 %v233_v54, 0.0  ;;  %v235_v63 = vadd.f32 %v395_v1, %v212_v55  ;;  %261 = vst.msk [vmem:[%s418_s25 + $0x40] sm:$0xff] %vm252_vm0, %v244_v56  ;;  %262 = vst.msk [vmem:[%s418_s25 + $0x48] sm:$0xff] %vm252_vm0, %v245_v57 }
  0x1e   : > { %263 = vst.msk [vmem:[%s418_s25 + $0x50] sm:$0xff] %vm252_vm0, %v246_v58  ;;  %v250_v2 = vmax.f32 %v234_v59, 0.0  ;;  %264 = vst.msk [vmem:[%s418_s25 + $0x58] sm:$0xff] %vm252_vm0, %v247_v60 }
  0x1f   : > { %265 = vst.msk [vmem:[%s418_s25 + $0x60] sm:$0xff] %vm252_vm0, %v248_v61  ;;  %266 = vst.msk [vmem:[%s418_s25 + $0x68] sm:$0xff] %vm252_vm0, %v249_v62  ;;  %v251_v0 = vmax.f32 %v235_v63, 0.0 }
  0x20   : > { %267 = vst.msk [vmem:[%s418_s25 + $0x70] sm:$0xff] %vm252_vm0, %v250_v2 }
  0x21   : > { %268 = vst.msk [vmem:[%s418_s25 + $0x78] sm:$0xff] %vm252_vm0, %v251_v0 }
  0x22 PF: > { %s13_s12 = sadd.s32 1, %s352_s12  }
  0x23   : > { %p10_p4 = scmp.ge.s32.totalorder %s13_s12, 6  }
  0x25   :  { %12 = sbr.rel (!%p10_p4) target bundleno = 1 (0x1), region = 62 }

// kernel: _lambda_.4
= control target key start
LH: loop header
LB: loop body
LE: loop exit
PB: predicated region body
PF: predicated region fallthrough
CT: control target
= control target key end

     0   :  { %s3872_s18 = smov 0   ;;  %s3874_s19 = smov 0   ;;  %s4884_s0 = inlined_call_operand.vmem [shape: bf16[2,18,18,8], index: 0, kind: input, shape index: {}]   ;;  %s4885_s1 = inlined_call_operand.vmem [shape: bf16[9,8,8], index: 1, kind: input, shape index: {}]   ;;  %s4886_s2 = inlined_call_operand.vmem [shape: f32[1,8], index: 2, kind: input, shape index: {}]   ;;  %s4887_s3 = inlined_call_operand.vmem [shape: f32[2,256,8], index: 3, kind: output, shape index: {0}]   ;;  %s4888_s4 = inlined_call_operand.vmem [shape: f32[2,2,1,8], index: 4, kind: output, shape index: {1}]   ;;  %s4889_s5 = inlined_call_operand.vmem [shape: f32[2,2,1,8], index: 5, kind: output, shape index: {2}]  }
   0x1   :  { %s3876_s20 = smov 0   ;;  %s3878_s21 = smov 0  }
   0x2   :  { %s3880_s22 = smov 0  }
   0x3 LB: > { %s25_s23 = sadd.s32 1, %s3832_s20  ;;  %s28_s24 = sadd.s32 1, %s3836_s21  ;;  %s3840_s22 = sphi %s3880_s22, %s16_s22   ;;  %s3836_s21 = sphi %s3878_s21, %s4915_s21   ;;  %s3832_s20 = sphi %s3876_s20, %s4914_s20   ;;  %s3828_s19 = sphi %s3874_s19, %s4913_s19   ;;  %s3824_s18 = sphi %s3872_s18, %s4912_s18  }
   0x4   : > { %p26_p0 = scmp.ge.s32.totalorder %s25_s23, 2  ;;  %p3063_p1 = scmp.ge.s32.totalorder %s3840_s22, 1 }
   0x5   : > { %p210_p2 = scmp.lt.s32.totalorder %s3840_s22, 5 }
   0x6   : > { %s4917_s23 = smov (%p26_p0, %s25_s23), 0  ;;  %s4919_s24 = smov (!%p26_p0, %s28_s24), %s3836_s21 }
   0x7   : > { %p211_p3 = pnand %p3063_p1, %p210_p2  ;;  %p30_p4 = scmp.ge.s32.totalorder %s4919_s24, 2 }
   0x9   : > { %s4921_s24 = smov (%p30_p4, %s4919_s24), 0  ;;  %214 = sbr.rel (%p211_p3) target bundleno = 440 (0x1b8), region = 32 }
  0x10   : > { %v3073_v0 = vld [vmem:[%s4885_s1 + $0x4] sm:$0xf]  ;;  %vm561_vm0 = vcmask 1043456   ;;  %v3190_v1 = vld [vmem:[%s4885_s1 + $0x10] sm:$0xf]  ;;  %p256_p5 = scmp.lt.s32.totalorder %s3828_s19, 1 }
  0x11   : > { %3726 = vmatprep.subr.msk.bf16.mxu1 %vm561_vm0, %v3073_v0  ;;  %3730 = vmatprep.subr.msk.bf16.mxu0 %vm561_vm0, %v3190_v1  ;;  %v563_v2 = vsel %vm561_vm0, %v3073_v0, 0  ;;  %v3914_v3 = vsel %vm561_vm0, %v3190_v1, 0  ;;  %v306_v4 = vld [vmem:[%s4885_s1] sm:$0xf]  ;;  %s3352_s6 = smul.u32 96, %s3824_s18  ;;  %vm536_vm3 = vcmask 64512  }
  0x12   : > { %3435 = vmatpush3.bf16.msra.mxu1 %v563_v2  ;;  %3507 = vmatpush3.bf16.msra.mxu0 %v3914_v3  ;;  %s4923_s19 = smov (!%p256_p5, %s3828_s19), 1  ;;  %v3223_v5 = vld [vmem:[%s4885_s1 + $0x14] sm:$0xf]  ;;  %vm315_vm1 = vsmask.f32 3328  ;;  %v3956_v17 = vsel %vm561_vm0, %v306_v4, 0 }
  0x13   : > { %3727 = vmatprep.subr.msk.bf16.mxu1 %vm561_vm0, %v306_v4  ;;  %s3736_s9 = smul.u32 216, %s4923_s19  ;;  %3732 = vmatprep.subr.msk.bf16.mxu0 %vm561_vm0, %v3223_v5  ;;  %vm316_vm2 = vsmask.f32 7440  ;;  %v3962_v26 = vld [vmem:[%s4885_s1 + $0x18] sm:$0xf]  ;;  %v3979_v37 = vsel %vm561_vm0, %v3223_v5, 0 }
  0x14   : > { %vm3971_vm4 = vmor %vm315_vm1, %vm316_vm2  ;;  %v3983_v41 = vsel %vm561_vm0, %v3962_v26, 0  ;;  %vm850_vm5 = vcmask 1042432   ;;  %vm851_vm6 = vcmask 1046532   ;;  %s3065_s8 = sshll.u32 %s3824_s18, 4  ;;  %p273_p7 = scmp.lt.s32.totalorder %s3824_s18, 1  ;;  %vm2827_vm8 = vcmask 57344  }
  0x15   : > { %s260_s12 = scalar_lea.vmem %s4884_s0, %s3736_s9  ;;  %vm4126_vm7 = vmor %vm850_vm5, %vm851_vm6  ;;  %p264_p6 = scmp.lt.s32.totalorder %s3065_s8, 31 }
  0x16   : > { %s3932_s13 = scalar_lea.vmem %s260_s12, %s3352_s6  ;;  %s3066_s9 = sshll.u32 %s4923_s19, 5 }
  0x17   : > { %v3935_v6 = vld [vmem:[%s3932_s13] sm:$0xf]  ;;  %v3938_v7 = vld [vmem:[%s3932_s13 + $0x4] sm:$0xf]  ;;  %v3941_v8 = vld [vmem:[%s3932_s13 + $0x8] sm:$0x1] }
  0x18   : > { %v319_v9 = vshrl.u32 %v3935_v6, 16  ;;  %v322_v10 = vshll.u32 %v3935_v6, 16  ;;  %v328_v11 = vshll.u32 %v3938_v7, 16  ;;  %v332_v12 = vshrl.u32 %v3938_v7, 16  ;;  %v3166_v13 = vld [vmem:[%s3932_s13 + $0xc] sm:$0xf] }
  0x19   : > { %v338_v14 = vshll.u32 %v3941_v8, 16  ;;  %v3950_v15 = vld [vmem:[%s3932_s13 + $0x10] sm:$0xf]  ;;  %v3953_v16 = vld [vmem:[%s3932_s13 + $0x14] sm:$0x1]  ;;  %v1302_v23 = vshrl.u32 %v3166_v13, 16 }
  0x1a   : > { %v321_v18 = vrot.slane %v319_v9, 4  ;;  %v324_v19 = vrot.slane %v322_v10, 5  ;;  %v330_v20 = vrot.slane %v328_v11, 5  ;;  %v334_v21 = vrot.slane %v332_v12, 4  ;;  %v3967_v31 = vld [vmem:[%s3932_s13 + $0xc] sm:$0xf] }
  0x1b   : > { %v340_v22 = vrot.slane %v338_v14, 5  ;;  %v1305_v24 = vshll.u32 %v3166_v13, 16  ;;  %v1311_v25 = vshll.u32 %v3950_v15, 16  ;;  %v1315_v29 = vshrl.u32 %v3950_v15, 16  ;;  %v3976_v36 = vld [vmem:[%s3932_s13 + $0x10] sm:$0xf] }
  0x1c   : > { %v325_v27 = vor.u32 %v324_v19, %v321_v18  ;;  %v335_v28 = vor.u32 %v334_v21, %v330_v20  ;;  %v1321_v30 = vshll.u32 %v3953_v16, 16  ;;  %v1304_v33 = vrot.slane %v1302_v23, 4  ;;  %v3986_v44 = vld [vmem:[%s3932_s13 + $0x14] sm:$0x1]  ;;  %v3169_v55 = vld [vmem:[%s3932_s13 + $0x18] sm:$0xf] }
  0x1d   : > { %v1307_v34 = vrot.slane %v1305_v24, 5  ;;  %v1313_v35 = vrot.slane %v1311_v25, 5  ;;  %v1317_v40 = vrot.slane %v1315_v29, 4  ;;  %v343_v45 = vshrl.u32 %v3967_v31, 16  ;;  %v3999_v60 = vld [vmem:[%s3932_s13 + $0x1c] sm:$0xf] }
  0x1e   : > { %v326_v38 = vrot.slane %v325_v27, 4  ;;  %v336_v39 = vrot.slane %v335_v28, 4  ;;  %v1323_v43 = vrot.slane %v1321_v30, 5  ;;  %v346_v46 = vshll.u32 %v3967_v31, 16  ;;  %v4007_v1 = vld [vmem:[%s3932_s13 + $0x20] sm:$0x1] }
  0x1f   : > { %v1308_v42 = vor.u32 %v1307_v34, %v1304_v33  ;;  %v1318_v49 = vor.u32 %v1317_v40, %v1313_v35  ;;  %v352_v50 = vshll.u32 %v3976_v36, 16  ;;  %v345_v53 = vrot.slane %v343_v45, 4  ;;  %v4015_v21 = vld [vmem:[%s3932_s13 + $0x18] sm:$0xf]  ;;  %v4022_v27 = vld [vmem:[%s3932_s13 + $0x1c] sm:$0xf] }
  0x20   : > { %v331_v47 = vsel %vm3971_vm4, %v326_v38, %v330_v20  ;;  %v341_v48 = vsel %vm3971_vm4, %v336_v39, %v340_v22  ;;  %v348_v54 = vrot.slane %v346_v46, 5  ;;  %v356_v58 = vshrl.u32 %v3976_v36, 16  ;;  %v4030_v38 = vld [vmem:[%s3932_s13 + $0x20] sm:$0x1]  ;;  %s4925_s8 = smov (!%p264_p6, %s3065_s8), 31  ;;  %s4927_s18 = smov (!%p273_p7, %s3824_s18), 1 }
  0x21   : > { %v3074_v51 = vcombine.low %v331_v47, %v341_v48  ;;  %v1309_v52 = vrot.slane %v1308_v42, 4  ;;  %v1319_v56 = vrot.slane %v1318_v49, 4  ;;  %v354_v57 = vrot.slane %v352_v50, 5  ;;  %v3172_v47 = vld [vmem:[%s3932_s13 + $0x24] sm:$0xf]  ;;  %s267_s10 = sadd.s32 %s3066_s9, %s4925_s8  ;;  %s3068_s17 = sshll.u32 %s4923_s19, 1 }
  0x22   : > { %v362_v59 = vshll.u32 %v3986_v44, 16  ;;  %v1693_v62 = vrot.slane %v3950_v15, 5  ;;  %v1696_v63 = vrot.slane %v3953_v16, 5  ;;  %v349_v0 = vor.u32 %v348_v54, %v345_v53  ;;  %s3067_s11 = sshll.u32 %s267_s10, 3  ;;  %s276_s25 = sadd.s32 %s3068_s17, %s4927_s18 }
  0x23   : > { %3436 = vmatprep.mubr.msk.bf16.mxu1 %vm536_vm3, %v3074_v51  ;;  %v1314_v61 = vsel %vm3971_vm4, %v1309_v52, %v1313_v35  ;;  %v1324_v2 = vsel %vm3971_vm4, %v1319_v56, %v1323_v43  ;;  %v358_v4 = vrot.slane %v356_v58, 4  ;;  %v1326_v9 = vshrl.u32 %v3169_v55, 16  ;;  %v4040_v52 = vld [vmem:[%s3932_s13 + $0x28] sm:$0xf]  ;;  %s4778_s16 = scalar_lea.vmem %s4887_s3, %s3067_s11  ;;  %s277_s28 = scalar_lea.vmem %s4888_s4, %s276_s25 }
  0x24   : > { %v364_v5 = vrot.slane %v362_v59, 5  ;;  %v3191_v10 = vcombine.low %v1314_v61, %v1324_v2  ;;  %v350_v11 = vrot.slane %v349_v0, 4  ;;  %v1329_v12 = vshll.u32 %v3169_v55, 16  ;;  %v4052_v61 = vld [vmem:[%s3932_s13 + $0x2c] sm:$0x1]  ;;  %s284_s6 = scalar_lea.vmem %s4889_s5, %s276_s25 }
  0x25   : > { %v1335_v13 = vshll.u32 %v3999_v60, 16  ;;  %v359_v14 = vor.u32 %v358_v4, %v354_v57  ;;  %v1328_v18 = vrot.slane %v1326_v9, 4  ;;  %v1339_v19 = vshrl.u32 %v3999_v60, 16 }
  0x26   : > { %v1345_v20 = vshll.u32 %v4007_v1, 16  ;;  %3508 = vmatprep.mubr.msk.bf16.mxu0 %vm536_vm3, %v3191_v10  ;;  %v355_v22 = vsel %vm3971_vm4, %v350_v11, %v354_v57  ;;  %v1331_v23 = vrot.slane %v1329_v12, 5  ;;  %v1700_v25 = vrot.slane %v3999_v60, 5  ;;  %v4046_v57 = vld [vmem:[%s4885_s1 + $0x8] sm:$0xf] }
  0x27   : > { %v1337_v24 = vrot.slane %v1335_v13, 5  ;;  %v360_v28 = vrot.slane %v359_v14, 4  ;;  %v1341_v29 = vrot.slane %v1339_v19, 4  ;;  %v1703_v33 = vrot.slane %v4007_v1, 5  ;;  %v4059_v11 = vld [vmem:[%s3932_s13 + $0x24] sm:$0xf] }
  0x28   : > { %v1347_v30 = vrot.slane %v1345_v20, 5  ;;  %v1332_v34 = vor.u32 %v1331_v23, %v1328_v18  ;;  %v4027_v35 = vrot.slane %v1700_v25, 4  ;;  %v367_v39 = vshrl.u32 %v4015_v21, 16  ;;  %v4062_v19 = vld [vmem:[%s3932_s13 + $0x28] sm:$0xf] }
  0x29   : > { %v370_v40 = vshll.u32 %v4015_v21, 16  ;;  %v365_v42 = vsel %vm3971_vm4, %v360_v28, %v364_v5  ;;  %v1342_v43 = vor.u32 %v1341_v29, %v1337_v24  ;;  %v376_v45 = vshll.u32 %v4022_v27, 16  ;;  %v4072_v29 = vld [vmem:[%s3932_s13 + $0x2c] sm:$0x1] }
  0x2a   : > { %v380_v46 = vshrl.u32 %v4022_v27, 16  ;;  %v3075_v48 = vcombine.low %v355_v22, %v365_v42  ;;  %v1333_v49 = vrot.slane %v1332_v34, 4  ;;  %v369_v50 = vrot.slane %v367_v39, 4 }
  0x2b   : > { %v372_v51 = vrot.slane %v370_v40, 5  ;;  %v1343_v53 = vrot.slane %v1342_v43, 4  ;;  %v378_v54 = vrot.slane %v376_v45, 5  ;;  %v386_v56 = vshll.u32 %v4030_v38, 16  ;;  %v3175_v45 = vld [vmem:[%s3932_s13 + $0x30] sm:$0xf] }
  0x2c   : > { %v382_v55 = vrot.slane %v380_v46, 4  ;;  %3437 = vmatmul.mubr.msk.bf16.vlgmr.msra.gmra.mrb[0].mxu1 %vm536_vm3, %v3075_v48  ;;  %v1338_v58 = vsel %vm3971_vm4, %v1333_v49, %v1337_v24  ;;  %v1350_v0 = vshrl.u32 %v3172_v47, 16  ;;  %v1353_v2 = vshll.u32 %v3172_v47, 16 }
  0x2d   : > { %v373_v59 = vor.u32 %v372_v51, %v369_v50  ;;  %3453 = vmatpush3.bf16.msra.mxu1 %v3956_v17  ;;  %v1348_v4 = vsel %vm3971_vm4, %v1343_v53, %v1347_v30  ;;  %v388_v9 = vrot.slane %v386_v56, 5  ;;  %v1359_v10 = vshll.u32 %v4040_v52, 16  ;;  %v4082_v50 = vld [vmem:[%s3932_s13 + $0x34] sm:$0xf] }
  0x2e   : > { %v383_v5 = vor.u32 %v382_v55, %v378_v54  ;;  %v3192_v12 = vcombine.low %v1338_v58, %v1348_v4  ;;  %v1352_v14 = vrot.slane %v1350_v0, 4  ;;  %v1355_v18 = vrot.slane %v1353_v2, 5  ;;  %3728 = vmatprep.subr.msk.bf16.mxu1 %vm561_vm0, %v4046_v57  ;;  %v4092_v58 = vld [vmem:[%s3932_s13 + $0x38] sm:$0x1] }
  0x2f   : > { %v374_v13 = vrot.slane %v373_v59, 4  ;;  %v1361_v20 = vrot.slane %v1359_v10, 5  ;;  %v1363_v22 = vshrl.u32 %v4040_v52, 16  ;;  %v1369_v23 = vshll.u32 %v4052_v61, 16 }
  0x30   : > { %v384_v17 = vrot.slane %v383_v5, 4  ;;  %3509 = vmatmul.mubr.msk.bf16.vlgmr.msra.gmra.mrb[0].mxu0 %vm536_vm3, %v3192_v12  ;;  %v1356_v28 = vor.u32 %v1355_v18, %v1352_v14  ;;  %v391_v30 = vshrl.u32 %v4059_v11, 16  ;;  %v394_v34 = vshll.u32 %v4059_v11, 16  ;;  %v4097_v14 = vld [vmem:[%s3932_s13 + $0x30] sm:$0xf] }
  0x31   : > { %v379_v24 = vsel %vm3971_vm4, %v374_v13, %v378_v54  ;;  %3525 = vmatpush3.bf16.msra.mxu0 %v3979_v37  ;;  %v1365_v40 = vrot.slane %v1363_v22, 4  ;;  %v1371_v42 = vrot.slane %v1369_v23, 5  ;;  %v400_v43 = vshll.u32 %v4062_v19, 16  ;;  %v4103_v23 = vld [vmem:[%s3932_s13 + $0x34] sm:$0xf] }
  0x32   : > { %v389_v39 = vsel %vm3971_vm4, %v384_v17, %v388_v9  ;;  %v1357_v47 = vrot.slane %v1356_v28, 4  ;;  %v393_v48 = vrot.slane %v391_v30, 4  ;;  %v396_v49 = vrot.slane %v394_v34, 5  ;;  %3733 = vmatprep.subr.msk.bf16.mxu0 %vm561_vm0, %v3962_v26 }
  0x33   : > { %v3076_v46 = vcombine.low %v379_v24, %v389_v39  ;;  %v1366_v37 = vor.u32 %v1365_v40, %v1361_v20  ;;  %v402_v51 = vrot.slane %v400_v43, 5  ;;  %v404_v53 = vshrl.u32 %v4062_v19, 16  ;;  %v4108_v39 = vld [vmem:[%s3932_s13 + $0x38] sm:$0x1] }
  0x34   : > { %v410_v54 = vshll.u32 %v4072_v29, 16  ;;  %v1362_v55 = vsel %vm3971_vm4, %v1357_v47, %v1361_v20  ;;  %v397_v56 = vor.u32 %v396_v49, %v393_v48  ;;  %v1374_v59 = vshrl.u32 %v3175_v45, 16 }
  0x35   : > { %3440 = vmatprep.mubr.msk.bf16.mxu1 %vm536_vm3, %v3076_v46  ;;  %v1377_v0 = vshll.u32 %v3175_v45, 16  ;;  %v1367_v2 = vrot.slane %v1366_v37, 4  ;;  %v406_v26 = vrot.slane %v404_v53, 4  ;;  %v1383_v5 = vshll.u32 %v4082_v50, 16  ;;  %v3207_v37 = vld [vmem:[%s3932_s13 + $0xc] sm:$0xe] }
  0x36   : > { %v412_v4 = vrot.slane %v410_v54, 5  ;;  %v398_v9 = vrot.slane %v397_v56, 4  ;;  %v1376_v10 = vrot.slane %v1374_v59, 4  ;;  %v1387_v13 = vshrl.u32 %v4082_v50, 16  ;;  %v4120_v56 = vld [vmem:[%s3932_s13 + $0x3c] sm:$0xf] }
  0x37   : > { %v1379_v12 = vrot.slane %v1377_v0, 5  ;;  %v1372_v18 = vsel %vm3971_vm4, %v1367_v2, %v1371_v42  ;;  %v407_v17 = vor.u32 %v406_v26, %v402_v51  ;;  %v1385_v20 = vrot.slane %v1383_v5, 5 }
  0x38   : > { %v1393_v22 = vshll.u32 %v4092_v58, 16  ;;  %v3193_v24 = vcombine.low %v1362_v55, %v1372_v18  ;;  %v403_v28 = vsel %vm3971_vm4, %v398_v9, %v402_v51  ;;  %v1389_v34 = vrot.slane %v1387_v13, 4  ;;  %v4134_v18 = vld [vmem:[%s3932_s13 + $0x44] sm:$0x1] }
  0x39   : > { %v1380_v30 = vor.u32 %v1379_v12, %v1376_v10  ;;  %v408_v40 = vrot.slane %v407_v17, 4  ;;  %v415_v42 = vshrl.u32 %v4097_v14, 16  ;;  %v418_v45 = vshll.u32 %v4097_v14, 16  ;;  %v3208_v17 = vld [vmem:[%s3932_s13 + $0x18] sm:$0xe] }
  0x3a   : > { %v1395_v43 = vrot.slane %v1393_v22, 5  ;;  %3512 = vmatprep.mubr.msk.bf16.mxu0 %vm536_vm3, %v3193_v24  ;;  %v1390_v47 = vor.u32 %v1389_v34, %v1385_v20  ;;  %v424_v48 = vshll.u32 %v4103_v23, 16  ;;  %v428_v49 = vshrl.u32 %v4103_v23, 16 }
  0x3b   : > { %v1381_v46 = vrot.slane %v1380_v30, 4  ;;  %v413_v51 = vsel %vm3971_vm4, %v408_v40, %v412_v4  ;;  %v417_v53 = vrot.slane %v415_v42, 4  ;;  %v420_v54 = vrot.slane %v418_v45, 5  ;;  %v4131_v4 = vld [vmem:[%s3932_s13 + $0x40] sm:$0xf] }
  0x3c   : > { %v434_v55 = vshll.u32 %v4108_v39, 16  ;;  %v3077_v59 = vcombine.low %v403_v28, %v413_v51  ;;  %v1391_v2 = vrot.slane %v1390_v47, 4  ;;  %v426_v26 = vrot.slane %v424_v48, 5  ;;  %v4145_v30 = vld [vmem:[%s3932_s13 + $0x48] sm:$0xf] }
  0x3d   : > { %v1386_v0 = vsel %vm3971_vm4, %v1381_v46, %v1385_v20  ;;  %v421_v9 = vor.u32 %v420_v54, %v417_v53  ;;  %v430_v10 = vrot.slane %v428_v49, 4  ;;  %v3215_v13 = vrot.slane %v3207_v37, 9 }
  0x3e   : > { %v436_v12 = vrot.slane %v434_v55, 5  ;;  %3441 = vmatmul.mubr.msk.bf16.gmra.mrb[4].mxu1 %vm536_vm3, %v3077_v59  ;;  %v1396_v20 = vsel %vm3971_vm4, %v1391_v2, %v1395_v43  ;;  %v1695_v22 = vrot.slane %v1693_v62, 4  ;;  %v439_v24 = vshrl.u32 %v4120_v56, 16  ;;  %v4165_v55 = vld [vmem:[%s3932_s13 + $0x50] sm:$0x1] }
  0x3f   : > { %v442_v28 = vshll.u32 %v4120_v56, 16  ;;  %v3194_v34 = vcombine.low %v1386_v0, %v1396_v20  ;;  %v422_v40 = vrot.slane %v421_v9, 4  ;;  %v431_v42 = vor.u32 %v430_v10, %v426_v26 }
  0x40   : > { %v1694_v45 = vsel %vm4126_vm7, %v3215_v13, %v1693_v62  ;;  %v1697_v43 = vsel %vm4126_vm7, %v1695_v22, %v1696_v63  ;;  %v441_v46 = vrot.slane %v439_v24, 4  ;;  %v448_v48 = vshll.u32 %v4131_v4, 16  ;;  %v4161_v62 = vld [vmem:[%s3932_s13 + $0x4c] sm:$0xf] }
  0x41   : > { %v444_v47 = vrot.slane %v442_v28, 5  ;;  %3513 = vmatmul.mubr.msk.bf16.gmra.mrb[4].mxu0 %vm536_vm3, %v3194_v34  ;;  %v427_v49 = vsel %vm3971_vm4, %v422_v40, %v426_v26  ;;  %v432_v37 = vrot.slane %v431_v42, 4  ;;  %v3224_v15 = vcombine.low %v1694_v45, %v1697_v43  ;;  %v4183_v28 = vld [vmem:[%s3932_s13 + $0x54] sm:$0xf]  ;;  %v4194_v34 = vld [vmem:[%s4885_s1 + $0x1c] sm:$0xf] }
  0x42   : > { %v452_v51 = vshrl.u32 %v4131_v4, 16  ;;  %v450_v53 = vrot.slane %v448_v48, 5  ;;  %v458_v63 = vshll.u32 %v4134_v18, 16  ;;  %v3216_v54 = vrot.slane %v3208_v17, 9 }
  0x43   : > { %v445_v16 = vor.u32 %v444_v47, %v441_v46  ;;  %v437_v59 = vsel %vm3971_vm4, %v432_v37, %v436_v12  ;;  %3526 = vmatprep.mubr.msk.bf16.mxu0 %vm536_vm3, %v3224_v15  ;;  %v1704_v2 = vsel %vm4126_vm7, %v4027_v35, %v1703_v33  ;;  %v463_v26 = vshrl.u32 %v4145_v30, 16  ;;  %v3209_v12 = vld [vmem:[%s3932_s13 + $0x24] sm:$0xe]  ;;  %v4199_v37 = vld [vmem:[%s3932_s13 + $0x58] sm:$0xf] }
  0x44   : > { %v454_v0 = vrot.slane %v452_v51, 4  ;;  %v3078_v9 = vcombine.low %v427_v49, %v437_v59  ;;  %v460_v13 = vrot.slane %v458_v63, 5  ;;  %v1701_v17 = vsel %vm4126_vm7, %v3216_v54, %v1700_v25  ;;  %v4208_v54 = vld [vmem:[%s3932_s13 + $0x5c] sm:$0x1] }
  0x45   : > { %v446_v10 = vrot.slane %v445_v16, 4  ;;  %v3225_v22 = vcombine.low %v1701_v17, %v1704_v2  ;;  %v465_v24 = vrot.slane %v463_v26, 4  ;;  %v466_v1 = vshll.u32 %v4145_v30, 16 }
  0x46   : > { %v455_v20 = vor.u32 %v454_v0, %v450_v53  ;;  %3444 = vmatprep.mubr.msk.bf16.mxu1 %vm536_vm3, %v3078_v9  ;;  %v472_v35 = vshll.u32 %v4161_v62, 16  ;;  %v476_v60 = vshrl.u32 %v4161_v62, 16  ;;  %v482_v25 = vshll.u32 %v4165_v55, 16 }
  0x47   : > { %v451_v33 = vsel %vm3971_vm4, %v446_v10, %v450_v53  ;;  %v468_v42 = vrot.slane %v466_v1, 5  ;;  %v3217_v45 = vrot.slane %v3209_v12, 9  ;;  %v1707_v43 = vrot.slane %v4040_v52, 5  ;;  %v3210_v10 = vld [vmem:[%s3932_s13 + $0x30] sm:$0xe] }
  0x48   : > { %v456_v40 = vrot.slane %v455_v20, 4  ;;  %v474_v46 = vrot.slane %v472_v35, 5  ;;  %v478_v47 = vrot.slane %v476_v60, 4  ;;  %v484_v48 = vrot.slane %v482_v25, 5 }
  0x49   : > { %v1710_v49 = vrot.slane %v4052_v61, 5  ;;  %3527 = vmatmul.mubr.msk.bf16.vlgmr.msra.gmra.mrb[0].mxu0 %vm536_vm3, %v3225_v22  ;;  %v469_v51 = vor.u32 %v468_v42, %v465_v24  ;;  %v1708_v16 = vsel %vm4126_vm7, %v3217_v45, %v1707_v43  ;;  %v1709_v53 = vrot.slane %v1707_v43, 4  ;;  %v4229_v42 = vld [vmem:[%s3932_s13 + $0x40] sm:$0xf]  ;;  %v4232_v45 = vld [vmem:[%s3932_s13 + $0x44] sm:$0x1] }
  0x4a   : > { %v461_v15 = vsel %vm3971_vm4, %v456_v40, %v460_v13  ;;  %3543 = vmatpush3.bf16.msra.mxu0 %v3983_v41  ;;  %v479_v52 = vor.u32 %v478_v47, %v474_v46  ;;  %v487_v61 = vshrl.u32 %v4183_v28, 16  ;;  %v490_v59 = vshll.u32 %v4183_v28, 16 }
  0x4b   : > { %v3079_v63 = vcombine.low %v451_v33, %v461_v15  ;;  %v470_v0 = vrot.slane %v469_v51, 4  ;;  %v1711_v2 = vsel %vm4126_vm7, %v1709_v53, %v1710_v49  ;;  %v496_v26 = vshll.u32 %v4199_v37, 16  ;;  %3734 = vmatprep.subr.msk.bf16.mxu0 %vm561_vm0, %v4194_v34  ;;  %v3211_v33 = vld [vmem:[%s3932_s13 + $0x3c] sm:$0xe] }
  0x4c   : > { %v500_v9 = vshrl.u32 %v4199_v37, 16  ;;  %v480_v41 = vrot.slane %v479_v52, 4  ;;  %v3226_v13 = vcombine.low %v1708_v16, %v1711_v2  ;;  %v489_v17 = vrot.slane %v487_v61, 4  ;;  %v3212_v2 = vld [vmem:[%s3932_s13 + $0x48] sm:$0xe] }
  0x4d   : > { %3445 = vmatmul.mubr.msk.bf16.gmra.mrb[8].mxu1 %vm536_vm3, %v3079_v63  ;;  %v492_v12 = vrot.slane %v490_v59, 5  ;;  %v475_v20 = vsel %vm3971_vm4, %v470_v0, %v474_v46  ;;  %v498_v22 = vrot.slane %v496_v26, 5  ;;  %v506_v1 = vshll.u32 %v4208_v54, 16  ;;  %v4247_v59 = vld [vmem:[%s3932_s13 + $0x4c] sm:$0xf] }
  0x4e   : > { %v502_v24 = vrot.slane %v500_v9, 4  ;;  %v485_v35 = vsel %vm3971_vm4, %v480_v41, %v484_v48  ;;  %3530 = vmatprep.mubr.msk.bf16.mxu0 %vm536_vm3, %v3226_v13  ;;  %v3218_v25 = vrot.slane %v3210_v10, 9  ;;  %v1714_v40 = vrot.slane %v4082_v50, 5  ;;  %v4250_v0 = vld [vmem:[%s3932_s13 + $0x50] sm:$0x1] }
  0x4f   : > { %v493_v60 = vor.u32 %v492_v12, %v489_v17  ;;  %v3080_v43 = vcombine.low %v475_v20, %v485_v35  ;;  %v508_v47 = vrot.slane %v506_v1, 5  ;;  %v1717_v49 = vrot.slane %v4092_v58, 5  ;;  %v4258_v17 = vld [vmem:[%s3932_s13 + $0x58] sm:$0xf]  ;;  %v4261_v12 = vld [vmem:[%s3932_s13 + $0x5c] sm:$0x1] }
  0x50   : > { %v503_v46 = vor.u32 %v502_v24, %v498_v22  ;;  %v1715_v48 = vsel %vm4126_vm7, %v3218_v25, %v1714_v40  ;;  %v1716_v51 = vrot.slane %v1714_v40, 4  ;;  %v3219_v16 = vrot.slane %v3211_v33, 9  ;;  %4899 = vst [vmem:[#allocation2_spill] sm:$0xff] %v4261_v12  ;;  %v4271_v35 = vld [vmem:[%s3932_s13 + $0x64] sm:$0xf] }
  0x51   : > { %v494_v15 = vrot.slane %v493_v60, 4  ;;  %3448 = vmatprep.mubr.msk.bf16.mxu1 %vm536_vm3, %v3080_v43  ;;  %v1721_v53 = vrot.slane %v4229_v42, 5  ;;  %v1724_v63 = vrot.slane %v4232_v45, 5  ;;  %v3090_v61 = vcombine.low %v3935_v6, %v3938_v7  ;;  %v3213_v6 = vld [vmem:[%s3932_s13 + $0x54] sm:$0xe]  ;;  %4900 = vst [vmem:[#allocation3_spill] sm:$0xff] %v4271_v35 }
  0x52   : > { %v504_v50 = vrot.slane %v503_v46, 4  ;;  %v1718_v58 = vsel %vm4126_vm7, %v1716_v51, %v1717_v49  ;;  %v1728_v24 = vrot.slane %v4247_v59, 5  ;;  %v1731_v1 = vrot.slane %v4250_v0, 5  ;;  %v4274_v60 = vld [vmem:[%s3932_s13 + $0x68] sm:$0x1] }
  0x53   : > { %v499_v52 = vsel %vm3971_vm4, %v494_v15, %v498_v22  ;;  %v3227_v9 = vcombine.low %v1715_v48, %v1718_v58  ;;  %v1722_v10 = vsel %vm4126_vm7, %v3219_v16, %v1721_v53  ;;  %v1723_v41 = vrot.slane %v1721_v53, 4  ;;  %4901 = vst [vmem:[#allocation4_spill] sm:$0xff] %v4274_v60 }
  0x54   : > { %v509_v26 = vsel %vm3971_vm4, %v504_v50, %v508_v47  ;;  %v3220_v22 = vrot.slane %v3212_v2, 9  ;;  %v1730_v40 = vrot.slane %v1728_v24, 4  ;;  %v3221_v43 = vrot.slane %v3213_v6, 9  ;;  %v3214_v47 = vld [vmem:[%s3932_s13 + $0x60] sm:$0xe] }
  0x55   : > { %v3081_v13 = vcombine.low %v499_v52, %v509_v26  ;;  %3531 = vmatmul.mubr.msk.bf16.gmra.mrb[4].mxu0 %vm536_vm3, %v3227_v9  ;;  %v1725_v20 = vsel %vm4126_vm7, %v1723_v41, %v1724_v63  ;;  %v1735_v46 = vrot.slane %v4258_v17, 5  ;;  %v862_v49 = vrot.slane %v3976_v36, 5  ;;  %v828_v2 = vld [vmem:[%s3932_s13 + $0x18] sm:$0xe]  ;;  %v4306_v6 = vld [vmem:[%s4885_s1 + $0xc] sm:$0xf] }
  0x56   : > { %v3228_v33 = vcombine.low %v1722_v10, %v1725_v20  ;;  %v1729_v25 = vsel %vm4126_vm7, %v3220_v22, %v1728_v24  ;;  %v1738_v15 = vrot.slane %v4261_v12, 5  ;;  %v1732_v48 = vsel %vm4126_vm7, %v1730_v40, %v1731_v1  ;;  %v830_v1 = vld [vmem:[%s3932_s13 + $0x30] sm:$0xe] }
  0x57   : > { %3449 = vmatmul.mubr.msk.bf16.gmra.mrb[12].mxu1 %vm536_vm3, %v3081_v13  ;;  %v1736_v51 = vsel %vm4126_vm7, %v3221_v43, %v1735_v46  ;;  %v1737_v16 = vrot.slane %v1735_v46, 4  ;;  %v1742_v50 = vrot.slane %v4271_v35, 5  ;;  %v3091_v53 = vcombine.low %v3967_v31, %v3976_v36  ;;  %v829_v36 = vld [vmem:[%s3932_s13 + $0x24] sm:$0xe]  ;;  %v4580_v12 = vld [vmem:[%s3932_s13 + $0x70] sm:$0xf] }
  0x58   : > { %3454 = vmatprep.mubr.msk.bf16.mxu1 %vm536_vm3, %v3090_v61  ;;  %3534 = vmatprep.mubr.msk.bf16.mxu0 %vm536_vm3, %v3228_v33  ;;  %v3229_v63 = vcombine.low %v1729_v25, %v1732_v48  ;;  %v3222_v52 = vrot.slane %v3214_v47, 9  ;;  %v1745_v58 = vrot.slane %v4274_v60, 5  ;;  %v827_v61 = vld [vmem:[%s3932_s13 + $0xc] sm:$0xe]  ;;  %v865_v26 = vrot.slane %v3986_v44, 5 }
  0x59   : > { %v3092_v9 = vcombine.low %v4015_v21, %v4022_v27  ;;  %v1739_v10 = vsel %vm4126_vm7, %v1737_v16, %v1738_v15  ;;  %v1744_v41 = vrot.slane %v1742_v50, 4  ;;  %v960_v13 = vsel %vm561_vm0, %v4046_v57, 0  ;;  %v3782_v16 = vld [vmem:[%s3932_s13 + $0x18] sm:$0xff]   ;;  %v4552_v60 = vld [vmem:[%s3932_s13 + $0x64] sm:$0xf] }
  0x5a   : > { %v3230_v31 = vcombine.low %v1736_v51, %v1739_v10  ;;  %v3107_v44 = vrot.slane %v827_v61, 9  ;;  %v864_v20 = vrot.slane %v862_v49, 4  ;;  %v3108_v21 = vrot.slane %v828_v2, 9  ;;  %4902 = vst [vmem:[#allocation5_spill] sm:$0xff] %v4552_v60 }
  0x5b   : > { %v1743_v22 = vsel %vm4126_vm7, %v3222_v52, %v1742_v50  ;;  %v1746_v57 = vsel %vm4126_vm7, %v1744_v41, %v1745_v58  ;;  %v869_v24 = vrot.slane %v4022_v27, 5  ;;  %v872_v40 = vrot.slane %v4030_v38, 5 }
  0x5c   : > { %v4319_v33 = vsel %vm4126_vm7, %v3107_v44, %v862_v49  ;;  %v4323_v25 = vsel %vm4126_vm7, %v864_v20, %v865_v26  ;;  %v3109_v43 = vrot.slane %v829_v36, 9  ;;  %v3231_v49 = vcombine.low %v1743_v22, %v1746_v57  ;;  %v3275_v26 = vld [vmem:[%s3932_s13 + $0x18] sm:$0xf]  ;;  %v3784_v57 = vld [vmem:[%s3932_s13 + $0x24] sm:$0xff]  }
  0x5d   : > { %3535 = vmatmul.mubr.msk.bf16.gmra.mrb[8].mxu0 %vm536_vm3, %v3229_v63  ;;  %v3116_v27 = vcombine.low %v4319_v33, %v4323_v25  ;;  %v4332_v46 = vsel %vm4126_vm7, %v3108_v21, %v869_v24  ;;  %v871_v47 = vrot.slane %v869_v24, 4  ;;  %v876_v15 = vrot.slane %v4062_v19, 5 }
  0x5e   : > { %3538 = vmatprep.mubr.msk.bf16.mxu0 %vm536_vm3, %v3230_v31  ;;  %v879_v48 = vrot.slane %v4072_v29, 5  ;;  %v3110_v38 = vrot.slane %v830_v1, 9  ;;  %v3093_v51 = vcombine.low %v4059_v11, %v4062_v19  ;;  %v886_v63 = vrot.slane %v4108_v39, 5  ;;  %v831_v19 = vld [vmem:[%s3932_s13 + $0x3c] sm:$0xe] }
  0x5f   : > { %3455 = vmatmul.mubr.msk.bf16.vlgmr.msra.gmra.mrb[0].mxu1 %vm536_vm3, %v3091_v53  ;;  %v4341_v50 = vsel %vm4126_vm7, %v871_v47, %v872_v40  ;;  %v883_v53 = vrot.slane %v4103_v23, 5  ;;  %v3094_v52 = vcombine.low %v4097_v14, %v4103_v23  ;;  %v4351_v58 = vsel %vm4126_vm7, %v3109_v43, %v876_v15  ;;  %v826_v14 = vld [vmem:[%s3932_s13] sm:$0xe]  ;;  %v4379_v31 = vld [vmem:[%s3932_s13 + $0x1c] sm:$0xf] }
  0x60   : > { %3471 = vmatpush3.bf16.msra.mxu1 %v960_v13  ;;  %3458 = vmatprep.mubr.msk.bf16.mxu1 %vm536_vm3, %v3092_v9  ;;  %v3117_v29 = vcombine.low %v4332_v46, %v4341_v50  ;;  %v878_v11 = vrot.slane %v876_v15, 4  ;;  %v855_v61 = vrot.slane %v3938_v7, 5  ;;  %v3111_v10 = vrot.slane %v831_v19, 9  ;;  %v832_v1 = vld [vmem:[%s3932_s13 + $0x48] sm:$0xe] }
  0x61   : > { %3729 = vmatprep.subr.msk.bf16.mxu1 %vm561_vm0, %v4306_v6  ;;  %v4357_v2 = vsel %vm4126_vm7, %v3110_v38, %v883_v53  ;;  %v885_v39 = vrot.slane %v883_v53, 4  ;;  %v858_v41 = vrot.slane %v3941_v8, 5  ;;  %v3106_v36 = vrot.slane %v826_v14, 9  ;;  %v4405_v38 = vld [vmem:[%s4885_s1 + $0x20] sm:$0xf] }
  0x62   : > { %v4363_v23 = vsel %vm4126_vm7, %v878_v11, %v879_v48  ;;  %v857_v44 = vrot.slane %v855_v61, 4  ;;  %v890_v20 = vrot.slane %v4131_v4, 5  ;;  %v893_v21 = vrot.slane %v4134_v18, 5  ;;  %v4426_v14 = vld [vmem:[%s3932_s13 + $0x28] sm:$0xf] }
  0x63   : > { %v4372_v9 = vsel %vm4126_vm7, %v885_v39, %v886_v63  ;;  %v3095_v22 = vcombine.low %v4120_v56, %v4131_v4  ;;  %v2140_v24 = vshrl.u32 %v3275_v26, 16  ;;  %v2143_v8 = vshll.u32 %v3275_v26, 16  ;;  %v3786_v4 = vld [vmem:[%s3932_s13 + $0x30] sm:$0xff]   ;;  %v4528_v46 = vld [vmem:[%s3932_s13 + $0x44] sm:$0x1] }
  0x64   : > { %v2149_v40 = vshll.u32 %v4379_v31, 16  ;;  %v2153_v43 = vshrl.u32 %v4379_v31, 16  ;;  %v4391_v47 = vsel %vm4126_vm7, %v3111_v10, %v890_v20  ;;  %v2382_v18 = vsel %vm561_vm0, %v4194_v34, 0  ;;  %v3293_v7 = vld [vmem:[%s3932_s13 + $0x60] sm:$0xf] }
  0x65   : > { %3539 = vmatmul.mubr.msk.bf16.gmra.mrb[12].mxu0 %vm536_vm3, %v3231_v49  ;;  %v892_v49 = vrot.slane %v890_v20, 4  ;;  %v3096_v56 = vcombine.low %v4145_v30, %v4161_v62  ;;  %v856_v15 = vsel %vm4126_vm7, %v3106_v36, %v855_v61  ;;  %v859_v48 = vsel %vm4126_vm7, %v857_v44, %v858_v41  ;;  %v4413_v30 = vld [vmem:[%s3932_s13 + $0x20] sm:$0x1]  ;;  %v3278_v61 = vld [vmem:[%s3932_s13 + $0x24] sm:$0xf] }
  0x66   : > { %3544 = vmatprep.mubr.msk.bf16.mxu0 %vm536_vm3, %v3782_v16  ;;  %v3112_v34 = vrot.slane %v832_v1, 9  ;;  %v2142_v16 = vrot.slane %v2140_v24, 4  ;;  %v2145_v53 = vrot.slane %v2143_v8, 5  ;;  %v4419_v11 = vrot.slane %v2149_v40, 5  ;;  %v833_v44 = vld [vmem:[%s3932_s13 + $0x54] sm:$0xe] }
  0x67   : > { %3459 = vmatmul.mubr.msk.bf16.gmra.mrb[4].mxu1 %vm536_vm3, %v3093_v51  ;;  %v4409_v51 = vsel %vm4126_vm7, %v892_v49, %v893_v21  ;;  %v2155_v19 = vrot.slane %v2153_v43, 4  ;;  %v900_v39 = vrot.slane %v4165_v55, 5  ;;  %v3097_v10 = vcombine.low %v4183_v28, %v4199_v37  ;;  %v3281_v55 = vld [vmem:[%s3932_s13 + $0x30] sm:$0xf]  ;;  %v3788_v20 = vld [vmem:[%s3932_s13 + $0x3c] sm:$0xff]   ;;  %v3789_v1 = vld [vmem:[%s3932_s13 + $0x48] sm:$0xff]  }
  0x68   : > { %3462 = vmatprep.mubr.msk.bf16.mxu1 %vm536_vm3, %v3094_v52  ;;  %v897_v52 = vrot.slane %v4161_v62, 5  ;;  %v3115_v41 = vcombine.low %v856_v15, %v859_v48  ;;  %v2159_v36 = vshll.u32 %v4413_v30, 16  ;;  %v2146_v21 = vor.u32 %v2145_v53, %v2142_v16  ;;  %v4445_v8 = vld [vmem:[%s3932_s13 + $0x34] sm:$0xf] }
  0x69   : > { %v2156_v28 = vor.u32 %v2155_v19, %v4419_v11  ;;  %v2173_v40 = vshll.u32 %v4426_v14, 16  ;;  %v2177_v43 = vshrl.u32 %v4426_v14, 16  ;;  %v904_v15 = vrot.slane %v4199_v37, 5 }
  0x6a   : > { %v4430_v62 = vsel %vm4126_vm7, %v3112_v34, %v897_v52  ;;  %v899_v26 = vrot.slane %v897_v52, 4  ;;  %v2197_v48 = vshll.u32 %v4445_v8, 16  ;;  %v2201_v34 = vshrl.u32 %v4445_v8, 16 }
  0x6b   : > { %v907_v16 = vrot.slane %v4208_v54, 5  ;;  %v2147_v53 = vrot.slane %v2146_v21, 4  ;;  %v2161_v52 = vrot.slane %v2159_v36, 5  ;;  %v2157_v37 = vrot.slane %v2156_v28, 4  ;;  %v4468_v36 = vld [vmem:[%s3932_s13 + $0x2c] sm:$0x1] }
  0x6c   : > { %v4442_v24 = vsel %vm4126_vm7, %v899_v26, %v900_v39  ;;  %v4464_v26 = vrot.slane %v2173_v40, 5  ;;  %v4475_v21 = vld [vmem:[%s3932_s13 + $0x38] sm:$0x1]  ;;  %v1162_v28 = vsel %vm561_vm0, %v4306_v6, 0 }
  0x6d   : > { %3545 = vmatmul.mubr.msk.bf16.vlgmr.msra.gmra.mrb[0].mxu0 %vm536_vm3, %v3784_v57  ;;  %v2167_v57 = vshll.u32 %v3278_v61, 16  ;;  %v3790_v40 = vld [vmem:[%s3932_s13 + $0x54] sm:$0xff]  }
  0x6e   : > { %3561 = vmatpush3.bf16.msra.mxu0 %v2382_v18  ;;  %3548 = vmatprep.mubr.msk.bf16.mxu0 %vm536_vm3, %v3786_v4  ;;  %v2188_v18 = vshrl.u32 %v3281_v55, 16  ;;  %v3113_v4 = vrot.slane %v833_v44, 9 }
  0x6f   : > { %3463 = vmatmul.mubr.msk.bf16.gmra.mrb[8].mxu1 %vm536_vm3, %v3095_v22  ;;  %3735 = vmatprep.subr.msk.bf16.mxu0 %vm561_vm0, %v4405_v38  ;;  %v2164_v22 = vshrl.u32 %v3278_v61, 16  ;;  %v906_v61 = vrot.slane %v904_v15, 4  ;;  %v2169_v54 = vrot.slane %v2167_v57, 5  ;;  %v2203_v57 = vrot.slane %v2201_v34, 4  ;;  %v3287_v34 = vld [vmem:[%s3932_s13 + $0x48] sm:$0xf] }
  0x70   : > { %3466 = vmatprep.mubr.msk.bf16.mxu1 %vm536_vm3, %v3096_v56  ;;  %v2191_v56 = vshll.u32 %v3281_v55, 16  ;;  %v4460_v19 = vsel %vm4126_vm7, %v3113_v4, %v904_v15  ;;  %v2179_v55 = vrot.slane %v2177_v43, 4  ;;  %v2190_v44 = vrot.slane %v2188_v18, 4  ;;  %v4486_v43 = vld [vmem:[%s3932_s13 + $0x40] sm:$0xf] }
  0x71   : > { %v2166_v39 = vrot.slane %v2164_v22, 4  ;;  %v4477_v22 = vrot.slane %v2197_v48, 5  ;;  %v3791_v18 = vld [vmem:[%s3932_s13 + $0x60] sm:$0xff]   ;;  %v2162_v4 = vsel %vm3971_vm4, %v2157_v37, %v2161_v52  ;;  %v2183_v48 = vshll.u32 %v4468_v36, 16 }
  0x72   : > { %v2236_v52 = vshrl.u32 %v3287_v34, 16  ;;  %v2239_v37 = vshll.u32 %v3287_v34, 16 }
  0x73   : > { %v2170_v15 = vor.u32 %v2169_v54, %v2166_v39  ;;  %v2204_v63 = vor.u32 %v2203_v57, %v4477_v22  ;;  %v3290_v57 = vld [vmem:[%s3932_s13 + $0x54] sm:$0xf] }
  0x74   : > { %v2238_v50 = vrot.slane %v2236_v52, 4  ;;  %v2263_v34 = vshll.u32 %v3290_v57, 16 }
  0x75   : > { %3549 = vmatmul.mubr.msk.bf16.gmra.mrb[4].mxu0 %vm536_vm3, %v3788_v20  ;;  %v2193_v20 = vrot.slane %v2191_v56, 5  ;;  %v2152_v56 = vsel %vm3971_vm4, %v2147_v53, %v4419_v11  ;;  %v2221_v11 = vshll.u32 %v4486_v43, 16  ;;  %v2225_v53 = vshrl.u32 %v4486_v43, 16 }
  0x76   : > { %3552 = vmatprep.mubr.msk.bf16.mxu0 %vm536_vm3, %v3789_v1  ;;  %v2207_v1 = vshll.u32 %v4475_v21, 16  ;;  %v3300_v54 = vcombine.low %v2152_v56, %v2162_v4  ;;  %v2205_v56 = vrot.slane %v2204_v63, 4  ;;  %v4533_v63 = vld [vmem:[%s3932_s13 + $0x50] sm:$0x1] }
  0x77   : > { %3467 = vmatmul.mubr.msk.bf16.gmra.mrb[12].mxu1 %vm536_vm3, %v3097_v10  ;;  %v4472_v10 = vsel %vm4126_vm7, %v906_v61, %v907_v16  ;;  %v4497_v16 = vld [vmem:[%s3932_s13 + $0x4c] sm:$0xf]  ;;  %v2180_v61 = vor.u32 %v2179_v55, %v4464_v26  ;;  %v2194_v6 = vor.u32 %v2193_v20, %v2190_v44  ;;  %v2171_v55 = vrot.slane %v2170_v15, 4 }
  0x78   : > { %3472 = vmatprep.mubr.msk.bf16.mxu1 %vm536_vm3, %v3115_v41  ;;  %v3284_v41 = vld [vmem:[%s3932_s13 + $0x3c] sm:$0xf]  ;;  %v2245_v39 = vshll.u32 %v4497_v16, 16  ;;  %v2185_v44 = vrot.slane %v2183_v48, 5  ;;  %v2249_v20 = vshrl.u32 %v4497_v16, 16  ;;  %v2209_v33 = vrot.slane %v2207_v1, 5 }
  0x79   : > { %v2212_v49 = vshrl.u32 %v3284_v41, 16  ;;  %v2215_v13 = vshll.u32 %v3284_v41, 16  ;;  %v2181_v41 = vrot.slane %v2180_v61, 4  ;;  %v4521_v15 = vrot.slane %v2221_v11, 5 }
  0x7a   : > { %v2227_v48 = vrot.slane %v2225_v53, 4  ;;  %v2260_v1 = vshrl.u32 %v3290_v57, 16  ;;  %v1431_v11 = vshll.u32 %v4247_v59, 16  ;;  %v2176_v53 = vsel %vm3971_vm4, %v2171_v55, %v4464_v26 }
  0x7b   : > { %v2214_v25 = vrot.slane %v2212_v49, 4  ;;  %v2217_v4 = vrot.slane %v2215_v13, 5  ;;  %v4530_v49 = vrot.slane %v2245_v39, 5  ;;  %v2251_v13 = vrot.slane %v2249_v20, 4 }
  0x7c   : > { %v2186_v52 = vsel %vm3971_vm4, %v2181_v41, %v2185_v44  ;;  %v2228_v57 = vor.u32 %v2227_v48, %v4521_v15  ;;  %v2210_v26 = vsel %vm3971_vm4, %v2205_v56, %v2209_v33  ;;  %v2262_v44 = vrot.slane %v2260_v1, 4  ;;  %v4571_v56 = vld [vmem:[%s3932_s13 + $0x5c] sm:$0x1] }
  0x7d   : > { %3553 = vmatmul.mubr.msk.bf16.gmra.mrb[8].mxu0 %vm536_vm3, %v3790_v40  ;;  %v2195_v40 = vrot.slane %v2194_v6, 4  ;;  %v2218_v20 = vor.u32 %v2217_v4, %v2214_v25  ;;  %v2252_v41 = vor.u32 %v2251_v13, %v4530_v49  ;;  %v4904_v33 = vcombine.low %v4357_v2, %v4372_v9 }
  0x7e   : > { %3556 = vmatprep.mubr.msk.bf16.mxu0 %vm536_vm3, %v3791_v18  ;;  %v3792_v18 = vld [vmem:[%s3932_s13 + $0x6c] sm:$0xff]   ;;  %v2284_v4 = vshrl.u32 %v3293_v7, 16  ;;  %v1435_v48 = vshrl.u32 %v4247_v59, 16  ;;  %v3301_v13 = vcombine.low %v2176_v53, %v2186_v52 }
  0x7f   : > { %3473 = vmatmul.mubr.msk.bf16.vlgmr.msra.gmra.mrb[0].mxu1 %vm536_vm3, %v3116_v27  ;;  %v4518_v27 = vld [vmem:[%s3932_s13 + $0x58] sm:$0xf]  ;;  %v2200_v39 = vsel %vm3971_vm4, %v2195_v40, %v4477_v22  ;;  %v4903_v22 = vcombine.low %v4351_v58, %v4363_v23  ;;  %v2265_v40 = vrot.slane %v2263_v34, 5  ;;  %v2287_v58 = vshll.u32 %v3293_v7, 16 }
  0x80   : > { %3489 = vmatpush3.bf16.msra.mxu1 %v1162_v28  ;;  %3476 = vmatprep.mubr.msk.bf16.mxu1 %vm536_vm3, %v3117_v29  ;;  %v3801_v28 = vld [vmem:[%s4885_s1 + $0x10] sm:$0xf]  ;;  %v2241_v29 = vrot.slane %v2239_v37, 5  ;;  %v2269_v61 = vshll.u32 %v4518_v27, 16  ;;  %v2273_v6 = vshrl.u32 %v4518_v27, 16  ;;  %v2636_v37 = vsel %vm561_vm0, %v4405_v38, 0 }
  0x81   : > { %3731 = vmatprep.subr.msk.bf16.mxu1 %vm561_vm0, %v3801_v28  ;;  %v2231_v28 = vshll.u32 %v4528_v46, 16  ;;  %v2255_v38 = vshll.u32 %v4533_v63, 16  ;;  %v2293_v23 = vshll.u32 %v4552_v60, 16  ;;  %v3302_v34 = vcombine.low %v2200_v39, %v2210_v26 }
  0x82   : > { %v2242_v55 = vor.u32 %v2241_v29, %v2238_v50  ;;  %v4564_v25 = vrot.slane %v2269_v61, 5  ;;  %v2219_v50 = vrot.slane %v2218_v20, 4  ;;  %v2229_v29 = vrot.slane %v2228_v57, 4 }
  0x83   : > { %v2233_v1 = vrot.slane %v2231_v28, 5  ;;  %v2257_v9 = vrot.slane %v2255_v38, 5  ;;  %v2253_v61 = vrot.slane %v2252_v41, 4  ;;  %v2279_v7 = vshll.u32 %v4571_v56, 16  ;;  %v4592_v28 = vld [vmem:[%s3932_s13 + $0x68] sm:$0x1] }
  0x84   : > { %v2243_v2 = vrot.slane %v2242_v55, 4  ;;  %v2286_v35 = vrot.slane %v2284_v4, 4  ;;  %v4582_v59 = vrot.slane %v2293_v23, 5  ;;  %v4584_v57 = vrot.slane %v1431_v11, 5 }
  0x85   : > { %3557 = vmatmul.mubr.msk.bf16.gmra.mrb[12].mxu0 %vm536_vm3, %v3792_v18  ;;  %v2275_v18 = vrot.slane %v2273_v6, 4  ;;  %v2266_v6 = vor.u32 %v2265_v40, %v2262_v44  ;;  %v1437_v53 = vrot.slane %v1435_v48, 4  ;;  %v2224_v52 = vsel %vm3971_vm4, %v2219_v50, %v4521_v15 }
  0x86   : > { %3562 = vmatprep.mubr.msk.bf16.mxu0 %vm536_vm3, %v3300_v54  ;;  %v2297_v54 = vshrl.u32 %v4552_v60, 16  ;;  %v2289_v60 = vrot.slane %v2287_v58, 5  ;;  %v2234_v39 = vsel %vm3971_vm4, %v2229_v29, %v2233_v1  ;;  %v2317_v38 = vshll.u32 %v4580_v12, 16  ;;  %v3793_v1 = vld [vmem:[%s3932_s13 + $0xc] sm:$0xff]  }
  0x87   : > { %3477 = vmatmul.mubr.msk.bf16.gmra.mrb[4].mxu1 %vm536_vm3, %v4903_v22  ;;  %v2276_v22 = vor.u32 %v2275_v18, %v4564_v25  ;;  %v2321_v44 = vshrl.u32 %v4580_v12, 16  ;;  %v4905_v11 = vcombine.low %v4391_v47, %v4409_v51  ;;  %v2248_v15 = vsel %vm3971_vm4, %v2243_v2, %v4530_v49 }
  0x88   : > { %3480 = vmatprep.mubr.msk.bf16.mxu1 %vm536_vm3, %v4904_v33  ;;  %v3296_v33 = vld [vmem:[%s3932_s13 + $0x6c] sm:$0xf]  ;;  %v2299_v20 = vrot.slane %v2297_v54, 4  ;;  %v2258_v41 = vsel %vm3971_vm4, %v2253_v61, %v2257_v9  ;;  %v2267_v40 = vrot.slane %v2266_v6, 4  ;;  %v2281_v18 = vrot.slane %v2279_v7, 5 }
  0x89   : > { %v2308_v26 = vshrl.u32 %v3296_v33, 16  ;;  %v2311_v55 = vshll.u32 %v3296_v33, 16  ;;  %v4906_v4 = vcombine.low %v4430_v62, %v4442_v24  ;;  %v2277_v47 = vrot.slane %v2276_v22, 4  ;;  %v3181_v22 = vld [vmem:[%s3932_s13 + $0x48] sm:$0xf] }
  0x8a   : > { %v2290_v51 = vor.u32 %v2289_v60, %v2286_v35  ;;  %v2303_v49 = vshll.u32 %v4592_v28, 16  ;;  %v1438_v58 = vor.u32 %v1437_v53, %v4584_v57  ;;  %v1441_v23 = vshll.u32 %v4250_v0, 16  ;;  %v4621_v60 = vld [vmem:[%s3932_s13 + $0x74] sm:$0x1] }
  0x8b   : > { %v3303_v54 = vcombine.low %v2224_v52, %v2234_v39  ;;  %v2310_v48 = vrot.slane %v2308_v26, 4  ;;  %v2313_v62 = vrot.slane %v2311_v55, 5  ;;  %v4615_v24 = vrot.slane %v2317_v38, 5 }
  0x8c   : > { %v2323_v50 = vrot.slane %v2321_v44, 4  ;;  %v3304_v29 = vcombine.low %v2248_v15, %v2258_v41  ;;  %v2272_v35 = vsel %vm3971_vm4, %v2267_v40, %v4564_v25  ;;  %v2291_v0 = vrot.slane %v2290_v51, 4  ;;  %v3795_v51 = vld [vmem:[%s3932_s13 + $0x24] sm:$0xff]  }
  0x8d   : > { %3563 = vmatmul.mubr.msk.bf16.vlgmr.msra.gmra.mrb[0].mxu0 %vm536_vm3, %v3301_v13  ;;  %v2282_v13 = vsel %vm3971_vm4, %v2277_v47, %v2281_v18  ;;  %v2305_v2 = vrot.slane %v2303_v49, 5  ;;  %v1439_v9 = vrot.slane %v1438_v58, 4  ;;  %v1443_v61 = vrot.slane %v1441_v23, 5 }
  0x8e   : > { %3579 = vmatpush3.bf16.msra.mxu0 %v2636_v37  ;;  %3566 = vmatprep.mubr.msk.bf16.mxu0 %vm536_vm3, %v3302_v34  ;;  %v2300_v37 = vor.u32 %v2299_v20, %v4582_v59  ;;  %v2531_v6 = vrot.slane %v4379_v31, 5  ;;  %v2314_v7 = vor.u32 %v2313_v62, %v2310_v48  ;;  %v2324_v33 = vor.u32 %v2323_v50, %v4615_v24  ;;  %v3316_v20 = vld [vmem:[%s3932_s13 + $0x18] sm:$0xe]  ;;  %v3318_v62 = vld [vmem:[%s3932_s13 + $0x30] sm:$0xe] }
  0x8f   : > { %3481 = vmatmul.mubr.msk.bf16.gmra.mrb[8].mxu1 %vm536_vm3, %v4905_v11  ;;  %v2327_v25 = vshll.u32 %v4621_v60, 16  ;;  %v4907_v53 = vcombine.low %v4460_v19, %v4472_v10  ;;  %v3305_v52 = vcombine.low %v2272_v35, %v2282_v13  ;;  %v2296_v31 = vsel %vm3971_vm4, %v2291_v0, %v4582_v59  ;;  %v3794_v59 = vld [vmem:[%s3932_s13 + $0x18] sm:$0xff]  }
  0x90   : > { %3484 = vmatprep.mubr.msk.bf16.mxu1 %vm536_vm3, %v4906_v4  ;;  %v2301_v34 = vrot.slane %v2300_v37, 4  ;;  %v1422_v26 = vshrl.u32 %v3181_v22, 16  ;;  %v1425_v55 = vshll.u32 %v3181_v22, 16  ;;  %v3324_v19 = vrot.slane %v3316_v20, 9  ;;  %v3178_v4 = vld [vmem:[%s3932_s13 + $0x3c] sm:$0xf] }
  0x91   : > { %v2533_v10 = vrot.slane %v2531_v6, 4  ;;  %v2534_v38 = vrot.slane %v4413_v30, 5  ;;  %v1444_v44 = vsel %vm3971_vm4, %v1439_v9, %v1443_v61  ;;  %v2315_v11 = vrot.slane %v2314_v7, 4  ;;  %v3317_v30 = vld [vmem:[%s3932_s13 + $0x24] sm:$0xe]  ;;  %v3796_v22 = vld [vmem:[%s3932_s13 + $0x30] sm:$0xff]  }
  0x92   : > { %v2306_v39 = vsel %vm3971_vm4, %v2301_v34, %v2305_v2  ;;  %v2325_v15 = vrot.slane %v2324_v33, 4  ;;  %v2329_v41 = vrot.slane %v2327_v25, 5  ;;  %v1424_v40 = vrot.slane %v1422_v26, 4  ;;  %v3797_v20 = vld [vmem:[%s3932_s13 + $0x3c] sm:$0xff]   ;;  %v3184_v26 = vld [vmem:[%s3932_s13 + $0x54] sm:$0xf] }
  0x93   : > { %v3306_v18 = vcombine.low %v2296_v31, %v2306_v39  ;;  %v1427_v47 = vrot.slane %v1425_v55, 5  ;;  %v2532_v37 = vsel %vm4126_vm7, %v3324_v19, %v2531_v6  ;;  %v2535_v49 = vsel %vm4126_vm7, %v2533_v10, %v2534_v38  ;;  %v3320_v38 = vld [vmem:[%s3932_s13 + $0x48] sm:$0xe] }
  0x94   : > { %v2538_v58 = vrot.slane %v4426_v14, 5  ;;  %v2330_v48 = vsel %vm3971_vm4, %v2325_v15, %v2329_v41  ;;  %v2545_v50 = vrot.slane %v4445_v8, 5  ;;  %v1401_v35 = vshll.u32 %v3178_v4, 16 }
  0x95   : > { %3567 = vmatmul.mubr.msk.bf16.gmra.mrb[4].mxu0 %vm536_vm3, %v3303_v54  ;;  %v1428_v23 = vor.u32 %v1427_v47, %v1424_v40  ;;  %v2320_v54 = vsel %vm3971_vm4, %v2315_v11, %v4615_v24  ;;  %v1407_v14 = vshll.u32 %v4229_v42, 16  ;;  %v3325_v24 = vrot.slane %v3317_v30, 9 }
  0x96   : > { %3570 = vmatprep.mubr.msk.bf16.mxu0 %vm536_vm3, %v3304_v29  ;;  %v1398_v29 = vshrl.u32 %v3178_v4, 16  ;;  %v2541_v8 = vrot.slane %v4468_v36, 5  ;;  %v3333_v0 = vcombine.low %v2532_v37, %v2535_v49  ;;  %v2540_v34 = vrot.slane %v2538_v58, 4  ;;  %v3798_v37 = vld [vmem:[%s3932_s13 + $0x48] sm:$0xff]  }
  0x97   : > { %3485 = vmatmul.mubr.msk.bf16.gmra.mrb[12].mxu1 %vm536_vm3, %v4907_v53  ;;  %v1429_v13 = vrot.slane %v1428_v23, 4  ;;  %v3326_v2 = vrot.slane %v3318_v62, 9  ;;  %v3307_v61 = vcombine.low %v2320_v54, %v2330_v48  ;;  %v2547_v6 = vrot.slane %v2545_v50, 4  ;;  %v3799_v23 = vld [vmem:[%s3932_s13 + $0x54] sm:$0xff]  }
  0x98   : > { %3490 = vmatprep.mubr.msk.bf16.mxu1 %vm536_vm3, %v3793_v1  ;;  %v1411_v1 = vshrl.u32 %v4229_v42, 16  ;;  %v2548_v42 = vrot.slane %v4475_v21, 5  ;;  %v1400_v7 = vrot.slane %v1398_v29, 4  ;;  %v1403_v33 = vrot.slane %v1401_v35, 5 }
  0x99   : > { %v1434_v9 = vsel %vm3971_vm4, %v1429_v13, %v4584_v57  ;;  %v4677_v25 = vrot.slane %v1407_v14, 5  ;;  %v2539_v53 = vsel %vm4126_vm7, %v3325_v24, %v2538_v58  ;;  %v2542_v57 = vsel %vm4126_vm7, %v2540_v34, %v2541_v8  ;;  %v3321_v24 = vld [vmem:[%s3932_s13 + $0x54] sm:$0xe]  ;;  %v4908_v8 = vld [vmem:[#allocation5_spill] sm:$0xff] }
  0x9a   : > { %v1413_v36 = vrot.slane %v1411_v1, 4  ;;  %v2546_v21 = vsel %vm4126_vm7, %v3326_v2, %v2545_v50  ;;  %v2552_v31 = vrot.slane %v4486_v43, 5  ;;  %v1417_v39 = vshll.u32 %v4232_v45, 16  ;;  %v3187_v50 = vld [vmem:[%s3932_s13 + $0x60] sm:$0xf] }
  0x9b   : > { %v2549_v55 = vsel %vm4126_vm7, %v2547_v6, %v2548_v42  ;;  %v1404_v19 = vor.u32 %v1403_v33, %v1400_v7  ;;  %v3334_v43 = vcombine.low %v2539_v53, %v2542_v57  ;;  %v2555_v11 = vrot.slane %v4528_v46, 5  ;;  %v4910_v33 = vld [vmem:[#allocation2_spill] sm:$0xff] }
  0x9c   : > { %v1414_v10 = vor.u32 %v1413_v36, %v4677_v25  ;;  %v1446_v15 = vshrl.u32 %v3184_v26, 16  ;;  %v1449_v41 = vshll.u32 %v3184_v26, 16  ;;  %v1455_v40 = vshll.u32 %v4258_v17, 16 }
  0x9d   : > { %3571 = vmatmul.mubr.msk.bf16.gmra.mrb[8].mxu0 %vm536_vm3, %v3305_v52  ;;  %v3319_v52 = vld [vmem:[%s3932_s13 + $0x3c] sm:$0xe]  ;;  %v2554_v4 = vrot.slane %v2552_v31, 4  ;;  %v1419_v47 = vrot.slane %v1417_v39, 5  ;;  %v2562_v58 = vrot.slane %v4533_v63, 5  ;;  %v2566_v63 = vrot.slane %v4518_v27, 5 }
  0x9e   : > { %3574 = vmatprep.mubr.msk.bf16.mxu0 %vm536_vm3, %v3306_v18  ;;  %v3327_v45 = vrot.slane %v3319_v52, 9  ;;  %v3335_v18 = vcombine.low %v2546_v21, %v2549_v55  ;;  %v1415_v49 = vrot.slane %v1414_v10, 4  ;;  %v1448_v46 = vrot.slane %v1446_v15, 4  ;;  %v3322_v27 = vld [vmem:[%s3932_s13 + $0x60] sm:$0xe] }
  0x9f   : > { %3491 = vmatmul.mubr.msk.bf16.vlgmr.msra.gmra.mrb[0].mxu1 %vm536_vm3, %v3794_v59  ;;  %v1459_v59 = vshrl.u32 %v4258_v17, 16  ;;  %v1451_v54 = vrot.slane %v1449_v41, 5  ;;  %v1457_v48 = vrot.slane %v1455_v40, 5  ;;  %v2556_v29 = vsel %vm4126_vm7, %v2554_v4, %v2555_v11  ;;  %v3800_v52 = vld [vmem:[%s3932_s13 + $0x60] sm:$0xff]  }
  0xa0   : > { %3597 = vmatpush3.bf16.msra.mxu1 %v3914_v3  ;;  %3494 = vmatprep.mubr.msk.bf16.mxu1 %vm536_vm3, %v3795_v51  ;;  %v4674_v3 = vcombine.low %v1434_v9, %v1444_v44  ;;  %v2559_v44 = vrot.slane %v4497_v16, 5  ;;  %v3328_v51 = vrot.slane %v3320_v38, 9  ;;  %v1405_v16 = vrot.slane %v1404_v19, 4  ;;  %v4909_v9 = vld [vmem:[#allocation3_spill] sm:$0xff] }
  0xa1   : > { %v1461_v62 = vrot.slane %v1459_v59, 4  ;;  %v2553_v17 = vsel %vm4126_vm7, %v3327_v45, %v2552_v31  ;;  %v1420_v1 = vsel %vm3971_vm4, %v1415_v49, %v1419_v47  ;;  %v1470_v34 = vshrl.u32 %v3187_v50, 16  ;;  %v3323_v47 = vld [vmem:[%s3932_s13 + $0x6c] sm:$0xe] }
  0xa2   : > { %v2561_v30 = vrot.slane %v2559_v44, 4  ;;  %v2560_v35 = vsel %vm4126_vm7, %v3328_v51, %v2559_v44  ;;  %v1410_v14 = vsel %vm3971_vm4, %v1405_v16, %v4677_v25  ;;  %v1473_v2 = vshll.u32 %v3187_v50, 16 }
  0xa3   : > { %v1483_v6 = vshrl.u32 %v4909_v9, 16  ;;  %v3336_v42 = vcombine.low %v2553_v17, %v2556_v29  ;;  %v1462_v7 = vor.u32 %v1461_v62, %v1457_v48  ;;  %v1465_v25 = vshll.u32 %v4910_v33, 16 }
  0xa4   : > { %v2563_v13 = vsel %vm4126_vm7, %v2561_v30, %v2562_v58  ;;  %v2568_v53 = vrot.slane %v2566_v63, 4  ;;  %v2569_v57 = vrot.slane %v4571_v56, 5  ;;  %v3195_v21 = vcombine.low %v1410_v14, %v1420_v1 }
  0xa5   : > { %3575 = vmatmul.mubr.msk.bf16.gmra.mrb[12].mxu0 %vm536_vm3, %v3307_v61  ;;  %v1479_v61 = vshll.u32 %v4909_v9, 16  ;;  %v3337_v36 = vcombine.low %v2560_v35, %v2563_v13  ;;  %v3330_v31 = vrot.slane %v3322_v27, 9  ;;  %v2576_v26 = vrot.slane %v4592_v28, 5 }
  0xa6   : > { %3580 = vmatprep.mubr.msk.bf16.mxu0 %vm536_vm3, %v3333_v0  ;;  %v2573_v0 = vrot.slane %v4908_v8, 5  ;;  %v1472_v55 = vrot.slane %v1470_v34, 4  ;;  %v1475_v19 = vrot.slane %v1473_v2, 5  ;;  %v1485_v38 = vrot.slane %v1483_v6, 4 }
  0xa7   : > { %3495 = vmatmul.mubr.msk.bf16.gmra.mrb[4].mxu1 %vm536_vm3, %v3796_v22  ;;  %v1452_v22 = vor.u32 %v1451_v54, %v1448_v46  ;;  %v1481_v10 = vrot.slane %v1479_v61, 5  ;;  %v1467_v45 = vrot.slane %v1465_v25, 5  ;;  %v2570_v28 = vsel %vm4126_vm7, %v2568_v53, %v2569_v57 }
  0xa8   : > { %3498 = vmatprep.mubr.msk.bf16.mxu1 %vm536_vm3, %v3797_v20  ;;  %v3329_v20 = vrot.slane %v3321_v24, 9  ;;  %v2575_v39 = vrot.slane %v2573_v0, 4  ;;  %v2574_v11 = vsel %vm4126_vm7, %v3330_v31, %v2573_v0  ;;  %v2580_v15 = vrot.slane %v4580_v12, 5  ;;  %v4773_v0 = vld [vmem:[%s4886_s2] ss:$0 sm:$0xff] }
  0xa9   : > { %v1453_v44 = vrot.slane %v1452_v22, 4  ;;  %v1476_v40 = vor.u32 %v1475_v19, %v1472_v55  ;;  %v1486_v59 = vor.u32 %v1485_v38, %v1481_v10  ;;  %v3331_v30 = vrot.slane %v3323_v47, 9 }
  0xaa   : > { %v2567_v56 = vsel %vm4126_vm7, %v3329_v20, %v2566_v63  ;;  %v2577_v41 = vsel %vm4126_vm7, %v2575_v39, %v2576_v26  ;;  %v2582_v12 = vrot.slane %v2580_v15, 4  ;;  %v2583_v58 = vrot.slane %v4621_v60, 5 }
  0xab   : > { %v1458_v51 = vsel %vm3971_vm4, %v1453_v44, %v1457_v48  ;;  %v3338_v16 = vcombine.low %v2567_v56, %v2570_v28  ;;  %v3339_v49 = vcombine.low %v2574_v11, %v2577_v41  ;;  %v1477_v46 = vrot.slane %v1476_v40, 4 }
  0xac   : > { %v1487_v54 = vrot.slane %v1486_v59, 4  ;;  %v2581_v48 = vsel %vm4126_vm7, %v3331_v30, %v2580_v15  ;;  %v2584_v50 = vsel %vm4126_vm7, %v2582_v12, %v2583_v58 }
  0xad   : > { %3581 = vmatmul.mubr.msk.bf16.vlgmr.msra.gmra.mrb[0].mxu0 %vm536_vm3, %v3334_v43  ;;  %v1463_v43 = vrot.slane %v1462_v7, 4  ;;  %v1482_v60 = vsel %vm3971_vm4, %v1477_v46, %v1481_v10  ;;  %v3340_v29 = vcombine.low %v2581_v48, %v2584_v50 }
  0xae   : > { %3584 = vmatprep.mubr.msk.bf16.mxu0 %vm536_vm3, %v3335_v18  ;;  %v4911_v18 = vld [vmem:[#allocation4_spill] sm:$0xff] }
  0xaf   : > { %3499 = vmatmul.mubr.msk.bf16.gmra.mrb[8].mxu1 %vm536_vm3, %v3798_v37  ;;  %v1489_v4 = vshll.u32 %v4911_v18, 16  ;;  %v1468_v37 = vsel %vm3971_vm4, %v1463_v43, %v1467_v45 }
  0xb0   : > { %3502 = vmatprep.mubr.msk.bf16.mxu1 %vm536_vm3, %v3799_v23  ;;  %v3197_v23 = vcombine.low %v1458_v51, %v1468_v37 }
  0xb1   : > { %v1491_v62 = vrot.slane %v1489_v4, 5 }
  0xb3   : > { %v1492_v17 = vsel %vm3971_vm4, %v1487_v54, %v1491_v62 }
  0xb4   : > { %v3198_v35 = vcombine.low %v1482_v60, %v1492_v17 }
  0xb5   : > { %3585 = vmatmul.mubr.msk.bf16.gmra.mrb[4].mxu0 %vm536_vm3, %v3336_v42 }
  0xb6   : > { %3588 = vmatprep.mubr.msk.bf16.mxu0 %vm536_vm3, %v3337_v36 }
  0xb7   : > { %3503 = vmatmul.mubr.msk.bf16.gmra.mrb[12].mxu1 %vm536_vm3, %v3800_v52 }
  0xb8   : > { %3516 = vmatprep.mubr.msk.bf16.mxu1 %vm536_vm3, %v3195_v21 }
  0xbd   : > { %3589 = vmatmul.mubr.msk.bf16.gmra.mrb[8].mxu0 %vm536_vm3, %v3338_v16 }
  0xbe   : > { %3592 = vmatprep.mubr.msk.bf16.mxu0 %vm536_vm3, %v3339_v49 }
  0xbf   : > { %3517 = vmatmul.mubr.msk.bf16.vlgmr.msra.gmra.mrb[8].mxu1 %vm536_vm3, %v4674_v3 }
  0xc0   : > { %3520 = vmatprep.mubr.msk.bf16.mxu1 %vm536_vm3, %v3197_v23 }
  0xc5   : > { %3593 = vmatmul.mubr.msk.bf16.gmra.mrb[12].mxu0 %vm536_vm3, %v3340_v29 }
  0xc7   : > { %3521 = vmatmul.mubr.msk.bf16.gmra.mrb[12].mxu1 %vm536_vm3, %v3198_v35 }
 0x172   : > { %v3492_v3 = vpop.f32.mrb[0].mxu1 }
 0x173   : > { %v1198_v63 = vpop.f32.mrb[1].mxu1 }
 0x174   : > { %v3493_v5 = vpop.f32.mrb[2].mxu1 }
 0x175   : > { %v1201_v14 = vpop.f32.mrb[3].mxu1 }
 0x17a   : > { %v3496_v1 = vpop.f32.mrb[4].mxu1 }
 0x17b   : > { %v1214_v13 = vpop.f32.mrb[5].mxu1 }
 0x17c   : > { %v3497_v24 = vpop.f32.mrb[6].mxu1 }
 0x17d   : > { %v1217_v8 = vpop.f32.mrb[7].mxu1 }
 0x180   : > { %v3582_v32 = vpop.f32.mrb[0].mxu0 }
 0x181   : > { %v3598_v27 = vadd.f32 %v3582_v32, %v3492_v3  ;;  %v2672_v34 = vpop.f32.mrb[1].mxu0 }
 0x182   : > { %v3599_v2 = vadd.f32 %v2672_v34, %v1198_v63  ;;  %v3583_v9 = vpop.f32.mrb[2].mxu0 }
 0x183   : > { %v2760_v61 = vadd.f32 %v3598_v27, %v4773_v0  ;;  %v3600_v6 = vadd.f32 %v3583_v9, %v3493_v5  ;;  %v2675_v42 = vpop.f32.mrb[3].mxu0 }
 0x184   : > { %v2758_v22 = vadd.f32 %v3599_v2, %v4773_v0  ;;  %v3601_v7 = vadd.f32 %v2675_v42, %v1201_v14 }
 0x185   : > { %2776 = vst.msk [vmem:[%s4778_s16 + $0x10] sm:$0xff] %vm536_vm3, %v2760_v61  ;;  %v2761_v33 = vadd.f32 %v3600_v6, %v4773_v0  ;;  %v2831_v20 = vmul.f32 %v2760_v61, %v2760_v61  ;;  %v2793_v19 = vsel %vm536_vm3, %v2760_v61, 0.0 }
 0x186   : > { %2774 = vst.msk [vmem:[%s4778_s16] sm:$0xff] %vm536_vm3, %v2758_v22  ;;  %v2829_v25 = vmul.f32 %v2758_v22, %v2758_v22  ;;  %v2759_v36 = vadd.f32 %v3601_v7, %v4773_v0  ;;  %v2790_v53 = vsel %vm536_vm3, %v2758_v22, 0.0 }
 0x187   : > { %2777 = vst.msk [vmem:[%s4778_s16 + $0x18] sm:$0xff] %vm536_vm3, %v2761_v33  ;;  %v2832_v31 = vmul.f32 %v2761_v33, %v2761_v33  ;;  %v2848_v41 = vsel %vm536_vm3, %v2831_v20, 0.0  ;;  %v2795_v40 = vsel %vm536_vm3, %v2761_v33, 0.0 }
 0x188   : > { %2775 = vst.msk [vmem:[%s4778_s16 + $0x8] sm:$0xff] %vm536_vm3, %v2759_v36  ;;  %v2791_v57 = vsel %vm536_vm3, %v2759_v36, 0.0  ;;  %v2830_v52 = vmul.f32 %v2759_v36, %v2759_v36  ;;  %v3586_v21 = vpop.f32.mrb[4].mxu0  ;;  %v2845_v10 = vsel %vm536_vm3, %v2829_v25, 0.0 }
 0x189   : > { %v2792_v39 = vadd.f32 %v2791_v57, %v2790_v53  ;;  %v3602_v26 = vadd.f32 %v3586_v21, %v3496_v1  ;;  %v2688_v55 = vpop.f32.mrb[5].mxu0  ;;  %v2850_v4 = vsel %vm536_vm3, %v2832_v31, 0.0 }
 0x18a   : > { %v2846_v38 = vsel %vm536_vm3, %v2830_v52, 0.0  ;;  %v3603_v44 = vadd.f32 %v2688_v55, %v1214_v13  ;;  %v3587_v43 = vpop.f32.mrb[6].mxu0 }
 0x18b   : > { %v2794_v45 = vadd.f32 %v2793_v19, %v2792_v39  ;;  %v2847_v56 = vadd.f32 %v2846_v38, %v2845_v10  ;;  %v2764_v28 = vadd.f32 %v3602_v26, %v4773_v0  ;;  %v3604_v11 = vadd.f32 %v3587_v43, %v3497_v24  ;;  %v2691_v15 = vpop.f32.mrb[7].mxu0 }
 0x18c   : > { %v2762_v59 = vadd.f32 %v3603_v44, %v4773_v0  ;;  %v3605_v18 = vadd.f32 %v2691_v15, %v1217_v8 }
 0x18d   : > { %v2849_v47 = vadd.f32 %v2848_v41, %v2847_v56  ;;  %2780 = vst.msk [vmem:[%s4778_s16 + $0x30] sm:$0xff] %vm536_vm3, %v2764_v28  ;;  %v2796_v51 = vadd.f32 %v2795_v40, %v2794_v45  ;;  %v2765_v49 = vadd.f32 %v3604_v11, %v4773_v0  ;;  %v2835_v62 = vmul.f32 %v2764_v28, %v2764_v28 }
 0x18e   : > { %2778 = vst.msk [vmem:[%s4778_s16 + $0x20] sm:$0xff] %vm536_vm3, %v2762_v59  ;;  %v2797_v37 = vsel %vm536_vm3, %v2762_v59, 0.0  ;;  %v2833_v16 = vmul.f32 %v2762_v59, %v2762_v59  ;;  %v2763_v30 = vadd.f32 %v3605_v18, %v4773_v0  ;;  %v2801_v35 = vsel %vm536_vm3, %v2764_v28, 0.0 }
 0x18f   : > { %v2798_v12 = vadd.f32 %v2797_v37, %v2796_v51  ;;  %v2851_v58 = vadd.f32 %v2850_v4, %v2849_v47  ;;  %2781 = vst.msk [vmem:[%s4778_s16 + $0x38] sm:$0xff] %vm536_vm3, %v2765_v49  ;;  %v2836_v14 = vmul.f32 %v2765_v49, %v2765_v49  ;;  %v2803_v27 = vsel %vm536_vm3, %v2765_v49, 0.0 }
 0x190   : > { %v2852_v23 = vsel %vm536_vm3, %v2833_v16, 0.0  ;;  %2779 = vst.msk [vmem:[%s4778_s16 + $0x28] sm:$0xff] %vm536_vm3, %v2763_v30  ;;  %v2799_v46 = vsel %vm536_vm3, %v2763_v30, 0.0  ;;  %v3590_v54 = vpop.f32.mrb[8].mxu0  ;;  %v2834_v60 = vmul.f32 %v2763_v30, %v2763_v30  ;;  %v2856_v6 = vsel %vm536_vm3, %v2835_v62, 0.0 }
 0x191   : > { %v2853_v48 = vadd.f32 %v2852_v23, %v2851_v58  ;;  %v2800_v50 = vadd.f32 %v2799_v46, %v2798_v12  ;;  %v2704_v29 = vpop.f32.mrb[9].mxu0  ;;  %v2858_v36 = vsel %vm536_vm3, %v2836_v14, 0.0 }
 0x192   : > { %v3518_v17 = vpop.f32.mrb[8].mxu1  ;;  %v3591_v5 = vpop.f32.mrb[10].mxu0  ;;  %v2854_v13 = vsel %vm536_vm3, %v2834_v60, 0.0 }
 0x193   : > { %v3606_v3 = vadd.f32 %v3590_v54, %v3518_v17  ;;  %v1612_v63 = vpop.f32.mrb[9].mxu1  ;;  %v2802_v1 = vadd.f32 %v2801_v35, %v2800_v50  ;;  %v2707_v32 = vpop.f32.mrb[11].mxu0  ;;  %v2855_v34 = vadd.f32 %v2854_v13, %v2853_v48 }
 0x194   : > { %v3607_v24 = vadd.f32 %v2704_v29, %v1612_v63  ;;  %v3519_v8 = vpop.f32.mrb[10].mxu1 }
 0x195   : > { %v2768_v2 = vadd.f32 %v3606_v3, %v4773_v0  ;;  %v3608_v9 = vadd.f32 %v3591_v5, %v3519_v8  ;;  %v1615_v61 = vpop.f32.mrb[11].mxu1  ;;  %v2804_v22 = vadd.f32 %v2803_v27, %v2802_v1  ;;  %v2857_v33 = vadd.f32 %v2856_v6, %v2855_v34 }
 0x196   : > { %v2766_v42 = vadd.f32 %v3607_v24, %v4773_v0  ;;  %v3609_v7 = vadd.f32 %v2707_v32, %v1615_v61 }
 0x197   : > { %2784 = vst.msk [vmem:[%s4778_s16 + $0x50] sm:$0xff] %vm536_vm3, %v2768_v2  ;;  %v2769_v25 = vadd.f32 %v3608_v9, %v4773_v0  ;;  %v2859_v21 = vadd.f32 %v2858_v36, %v2857_v33  ;;  %v2839_v39 = vmul.f32 %v2768_v2, %v2768_v2  ;;  %v2809_v15 = vsel %vm536_vm3, %v2768_v2, 0.0 }
 0x198   : > { %2782 = vst.msk [vmem:[%s4778_s16 + $0x40] sm:$0xff] %vm536_vm3, %v2766_v42  ;;  %v2805_v20 = vsel %vm536_vm3, %v2766_v42, 0.0  ;;  %v2837_v53 = vmul.f32 %v2766_v42, %v2766_v42  ;;  %v2767_v57 = vadd.f32 %v3609_v7, %v4773_v0  ;;  %v3594_v31 = vpop.f32.mrb[12].mxu0 }
 0x199   : > { %v2806_v52 = vadd.f32 %v2805_v20, %v2804_v22  ;;  %2785 = vst.msk [vmem:[%s4778_s16 + $0x58] sm:$0xff] %vm536_vm3, %v2769_v25  ;;  %v2720_v38 = vpop.f32.mrb[13].mxu0  ;;  %v2840_v43 = vmul.f32 %v2769_v25, %v2769_v25  ;;  %v2864_v49 = vsel %vm536_vm3, %v2839_v39, 0.0  ;;  %v2811_v30 = vsel %vm536_vm3, %v2769_v25, 0.0 }
 0x19a   : > { %v2860_v26 = vsel %vm536_vm3, %v2837_v53, 0.0  ;;  %2783 = vst.msk [vmem:[%s4778_s16 + $0x48] sm:$0xff] %vm536_vm3, %v2767_v57  ;;  %v2807_v55 = vsel %vm536_vm3, %v2767_v57, 0.0  ;;  %v2838_v19 = vmul.f32 %v2767_v57, %v2767_v57  ;;  %v3522_v10 = vpop.f32.mrb[12].mxu1  ;;  %v3595_v11 = vpop.f32.mrb[14].mxu0 }
 0x19b   : > { %v2861_v44 = vadd.f32 %v2860_v26, %v2859_v21  ;;  %v2808_v45 = vadd.f32 %v2807_v55, %v2806_v52  ;;  %v3610_v56 = vadd.f32 %v3594_v31, %v3522_v10  ;;  %v1628_v28 = vpop.f32.mrb[13].mxu1  ;;  %v2723_v18 = vpop.f32.mrb[15].mxu0  ;;  %v2866_v23 = vsel %vm536_vm3, %v2840_v43, 0.0 }
 0x19c   : > { %v2862_v41 = vsel %vm536_vm3, %v2838_v19, 0.0  ;;  %v3611_v40 = vadd.f32 %v2720_v38, %v1628_v28  ;;  %v3523_v59 = vpop.f32.mrb[14].mxu1 }
 0x19d   : > { %v2810_v4 = vadd.f32 %v2809_v15, %v2808_v45  ;;  %v2863_v47 = vadd.f32 %v2862_v41, %v2861_v44  ;;  %v2772_v51 = vadd.f32 %v3610_v56, %v4773_v0  ;;  %v3612_v37 = vadd.f32 %v3595_v11, %v3523_v59  ;;  %v1631_v16 = vpop.f32.mrb[15].mxu1 }
 0x19e   : > { %v2770_v12 = vadd.f32 %v3611_v40, %v4773_v0  ;;  %v3613_v58 = vadd.f32 %v2723_v18, %v1631_v16 }
 0x19f   : > { %v2865_v46 = vadd.f32 %v2864_v49, %v2863_v47  ;;  %2788 = vst.msk [vmem:[%s4778_s16 + $0x70] sm:$0xff] %vm536_vm3, %v2772_v51  ;;  %v2812_v54 = vadd.f32 %v2811_v30, %v2810_v4  ;;  %v2773_v50 = vadd.f32 %v3612_v37, %v4773_v0  ;;  %v2843_v63 = vmul.f32 %v2772_v51, %v2772_v51 }
 0x1a0   : > { %2786 = vst.msk [vmem:[%s4778_s16 + $0x60] sm:$0xff] %vm536_vm3, %v2770_v12  ;;  %v2813_v62 = vsel %vm536_vm3, %v2770_v12, 0.0  ;;  %v2841_v48 = vmul.f32 %v2770_v12, %v2770_v12  ;;  %v2771_v60 = vadd.f32 %v3613_v58, %v4773_v0  ;;  %v2817_v13 = vsel %vm536_vm3, %v2772_v51, 0.0 }
 0x1a1   : > { %v2814_v17 = vadd.f32 %v2813_v62, %v2812_v54  ;;  %v2867_v29 = vadd.f32 %v2866_v23, %v2865_v46  ;;  %2789 = vst.msk [vmem:[%s4778_s16 + $0x78] sm:$0xff] %vm536_vm3, %v2773_v50  ;;  %v2844_v0 = vmul.f32 %v2773_v50, %v2773_v50  ;;  %v2819_v32 = vsel %vm536_vm3, %v2773_v50, 0.0 }
 0x1a2   : > { %v2868_v35 = vsel %vm536_vm3, %v2841_v48, 0.0  ;;  %2787 = vst.msk [vmem:[%s4778_s16 + $0x68] sm:$0xff] %vm536_vm3, %v2771_v60  ;;  %v2815_v3 = vsel %vm536_vm3, %v2771_v60, 0.0  ;;  %v2842_v1 = vmul.f32 %v2771_v60, %v2771_v60  ;;  %v2872_v34 = vsel %vm536_vm3, %v2843_v63, 0.0 }
 0x1a3   : > { %v2869_v5 = vadd.f32 %v2868_v35, %v2867_v29  ;;  %v2816_v14 = vadd.f32 %v2815_v3, %v2814_v17  ;;  %v2874_v61 = vsel %vm536_vm3, %v2844_v0, 0.0 }
 0x1a4   : > { %v2870_v8 = vsel %vm536_vm3, %v2842_v1, 0.0 }
 0x1a5   : > { %v2818_v24 = vadd.f32 %v2817_v13, %v2816_v14  ;;  %v2871_v27 = vadd.f32 %v2870_v8, %v2869_v5 }
 0x1a7   : > { %v2820_v2 = vadd.f32 %v2819_v32, %v2818_v24  ;;  %v2873_v9 = vadd.f32 %v2872_v34, %v2871_v27 }
 0x1a9   : > { %v2821_v6 = vrot.slane %v2820_v2, 4  ;;  %v2875_v42 = vadd.f32 %v2874_v61, %v2873_v9 }
 0x1ab   : > { %v2822_v22 = vadd.f32 %v2821_v6, %v2820_v2  ;;  %v2876_v7 = vrot.slane %v2875_v42, 4 }
 0x1ad   : > { %v2823_v33 = vrot.slane %v2822_v22, 2  ;;  %v2877_v25 = vadd.f32 %v2876_v7, %v2875_v42 }
 0x1af   : > { %v2824_v36 = vadd.f32 %v2823_v33, %v2822_v22  ;;  %v2878_v20 = vrot.slane %v2877_v25, 2 }
 0x1b1   : > { %v2825_v53 = vrot.slane %v2824_v36, 1  ;;  %v2879_v57 = vadd.f32 %v2878_v20, %v2877_v25 }
 0x1b3   : > { %v2826_v52 = vadd.f32 %v2825_v53, %v2824_v36  ;;  %v2880_v21 = vrot.slane %v2879_v57, 1 }
 0x1b5   : > { %2828 = vst.msk [vmem:[%s277_s28] sm:$0x1] %vm2827_vm8, %v2826_v52  ;;  %v2881_v31 = vadd.f32 %v2880_v21, %v2879_v57 }
 0x1b7   : > { %2882 = vst.msk [vmem:[%s284_s6] sm:$0x1] %vm2827_vm8, %v2881_v31 }
 0x1b8 PF: > { %s16_s22 = sadd.s32 1, %s3840_s22   ;;  %s4912_s18 = smov %s3832_s20 }
 0x1b9   : > { %p13_p8 = scmp.ge.s32.totalorder %s16_s22, 6   ;;  %s4913_s19 = smov %s3836_s21 }
 0x1ba   : > { %s4914_s20 = smov %s4917_s23  ;;  %s4915_s21 = smov %s4921_s24 }
 0x1bb   :  { %15 = sbr.rel (!%p13_p8) target bundleno = 3 (0x3), region = 97 }

// kernel: _lambda_.3
= control target key start
LH: loop header
LB: loop body
LE: loop exit
PB: predicated region body
PF: predicated region fallthrough
CT: control target
= control target key end

     0   :  { %11 = vsyncpa [#allocation3], 0  ;;  %s5228_s0 = inlined_call_operand.vmem [shape: bf16[2,18,18,4], index: 0, kind: input, shape index: {}]   ;;  %s5229_s1 = inlined_call_operand.vmem [shape: bf16[9,4,8], index: 1, kind: input, shape index: {}]   ;;  %s5230_s2 = inlined_call_operand.vmem [shape: f32[1,8], index: 2, kind: input, shape index: {}]   ;;  %s5231_s3 = inlined_call_operand.vmem [shape: bf16[2,256,8], index: 3, kind: output, shape index: {0}]   ;;  %s5232_s4 = inlined_call_operand.hbm [shape: f32[2,2,1,8], index: 4, kind: output, shape index: {1}]   ;;  %s5233_s5 = inlined_call_operand.hbm [shape: f32[2,2,1,8], index: 5, kind: output, shape index: {2}]  }
   0x1   :  { %13 = vsyncpa [#allocation3 + $0x1], 0 }
   0x2   :  { %14 = vsyncpa [#allocation5], 0 }
   0x3   :  { %16 = vsyncpa [#allocation5 + $0x1], 0  ;;  %s4100_s18 = smov 0   ;;  %s4102_s19 = smov 0  }
   0x4   :  { %s4104_s20 = smov 0   ;;  %s4106_s21 = smov 0  }
   0x5   :  { %s4108_s22 = smov 0   ;;  %s4110_s23 = smov 0  }
   0x6   :  { %s4112_s24 = smov 0   ;;  %s4114_s25 = smov 0  }
   0x7 LB: > { %s3127_s26 = sadd.s32 4294967295, %s4066_s25   ;;  %s3128_s27 = sadd.s32 4294967294, %s4066_s25   ;;  %s4066_s25 = sphi %s4114_s25, %s22_s25   ;;  %s4062_s24 = sphi %s4112_s24, %s5266_s24   ;;  %s4058_s23 = sphi %s4110_s23, %s5265_s23   ;;  %s4054_s22 = sphi %s4108_s22, %s5264_s22   ;;  %s4050_s21 = sphi %s4106_s21, %s5263_s21   ;;  %s4046_s20 = sphi %s4104_s20, %s5262_s20   ;;  %s4042_s19 = sphi %s4102_s19, %s5261_s19   ;;  %s4038_s18 = sphi %s4100_s18, %s5260_s18  }
   0x8   : > { %s31_s28 = sadd.s32 1, %s4058_s23  ;;  %s34_s29 = sadd.s32 1, %s4062_s24 }
   0x9   : > { %p32_p0 = scmp.ge.s32.totalorder %s31_s28, 2  ;;  %p149_p1 = scmp.ne.s32.totalorder %s4046_s20, %s4042_s19 }
   0xa   : > { %p150_p2 = scmp.eq.s32.totalorder %s3127_s26, 3  ;;  %p155_p5 = scmp.ne.s32.totalorder %s4042_s19, %s4038_s18 }
   0xb   : > { %s5268_s28 = smov (%p32_p0, %s31_s28), 0  ;;  %s5270_s29 = smov (!%p32_p0, %s34_s29), %s4062_s24 }
   0xc   : > { %s135_s30 = ssub.s32 %s4058_s23, %s5268_s28  ;;  %p4151_p3 = por %p150_p2, %p149_p1 }
   0xd   : > { %p36_p4 = scmp.ge.s32.totalorder %s5270_s29, 2  ;;  %p156_p6 = scmp.eq.s32.totalorder %s3128_s27, 3 }
   0xe   : > { %p3131_p7 = scmp.ge.s32.totalorder %s4066_s25, 1  ;;  %p216_p9 = scmp.lt.s32.totalorder %s4066_s25, 5 }
   0xf   : > { %s5272_s29 = smov (%p36_p4, %s5270_s29), 0  ;;  %p4160_p8 = por %p156_p6, %p155_p5 }
  0x10   : > { %s134_s8 = ssub.s32 %s4062_s24, %s5272_s29  ;;  %s139_s9 = sadd.s32 1, %s4046_s20 }
  0x11   : > { %s136_s10 = sor.u32 %s135_s30, %s134_s8  ;;  %p217_p10 = pnand %p3131_p7, %p216_p9 }
  0x12   : > { %p137_p11 = scmp.eq.s32.totalorder %s136_s10, 0 }
  0x13   : > { %220 = sbr.rel (%p217_p10) target bundleno = 485 (0x1e5), region = 32 }
  0x14   : > { %s4169_s11 = scalar_select %p137_p11, %s4046_s20, %s139_s9  }
  0x1a   : > { %v3139_v0 = vld [vmem:[%s5229_s1 + $0x2] sm:$0x3]  ;;  %vm547_vm0 = vcmask 1041408   ;;  %v3256_v1 = vld [vmem:[%s5229_s1 + $0x8] sm:$0x3]  ;;  %p256_p12 = scmp.lt.s32.totalorder %s4054_s22, 1 }
  0x1b   : > { %3828 = vmatprep.subr.msk.bf16.mxu1 %vm547_vm0, %v3139_v0  ;;  %3832 = vmatprep.subr.msk.bf16.mxu0 %vm547_vm0, %v3256_v1  ;;  %v549_v2 = vsel %vm547_vm0, %v3139_v0, 0  ;;  %v4182_v3 = vsel %vm547_vm0, %v3256_v1, 0  ;;  %v292_v4 = vld [vmem:[%s5229_s1] sm:$0x3]  ;;  %s3438_s27 = smul.u32 96, %s4050_s21  ;;  %vm522_vm3 = vcmask 31744  }
  0x1c   : > { %3537 = vmatpush3.bf16.msra.mxu1 %v549_v2  ;;  %3609 = vmatpush3.bf16.msra.mxu0 %v4182_v3  ;;  %s4186_s16 = scalar_select %p256_p12, %s4054_s22, 1  ;;  %v3289_v5 = vld [vmem:[%s5229_s1 + $0xa] sm:$0x3]  ;;  %vm301_vm1 = vsmask.f32 3328  ;;  %v4225_v17 = vsel %vm547_vm0, %v292_v4, 0 }
  0x1d   : > { %3829 = vmatprep.subr.msk.bf16.mxu1 %vm547_vm0, %v292_v4  ;;  %3834 = vmatprep.subr.msk.bf16.mxu0 %vm547_vm0, %v3289_v5  ;;  %vm302_vm2 = vsmask.f32 7440  ;;  %v4231_v26 = vld [vmem:[%s5229_s1 + $0xc] sm:$0x3]  ;;  %v4248_v37 = vsel %vm547_vm0, %v3289_v5, 0  ;;  %vm836_vm5 = vcmask 1042432  }
  0x1e   : > { %s3838_s9 = smul.u32 216, %s4186_s16  ;;  %vm4240_vm4 = vmor %vm301_vm1, %vm302_vm2  ;;  %v4252_v41 = vsel %vm547_vm0, %v4231_v26, 0  ;;  %vm837_vm6 = vcmask 1046532   ;;  %s3134_s26 = sshll.u32 %s4186_s16, 5  ;;  %vm2824_vm8 = vcmask 60416   ;;  %vm2841_vm9 = vcmask 64512  }
  0x1f   : > { %vm4395_vm7 = vmor %vm836_vm5, %vm837_vm6  ;;  %s3432_s15 = sshll.u32 %s4054_s22, 1  ;;  %vm2879_vm10 = vcmask 57344   ;;  %s4068_s8 = smov [#allocation2]  }
  0x20   : > { %s260_s13 = scalar_lea.vmem %s5228_s0, %s3838_s9  ;;  %s2963_s17 = sadd.s32 %s4050_s21, %s3432_s15 }
  0x21   : > { %s4201_s14 = scalar_lea.vmem %s260_s13, %s3438_s27  ;;  %s5130_s13 = sand.u32 1, %s4042_s19  }
  0x22   : > { %v4204_v6 = vld [vmem:[%s4201_s14] sm:$0xf]  ;;  %v4207_v7 = vld [vmem:[%s4201_s14 + $0x4] sm:$0xf]  ;;  %v4210_v8 = vld [vmem:[%s4201_s14 + $0x8] sm:$0x1] }
  0x23   : > { %v305_v9 = vshrl.u32 %v4204_v6, 16  ;;  %v308_v10 = vshll.u32 %v4204_v6, 16  ;;  %v314_v11 = vshll.u32 %v4207_v7, 16  ;;  %v318_v12 = vshrl.u32 %v4207_v7, 16  ;;  %v3232_v13 = vld [vmem:[%s4201_s14 + $0xc] sm:$0xf] }
  0x24   : > { %v324_v14 = vshll.u32 %v4210_v8, 16  ;;  %v4219_v15 = vld [vmem:[%s4201_s14 + $0x10] sm:$0xf]  ;;  %v4222_v16 = vld [vmem:[%s4201_s14 + $0x14] sm:$0x1]  ;;  %v1288_v23 = vshrl.u32 %v3232_v13, 16 }
  0x25   : > { %v307_v18 = vrot.slane %v305_v9, 4  ;;  %v310_v19 = vrot.slane %v308_v10, 5  ;;  %v316_v20 = vrot.slane %v314_v11, 5  ;;  %v320_v21 = vrot.slane %v318_v12, 4  ;;  %v4236_v31 = vld [vmem:[%s4201_s14 + $0xc] sm:$0xf] }
  0x26   : > { %v326_v22 = vrot.slane %v324_v14, 5  ;;  %v1291_v24 = vshll.u32 %v3232_v13, 16  ;;  %v1297_v25 = vshll.u32 %v4219_v15, 16  ;;  %v1301_v29 = vshrl.u32 %v4219_v15, 16  ;;  %v4245_v36 = vld [vmem:[%s4201_s14 + $0x10] sm:$0xf] }
  0x27   : > { %v311_v27 = vor.u32 %v310_v19, %v307_v18  ;;  %v321_v28 = vor.u32 %v320_v21, %v316_v20  ;;  %v1307_v30 = vshll.u32 %v4222_v16, 16  ;;  %v1290_v33 = vrot.slane %v1288_v23, 4  ;;  %v4255_v44 = vld [vmem:[%s4201_s14 + $0x14] sm:$0x1]  ;;  %v3235_v55 = vld [vmem:[%s4201_s14 + $0x18] sm:$0xf] }
  0x28   : > { %v1293_v34 = vrot.slane %v1291_v24, 5  ;;  %v1299_v35 = vrot.slane %v1297_v25, 5  ;;  %v1303_v40 = vrot.slane %v1301_v29, 4  ;;  %v329_v45 = vshrl.u32 %v4236_v31, 16  ;;  %v4268_v60 = vld [vmem:[%s4201_s14 + $0x1c] sm:$0xf] }
  0x29   : > { %v312_v38 = vrot.slane %v311_v27, 4  ;;  %v322_v39 = vrot.slane %v321_v28, 4  ;;  %v1309_v43 = vrot.slane %v1307_v30, 5  ;;  %v332_v46 = vshll.u32 %v4236_v31, 16  ;;  %v4276_v1 = vld [vmem:[%s4201_s14 + $0x20] sm:$0x1] }
  0x2a   : > { %v1294_v42 = vor.u32 %v1293_v34, %v1290_v33  ;;  %v1304_v49 = vor.u32 %v1303_v40, %v1299_v35  ;;  %v338_v50 = vshll.u32 %v4245_v36, 16  ;;  %v331_v53 = vrot.slane %v329_v45, 4  ;;  %v4284_v21 = vld [vmem:[%s4201_s14 + $0x18] sm:$0xf]  ;;  %v4291_v27 = vld [vmem:[%s4201_s14 + $0x1c] sm:$0xf] }
  0x2b   : > { %v317_v47 = vsel %vm4240_vm4, %v312_v38, %v316_v20  ;;  %v327_v48 = vsel %vm4240_vm4, %v322_v39, %v326_v22  ;;  %v334_v54 = vrot.slane %v332_v46, 5  ;;  %v342_v58 = vshrl.u32 %v4245_v36, 16  ;;  %v4299_v38 = vld [vmem:[%s4201_s14 + $0x20] sm:$0x1]  ;;  %s5239_s30 = scalar_lea.vmem [#allocation4], %s5130_s13  ;;  %s2945_s15 = scalar_lea.sflag [#allocation3], %s5130_s13 }
  0x2c   : > { %v3140_v51 = vcombine.low %v317_v47, %v327_v48  ;;  %v1295_v52 = vrot.slane %v1294_v42, 4  ;;  %v1305_v56 = vrot.slane %v1304_v49, 4  ;;  %v340_v57 = vrot.slane %v338_v50, 5  ;;  %v3238_v47 = vld [vmem:[%s4201_s14 + $0x24] sm:$0xf]  ;;  %s2982_s22 = sshll.u32 %s5239_s30, 4  ;;  %s5151_s22 = int_to_ptr.vmem [resolvable:$true] %s2982_s22 }
  0x2d   : > { %v348_v59 = vshll.u32 %v4255_v44, 16  ;;  %v1679_v62 = vrot.slane %v4219_v15, 5  ;;  %v1682_v63 = vrot.slane %v4222_v16, 5  ;;  %v335_v0 = vor.u32 %v334_v54, %v331_v53 }
  0x2e   : > { %3538 = vmatprep.mubr.msk.bf16.mxu1 %vm522_vm3, %v3140_v51  ;;  %v1300_v61 = vsel %vm4240_vm4, %v1295_v52, %v1299_v35  ;;  %v1310_v2 = vsel %vm4240_vm4, %v1305_v56, %v1309_v43  ;;  %v344_v4 = vrot.slane %v342_v58, 4  ;;  %v1312_v9 = vshrl.u32 %v3235_v55, 16  ;;  %v4309_v52 = vld [vmem:[%s4201_s14 + $0x28] sm:$0xf] }
  0x2f   : > { %v350_v5 = vrot.slane %v348_v59, 5  ;;  %v3257_v10 = vcombine.low %v1300_v61, %v1310_v2  ;;  %v336_v11 = vrot.slane %v335_v0, 4  ;;  %v1315_v12 = vshll.u32 %v3235_v55, 16  ;;  %v4321_v61 = vld [vmem:[%s4201_s14 + $0x2c] sm:$0x1] }
  0x30   : > { %v1321_v13 = vshll.u32 %v4268_v60, 16  ;;  %v345_v14 = vor.u32 %v344_v4, %v340_v57  ;;  %v1314_v18 = vrot.slane %v1312_v9, 4  ;;  %v1325_v19 = vshrl.u32 %v4268_v60, 16 }
  0x31   : > { %v1331_v20 = vshll.u32 %v4276_v1, 16  ;;  %3610 = vmatprep.mubr.msk.bf16.mxu0 %vm522_vm3, %v3257_v10  ;;  %v341_v22 = vsel %vm4240_vm4, %v336_v11, %v340_v57  ;;  %v1317_v23 = vrot.slane %v1315_v12, 5  ;;  %v1686_v25 = vrot.slane %v4268_v60, 5  ;;  %v4315_v57 = vld [vmem:[%s5229_s1 + $0x4] sm:$0x3] }
  0x32   : > { %v1323_v24 = vrot.slane %v1321_v13, 5  ;;  %v346_v28 = vrot.slane %v345_v14, 4  ;;  %v1327_v29 = vrot.slane %v1325_v19, 4  ;;  %v1689_v33 = vrot.slane %v4276_v1, 5  ;;  %v4328_v11 = vld [vmem:[%s4201_s14 + $0x24] sm:$0xf] }
  0x33   : > { %v1333_v30 = vrot.slane %v1331_v20, 5  ;;  %v1318_v34 = vor.u32 %v1317_v23, %v1314_v18  ;;  %v4296_v35 = vrot.slane %v1686_v25, 4  ;;  %v353_v39 = vshrl.u32 %v4284_v21, 16  ;;  %v4331_v19 = vld [vmem:[%s4201_s14 + $0x28] sm:$0xf] }
  0x34   : > { %v356_v40 = vshll.u32 %v4284_v21, 16  ;;  %v351_v42 = vsel %vm4240_vm4, %v346_v28, %v350_v5  ;;  %v1328_v43 = vor.u32 %v1327_v29, %v1323_v24  ;;  %v362_v45 = vshll.u32 %v4291_v27, 16  ;;  %v4341_v29 = vld [vmem:[%s4201_s14 + $0x2c] sm:$0x1] }
  0x35   : > { %v366_v46 = vshrl.u32 %v4291_v27, 16  ;;  %v3141_v48 = vcombine.low %v341_v22, %v351_v42  ;;  %v1319_v49 = vrot.slane %v1318_v34, 4  ;;  %v355_v50 = vrot.slane %v353_v39, 4 }
  0x36   : > { %v358_v51 = vrot.slane %v356_v40, 5  ;;  %v1329_v53 = vrot.slane %v1328_v43, 4  ;;  %v364_v54 = vrot.slane %v362_v45, 5  ;;  %v372_v56 = vshll.u32 %v4299_v38, 16  ;;  %v3241_v45 = vld [vmem:[%s4201_s14 + $0x30] sm:$0xf] }
  0x37   : > { %v368_v55 = vrot.slane %v366_v46, 4  ;;  %3539 = vmatmul.mubr.msk.bf16.vlgmr.msra.gmra.mrb[0].mxu1 %vm522_vm3, %v3141_v48  ;;  %v1324_v58 = vsel %vm4240_vm4, %v1319_v49, %v1323_v24  ;;  %v1336_v0 = vshrl.u32 %v3238_v47, 16  ;;  %v1339_v2 = vshll.u32 %v3238_v47, 16 }
  0x38   : > { %v359_v59 = vor.u32 %v358_v51, %v355_v50  ;;  %3555 = vmatpush3.bf16.msra.mxu1 %v4225_v17  ;;  %v1334_v4 = vsel %vm4240_vm4, %v1329_v53, %v1333_v30  ;;  %v374_v9 = vrot.slane %v372_v56, 5  ;;  %v1345_v10 = vshll.u32 %v4309_v52, 16  ;;  %v4351_v50 = vld [vmem:[%s4201_s14 + $0x34] sm:$0xf] }
  0x39   : > { %v369_v5 = vor.u32 %v368_v55, %v364_v54  ;;  %v3258_v12 = vcombine.low %v1324_v58, %v1334_v4  ;;  %v1338_v14 = vrot.slane %v1336_v0, 4  ;;  %v1341_v18 = vrot.slane %v1339_v2, 5  ;;  %3830 = vmatprep.subr.msk.bf16.mxu1 %vm547_vm0, %v4315_v57  ;;  %v4361_v58 = vld [vmem:[%s4201_s14 + $0x38] sm:$0x1] }
  0x3a   : > { %v360_v13 = vrot.slane %v359_v59, 4  ;;  %v1347_v20 = vrot.slane %v1345_v10, 5  ;;  %v1349_v22 = vshrl.u32 %v4309_v52, 16  ;;  %v1355_v23 = vshll.u32 %v4321_v61, 16 }
  0x3b   : > { %v370_v17 = vrot.slane %v369_v5, 4  ;;  %3611 = vmatmul.mubr.msk.bf16.vlgmr.msra.gmra.mrb[0].mxu0 %vm522_vm3, %v3258_v12  ;;  %v1342_v28 = vor.u32 %v1341_v18, %v1338_v14  ;;  %v377_v30 = vshrl.u32 %v4328_v11, 16  ;;  %v380_v34 = vshll.u32 %v4328_v11, 16  ;;  %v4366_v14 = vld [vmem:[%s4201_s14 + $0x30] sm:$0xf] }
  0x3c   : > { %v365_v24 = vsel %vm4240_vm4, %v360_v13, %v364_v54  ;;  %3627 = vmatpush3.bf16.msra.mxu0 %v4248_v37  ;;  %v1351_v40 = vrot.slane %v1349_v22, 4  ;;  %v1357_v42 = vrot.slane %v1355_v23, 5  ;;  %v386_v43 = vshll.u32 %v4331_v19, 16  ;;  %v4372_v23 = vld [vmem:[%s4201_s14 + $0x34] sm:$0xf] }
  0x3d   : > { %v375_v39 = vsel %vm4240_vm4, %v370_v17, %v374_v9  ;;  %v1343_v47 = vrot.slane %v1342_v28, 4  ;;  %v379_v48 = vrot.slane %v377_v30, 4  ;;  %v382_v49 = vrot.slane %v380_v34, 5  ;;  %3835 = vmatprep.subr.msk.bf16.mxu0 %vm547_vm0, %v4231_v26 }
  0x3e   : > { %v3142_v46 = vcombine.low %v365_v24, %v375_v39  ;;  %v1352_v37 = vor.u32 %v1351_v40, %v1347_v20  ;;  %v388_v51 = vrot.slane %v386_v43, 5  ;;  %v390_v53 = vshrl.u32 %v4331_v19, 16  ;;  %v4377_v39 = vld [vmem:[%s4201_s14 + $0x38] sm:$0x1] }
  0x3f   : > { %v396_v54 = vshll.u32 %v4341_v29, 16  ;;  %v1348_v55 = vsel %vm4240_vm4, %v1343_v47, %v1347_v20  ;;  %v383_v56 = vor.u32 %v382_v49, %v379_v48  ;;  %v1360_v59 = vshrl.u32 %v3241_v45, 16 }
  0x40   : > { %3542 = vmatprep.mubr.msk.bf16.mxu1 %vm522_vm3, %v3142_v46  ;;  %v1363_v0 = vshll.u32 %v3241_v45, 16  ;;  %v1353_v2 = vrot.slane %v1352_v37, 4  ;;  %v392_v26 = vrot.slane %v390_v53, 4  ;;  %v1369_v5 = vshll.u32 %v4351_v50, 16  ;;  %v3273_v37 = vld [vmem:[%s4201_s14 + $0xc] sm:$0xe] }
  0x41   : > { %v398_v4 = vrot.slane %v396_v54, 5  ;;  %v384_v9 = vrot.slane %v383_v56, 4  ;;  %v1362_v10 = vrot.slane %v1360_v59, 4  ;;  %v1373_v13 = vshrl.u32 %v4351_v50, 16  ;;  %v4389_v56 = vld [vmem:[%s4201_s14 + $0x3c] sm:$0xf] }
  0x42   : > { %v1365_v12 = vrot.slane %v1363_v0, 5  ;;  %v1358_v18 = vsel %vm4240_vm4, %v1353_v2, %v1357_v42  ;;  %v393_v17 = vor.u32 %v392_v26, %v388_v51  ;;  %v1371_v20 = vrot.slane %v1369_v5, 5 }
  0x43   : > { %v1379_v22 = vshll.u32 %v4361_v58, 16  ;;  %v3259_v24 = vcombine.low %v1348_v55, %v1358_v18  ;;  %v389_v28 = vsel %vm4240_vm4, %v384_v9, %v388_v51  ;;  %v1375_v34 = vrot.slane %v1373_v13, 4  ;;  %v4403_v18 = vld [vmem:[%s4201_s14 + $0x44] sm:$0x1] }
  0x44   : > { %v1366_v30 = vor.u32 %v1365_v12, %v1362_v10  ;;  %v394_v40 = vrot.slane %v393_v17, 4  ;;  %v401_v42 = vshrl.u32 %v4366_v14, 16  ;;  %v404_v45 = vshll.u32 %v4366_v14, 16  ;;  %v3274_v17 = vld [vmem:[%s4201_s14 + $0x18] sm:$0xe] }
  0x45   : > { %v1381_v43 = vrot.slane %v1379_v22, 5  ;;  %3614 = vmatprep.mubr.msk.bf16.mxu0 %vm522_vm3, %v3259_v24  ;;  %v1376_v47 = vor.u32 %v1375_v34, %v1371_v20  ;;  %v410_v48 = vshll.u32 %v4372_v23, 16  ;;  %v414_v49 = vshrl.u32 %v4372_v23, 16 }
  0x46   : > { %v1367_v46 = vrot.slane %v1366_v30, 4  ;;  %v399_v51 = vsel %vm4240_vm4, %v394_v40, %v398_v4  ;;  %v403_v53 = vrot.slane %v401_v42, 4  ;;  %v406_v54 = vrot.slane %v404_v45, 5  ;;  %v4400_v4 = vld [vmem:[%s4201_s14 + $0x40] sm:$0xf] }
  0x47   : > { %v420_v55 = vshll.u32 %v4377_v39, 16  ;;  %v3143_v59 = vcombine.low %v389_v28, %v399_v51  ;;  %v1377_v2 = vrot.slane %v1376_v47, 4  ;;  %v412_v26 = vrot.slane %v410_v48, 5  ;;  %v4414_v30 = vld [vmem:[%s4201_s14 + $0x48] sm:$0xf] }
  0x48   : > { %v1372_v0 = vsel %vm4240_vm4, %v1367_v46, %v1371_v20  ;;  %v407_v9 = vor.u32 %v406_v54, %v403_v53  ;;  %v416_v10 = vrot.slane %v414_v49, 4  ;;  %v3281_v13 = vrot.slane %v3273_v37, 9 }
  0x49   : > { %v422_v12 = vrot.slane %v420_v55, 5  ;;  %3543 = vmatmul.mubr.msk.bf16.gmra.mrb[4].mxu1 %vm522_vm3, %v3143_v59  ;;  %v1382_v20 = vsel %vm4240_vm4, %v1377_v2, %v1381_v43  ;;  %v1681_v22 = vrot.slane %v1679_v62, 4  ;;  %v425_v24 = vshrl.u32 %v4389_v56, 16  ;;  %v4434_v55 = vld [vmem:[%s4201_s14 + $0x50] sm:$0x1] }
  0x4a   : > { %v428_v28 = vshll.u32 %v4389_v56, 16  ;;  %v3260_v34 = vcombine.low %v1372_v0, %v1382_v20  ;;  %v408_v40 = vrot.slane %v407_v9, 4  ;;  %v417_v42 = vor.u32 %v416_v10, %v412_v26 }
  0x4b   : > { %v1680_v45 = vsel %vm4395_vm7, %v3281_v13, %v1679_v62  ;;  %v1683_v43 = vsel %vm4395_vm7, %v1681_v22, %v1682_v63  ;;  %v427_v46 = vrot.slane %v425_v24, 4  ;;  %v434_v48 = vshll.u32 %v4400_v4, 16  ;;  %v4430_v62 = vld [vmem:[%s4201_s14 + $0x4c] sm:$0xf] }
  0x4c   : > { %v430_v47 = vrot.slane %v428_v28, 5  ;;  %3615 = vmatmul.mubr.msk.bf16.gmra.mrb[4].mxu0 %vm522_vm3, %v3260_v34  ;;  %v413_v49 = vsel %vm4240_vm4, %v408_v40, %v412_v26  ;;  %v418_v37 = vrot.slane %v417_v42, 4  ;;  %v3290_v15 = vcombine.low %v1680_v45, %v1683_v43  ;;  %v4452_v28 = vld [vmem:[%s4201_s14 + $0x54] sm:$0xf]  ;;  %v4463_v34 = vld [vmem:[%s5229_s1 + $0xe] sm:$0x3] }
  0x4d   : > { %v438_v51 = vshrl.u32 %v4400_v4, 16  ;;  %v436_v53 = vrot.slane %v434_v48, 5  ;;  %v444_v63 = vshll.u32 %v4403_v18, 16  ;;  %v3282_v54 = vrot.slane %v3274_v17, 9 }
  0x4e   : > { %v431_v16 = vor.u32 %v430_v47, %v427_v46  ;;  %v423_v59 = vsel %vm4240_vm4, %v418_v37, %v422_v12  ;;  %3628 = vmatprep.mubr.msk.bf16.mxu0 %vm522_vm3, %v3290_v15  ;;  %v1690_v2 = vsel %vm4395_vm7, %v4296_v35, %v1689_v33  ;;  %v449_v26 = vshrl.u32 %v4414_v30, 16  ;;  %v3275_v12 = vld [vmem:[%s4201_s14 + $0x24] sm:$0xe]  ;;  %v4468_v37 = vld [vmem:[%s4201_s14 + $0x58] sm:$0xf] }
  0x4f   : > { %v440_v0 = vrot.slane %v438_v51, 4  ;;  %v3144_v9 = vcombine.low %v413_v49, %v423_v59  ;;  %v446_v13 = vrot.slane %v444_v63, 5  ;;  %v1687_v17 = vsel %vm4395_vm7, %v3282_v54, %v1686_v25  ;;  %v4477_v54 = vld [vmem:[%s4201_s14 + $0x5c] sm:$0x1] }
  0x50   : > { %v432_v10 = vrot.slane %v431_v16, 4  ;;  %v3291_v22 = vcombine.low %v1687_v17, %v1690_v2  ;;  %v451_v24 = vrot.slane %v449_v26, 4  ;;  %v452_v1 = vshll.u32 %v4414_v30, 16 }
  0x51   : > { %v441_v20 = vor.u32 %v440_v0, %v436_v53  ;;  %3546 = vmatprep.mubr.msk.bf16.mxu1 %vm522_vm3, %v3144_v9  ;;  %v458_v35 = vshll.u32 %v4430_v62, 16  ;;  %v462_v60 = vshrl.u32 %v4430_v62, 16  ;;  %v468_v25 = vshll.u32 %v4434_v55, 16 }
  0x52   : > { %v437_v33 = vsel %vm4240_vm4, %v432_v10, %v436_v53  ;;  %v454_v42 = vrot.slane %v452_v1, 5  ;;  %v3283_v45 = vrot.slane %v3275_v12, 9  ;;  %v1693_v43 = vrot.slane %v4309_v52, 5  ;;  %v3276_v10 = vld [vmem:[%s4201_s14 + $0x30] sm:$0xe] }
  0x53   : > { %v442_v40 = vrot.slane %v441_v20, 4  ;;  %v460_v46 = vrot.slane %v458_v35, 5  ;;  %v464_v47 = vrot.slane %v462_v60, 4  ;;  %v470_v48 = vrot.slane %v468_v25, 5 }
  0x54   : > { %v1696_v49 = vrot.slane %v4321_v61, 5  ;;  %3629 = vmatmul.mubr.msk.bf16.vlgmr.msra.gmra.mrb[0].mxu0 %vm522_vm3, %v3291_v22  ;;  %v455_v51 = vor.u32 %v454_v42, %v451_v24  ;;  %v1694_v16 = vsel %vm4395_vm7, %v3283_v45, %v1693_v43  ;;  %v1695_v53 = vrot.slane %v1693_v43, 4  ;;  %v4498_v42 = vld [vmem:[%s4201_s14 + $0x40] sm:$0xf]  ;;  %v4501_v45 = vld [vmem:[%s4201_s14 + $0x44] sm:$0x1] }
  0x55   : > { %v447_v15 = vsel %vm4240_vm4, %v442_v40, %v446_v13  ;;  %3645 = vmatpush3.bf16.msra.mxu0 %v4252_v41  ;;  %v465_v52 = vor.u32 %v464_v47, %v460_v46  ;;  %v473_v61 = vshrl.u32 %v4452_v28, 16  ;;  %v476_v59 = vshll.u32 %v4452_v28, 16 }
  0x56   : > { %v3145_v63 = vcombine.low %v437_v33, %v447_v15  ;;  %v456_v0 = vrot.slane %v455_v51, 4  ;;  %v1697_v2 = vsel %vm4395_vm7, %v1695_v53, %v1696_v49  ;;  %v482_v26 = vshll.u32 %v4468_v37, 16  ;;  %3836 = vmatprep.subr.msk.bf16.mxu0 %vm547_vm0, %v4463_v34  ;;  %v3277_v33 = vld [vmem:[%s4201_s14 + $0x3c] sm:$0xe] }
  0x57   : > { %v486_v9 = vshrl.u32 %v4468_v37, 16  ;;  %v466_v41 = vrot.slane %v465_v52, 4  ;;  %v3292_v13 = vcombine.low %v1694_v16, %v1697_v2  ;;  %v475_v17 = vrot.slane %v473_v61, 4  ;;  %v3278_v2 = vld [vmem:[%s4201_s14 + $0x48] sm:$0xe] }
  0x58   : > { %3547 = vmatmul.mubr.msk.bf16.gmra.mrb[8].mxu1 %vm522_vm3, %v3145_v63  ;;  %v478_v12 = vrot.slane %v476_v59, 5  ;;  %v461_v20 = vsel %vm4240_vm4, %v456_v0, %v460_v46  ;;  %v484_v22 = vrot.slane %v482_v26, 5  ;;  %v492_v1 = vshll.u32 %v4477_v54, 16  ;;  %v4516_v59 = vld [vmem:[%s4201_s14 + $0x4c] sm:$0xf] }
  0x59   : > { %v488_v24 = vrot.slane %v486_v9, 4  ;;  %v471_v35 = vsel %vm4240_vm4, %v466_v41, %v470_v48  ;;  %3632 = vmatprep.mubr.msk.bf16.mxu0 %vm522_vm3, %v3292_v13  ;;  %v3284_v25 = vrot.slane %v3276_v10, 9  ;;  %v1700_v40 = vrot.slane %v4351_v50, 5  ;;  %v4519_v0 = vld [vmem:[%s4201_s14 + $0x50] sm:$0x1] }
  0x5a   : > { %v479_v60 = vor.u32 %v478_v12, %v475_v17  ;;  %v3146_v43 = vcombine.low %v461_v20, %v471_v35  ;;  %v494_v47 = vrot.slane %v492_v1, 5  ;;  %v1703_v49 = vrot.slane %v4361_v58, 5  ;;  %v4527_v17 = vld [vmem:[%s4201_s14 + $0x58] sm:$0xf]  ;;  %v4530_v12 = vld [vmem:[%s4201_s14 + $0x5c] sm:$0x1] }
  0x5b   : > { %v489_v46 = vor.u32 %v488_v24, %v484_v22  ;;  %v1701_v48 = vsel %vm4395_vm7, %v3284_v25, %v1700_v40  ;;  %v1702_v51 = vrot.slane %v1700_v40, 4  ;;  %v3285_v16 = vrot.slane %v3277_v33, 9  ;;  %5246 = vst [vmem:[#allocation8_spill] sm:$0xff] %v4530_v12  ;;  %v4540_v35 = vld [vmem:[%s4201_s14 + $0x64] sm:$0xf] }
  0x5c   : > { %v480_v15 = vrot.slane %v479_v60, 4  ;;  %3550 = vmatprep.mubr.msk.bf16.mxu1 %vm522_vm3, %v3146_v43  ;;  %v1707_v53 = vrot.slane %v4498_v42, 5  ;;  %v1710_v63 = vrot.slane %v4501_v45, 5  ;;  %v3156_v61 = vcombine.low %v4204_v6, %v4207_v7  ;;  %v3279_v6 = vld [vmem:[%s4201_s14 + $0x54] sm:$0xe]  ;;  %5247 = vst [vmem:[#allocation9_spill] sm:$0xff] %v4540_v35 }
  0x5d   : > { %v490_v50 = vrot.slane %v489_v46, 4  ;;  %v1704_v58 = vsel %vm4395_vm7, %v1702_v51, %v1703_v49  ;;  %v1714_v24 = vrot.slane %v4516_v59, 5  ;;  %v1717_v1 = vrot.slane %v4519_v0, 5  ;;  %v4543_v60 = vld [vmem:[%s4201_s14 + $0x68] sm:$0x1] }
  0x5e   : > { %v485_v52 = vsel %vm4240_vm4, %v480_v15, %v484_v22  ;;  %v3293_v9 = vcombine.low %v1701_v48, %v1704_v58  ;;  %v1708_v10 = vsel %vm4395_vm7, %v3285_v16, %v1707_v53  ;;  %v1709_v41 = vrot.slane %v1707_v53, 4  ;;  %5248 = vst [vmem:[#allocation10_spill] sm:$0xff] %v4543_v60 }
  0x5f   : > { %v495_v26 = vsel %vm4240_vm4, %v490_v50, %v494_v47  ;;  %v3286_v22 = vrot.slane %v3278_v2, 9  ;;  %v1716_v40 = vrot.slane %v1714_v24, 4  ;;  %v3287_v43 = vrot.slane %v3279_v6, 9  ;;  %v3280_v47 = vld [vmem:[%s4201_s14 + $0x60] sm:$0xe] }
  0x60   : > { %v3147_v13 = vcombine.low %v485_v52, %v495_v26  ;;  %3633 = vmatmul.mubr.msk.bf16.gmra.mrb[4].mxu0 %vm522_vm3, %v3293_v9  ;;  %v1711_v20 = vsel %vm4395_vm7, %v1709_v41, %v1710_v63  ;;  %v1721_v46 = vrot.slane %v4527_v17, 5  ;;  %v848_v49 = vrot.slane %v4245_v36, 5  ;;  %v814_v2 = vld [vmem:[%s4201_s14 + $0x18] sm:$0xe]  ;;  %v4575_v6 = vld [vmem:[%s5229_s1 + $0x6] sm:$0x3] }
  0x61   : > { %v3294_v33 = vcombine.low %v1708_v10, %v1711_v20  ;;  %v1715_v25 = vsel %vm4395_vm7, %v3286_v22, %v1714_v24  ;;  %v1724_v15 = vrot.slane %v4530_v12, 5  ;;  %v1718_v48 = vsel %vm4395_vm7, %v1716_v40, %v1717_v1  ;;  %v816_v1 = vld [vmem:[%s4201_s14 + $0x30] sm:$0xe] }
  0x62   : > { %3551 = vmatmul.mubr.msk.bf16.gmra.mrb[12].mxu1 %vm522_vm3, %v3147_v13  ;;  %v1722_v51 = vsel %vm4395_vm7, %v3287_v43, %v1721_v46  ;;  %v1723_v16 = vrot.slane %v1721_v46, 4  ;;  %v1728_v50 = vrot.slane %v4540_v35, 5  ;;  %v3157_v53 = vcombine.low %v4236_v31, %v4245_v36  ;;  %v815_v36 = vld [vmem:[%s4201_s14 + $0x24] sm:$0xe]  ;;  %v4849_v12 = vld [vmem:[%s4201_s14 + $0x70] sm:$0xf] }
  0x63   : > { %3556 = vmatprep.mubr.msk.bf16.mxu1 %vm522_vm3, %v3156_v61  ;;  %3636 = vmatprep.mubr.msk.bf16.mxu0 %vm522_vm3, %v3294_v33  ;;  %v3295_v63 = vcombine.low %v1715_v25, %v1718_v48  ;;  %v3288_v52 = vrot.slane %v3280_v47, 9  ;;  %v1731_v58 = vrot.slane %v4543_v60, 5  ;;  %v813_v61 = vld [vmem:[%s4201_s14 + $0xc] sm:$0xe]  ;;  %v851_v26 = vrot.slane %v4255_v44, 5 }
  0x64   : > { %v3158_v9 = vcombine.low %v4284_v21, %v4291_v27  ;;  %v1725_v10 = vsel %vm4395_vm7, %v1723_v16, %v1724_v15  ;;  %v1730_v41 = vrot.slane %v1728_v50, 4  ;;  %v946_v13 = vsel %vm547_vm0, %v4315_v57, 0  ;;  %v3920_v16 = vld [vmem:[%s4201_s14 + $0x18] sm:$0xff]   ;;  %v4821_v60 = vld [vmem:[%s4201_s14 + $0x64] sm:$0xf] }
  0x65   : > { %v3296_v31 = vcombine.low %v1722_v51, %v1725_v10  ;;  %v3173_v44 = vrot.slane %v813_v61, 9  ;;  %v850_v20 = vrot.slane %v848_v49, 4  ;;  %v3174_v21 = vrot.slane %v814_v2, 9  ;;  %5249 = vst [vmem:[#allocation11_spill] sm:$0xff] %v4821_v60 }
  0x66   : > { %v1729_v22 = vsel %vm4395_vm7, %v3288_v52, %v1728_v50  ;;  %v1732_v57 = vsel %vm4395_vm7, %v1730_v41, %v1731_v58  ;;  %v855_v24 = vrot.slane %v4291_v27, 5  ;;  %v858_v40 = vrot.slane %v4299_v38, 5 }
  0x67   : > { %v4588_v33 = vsel %vm4395_vm7, %v3173_v44, %v848_v49  ;;  %v4592_v25 = vsel %vm4395_vm7, %v850_v20, %v851_v26  ;;  %v3175_v43 = vrot.slane %v815_v36, 9  ;;  %v3297_v49 = vcombine.low %v1729_v22, %v1732_v57  ;;  %v3341_v26 = vld [vmem:[%s4201_s14 + $0x18] sm:$0xf]  ;;  %v3922_v57 = vld [vmem:[%s4201_s14 + $0x24] sm:$0xff]  }
  0x68   : > { %3637 = vmatmul.mubr.msk.bf16.gmra.mrb[8].mxu0 %vm522_vm3, %v3295_v63  ;;  %v3182_v27 = vcombine.low %v4588_v33, %v4592_v25  ;;  %v4601_v46 = vsel %vm4395_vm7, %v3174_v21, %v855_v24  ;;  %v857_v47 = vrot.slane %v855_v24, 4  ;;  %v862_v15 = vrot.slane %v4331_v19, 5 }
  0x69   : > { %3640 = vmatprep.mubr.msk.bf16.mxu0 %vm522_vm3, %v3296_v31  ;;  %v865_v48 = vrot.slane %v4341_v29, 5  ;;  %v3176_v38 = vrot.slane %v816_v1, 9  ;;  %v3159_v51 = vcombine.low %v4328_v11, %v4331_v19  ;;  %v872_v63 = vrot.slane %v4377_v39, 5  ;;  %v817_v19 = vld [vmem:[%s4201_s14 + $0x3c] sm:$0xe] }
  0x6a   : > { %3557 = vmatmul.mubr.msk.bf16.vlgmr.msra.gmra.mrb[0].mxu1 %vm522_vm3, %v3157_v53  ;;  %v4610_v50 = vsel %vm4395_vm7, %v857_v47, %v858_v40  ;;  %v869_v53 = vrot.slane %v4372_v23, 5  ;;  %v3160_v52 = vcombine.low %v4366_v14, %v4372_v23  ;;  %v4620_v58 = vsel %vm4395_vm7, %v3175_v43, %v862_v15  ;;  %v812_v14 = vld [vmem:[%s4201_s14] sm:$0xe]  ;;  %v4648_v31 = vld [vmem:[%s4201_s14 + $0x1c] sm:$0xf] }
  0x6b   : > { %3573 = vmatpush3.bf16.msra.mxu1 %v946_v13  ;;  %3560 = vmatprep.mubr.msk.bf16.mxu1 %vm522_vm3, %v3158_v9  ;;  %v3183_v29 = vcombine.low %v4601_v46, %v4610_v50  ;;  %v864_v11 = vrot.slane %v862_v15, 4  ;;  %v841_v61 = vrot.slane %v4207_v7, 5  ;;  %v3177_v10 = vrot.slane %v817_v19, 9  ;;  %v818_v1 = vld [vmem:[%s4201_s14 + $0x48] sm:$0xe] }
  0x6c   : > { %3831 = vmatprep.subr.msk.bf16.mxu1 %vm547_vm0, %v4575_v6  ;;  %v4626_v2 = vsel %vm4395_vm7, %v3176_v38, %v869_v53  ;;  %v871_v39 = vrot.slane %v869_v53, 4  ;;  %v844_v41 = vrot.slane %v4210_v8, 5  ;;  %v3172_v36 = vrot.slane %v812_v14, 9  ;;  %v4674_v38 = vld [vmem:[%s5229_s1 + $0x10] sm:$0x3] }
  0x6d   : > { %v4632_v23 = vsel %vm4395_vm7, %v864_v11, %v865_v48  ;;  %v843_v44 = vrot.slane %v841_v61, 4  ;;  %v876_v20 = vrot.slane %v4400_v4, 5  ;;  %v879_v21 = vrot.slane %v4403_v18, 5  ;;  %v4695_v14 = vld [vmem:[%s4201_s14 + $0x28] sm:$0xf] }
  0x6e   : > { %v4641_v9 = vsel %vm4395_vm7, %v871_v39, %v872_v63  ;;  %v3161_v22 = vcombine.low %v4389_v56, %v4400_v4  ;;  %v2126_v24 = vshrl.u32 %v3341_v26, 16  ;;  %v2129_v8 = vshll.u32 %v3341_v26, 16  ;;  %v3924_v4 = vld [vmem:[%s4201_s14 + $0x30] sm:$0xff]   ;;  %v4797_v46 = vld [vmem:[%s4201_s14 + $0x44] sm:$0x1] }
  0x6f   : > { %v2135_v40 = vshll.u32 %v4648_v31, 16  ;;  %v2139_v43 = vshrl.u32 %v4648_v31, 16  ;;  %v4660_v47 = vsel %vm4395_vm7, %v3177_v10, %v876_v20  ;;  %v2368_v18 = vsel %vm547_vm0, %v4463_v34, 0  ;;  %v3359_v7 = vld [vmem:[%s4201_s14 + $0x60] sm:$0xf] }
  0x70   : > { %3641 = vmatmul.mubr.msk.bf16.gmra.mrb[12].mxu0 %vm522_vm3, %v3297_v49  ;;  %v878_v49 = vrot.slane %v876_v20, 4  ;;  %v3162_v56 = vcombine.low %v4414_v30, %v4430_v62  ;;  %v842_v15 = vsel %vm4395_vm7, %v3172_v36, %v841_v61  ;;  %v845_v48 = vsel %vm4395_vm7, %v843_v44, %v844_v41  ;;  %v4682_v30 = vld [vmem:[%s4201_s14 + $0x20] sm:$0x1]  ;;  %v3344_v61 = vld [vmem:[%s4201_s14 + $0x24] sm:$0xf] }
  0x71   : > { %3646 = vmatprep.mubr.msk.bf16.mxu0 %vm522_vm3, %v3920_v16  ;;  %v3178_v34 = vrot.slane %v818_v1, 9  ;;  %v2128_v16 = vrot.slane %v2126_v24, 4  ;;  %v2131_v53 = vrot.slane %v2129_v8, 5  ;;  %v4688_v11 = vrot.slane %v2135_v40, 5  ;;  %v819_v44 = vld [vmem:[%s4201_s14 + $0x54] sm:$0xe] }
  0x72   : > { %3561 = vmatmul.mubr.msk.bf16.gmra.mrb[4].mxu1 %vm522_vm3, %v3159_v51  ;;  %v4678_v51 = vsel %vm4395_vm7, %v878_v49, %v879_v21  ;;  %v2141_v19 = vrot.slane %v2139_v43, 4  ;;  %v886_v39 = vrot.slane %v4434_v55, 5  ;;  %v3163_v10 = vcombine.low %v4452_v28, %v4468_v37  ;;  %v3347_v55 = vld [vmem:[%s4201_s14 + $0x30] sm:$0xf]  ;;  %v3926_v20 = vld [vmem:[%s4201_s14 + $0x3c] sm:$0xff]   ;;  %v3927_v1 = vld [vmem:[%s4201_s14 + $0x48] sm:$0xff]  }
  0x73   : > { %3564 = vmatprep.mubr.msk.bf16.mxu1 %vm522_vm3, %v3160_v52  ;;  %v883_v52 = vrot.slane %v4430_v62, 5  ;;  %v3181_v41 = vcombine.low %v842_v15, %v845_v48  ;;  %v2145_v36 = vshll.u32 %v4682_v30, 16  ;;  %v2132_v21 = vor.u32 %v2131_v53, %v2128_v16  ;;  %v4714_v8 = vld [vmem:[%s4201_s14 + $0x34] sm:$0xf] }
  0x74   : > { %v2142_v28 = vor.u32 %v2141_v19, %v4688_v11  ;;  %v2159_v40 = vshll.u32 %v4695_v14, 16  ;;  %v2163_v43 = vshrl.u32 %v4695_v14, 16  ;;  %v890_v15 = vrot.slane %v4468_v37, 5 }
  0x75   : > { %v4699_v62 = vsel %vm4395_vm7, %v3178_v34, %v883_v52  ;;  %v885_v26 = vrot.slane %v883_v52, 4  ;;  %v2183_v48 = vshll.u32 %v4714_v8, 16  ;;  %v2187_v34 = vshrl.u32 %v4714_v8, 16 }
  0x76   : > { %v893_v16 = vrot.slane %v4477_v54, 5  ;;  %v2133_v53 = vrot.slane %v2132_v21, 4  ;;  %v2147_v52 = vrot.slane %v2145_v36, 5  ;;  %v2143_v37 = vrot.slane %v2142_v28, 4  ;;  %v4737_v36 = vld [vmem:[%s4201_s14 + $0x2c] sm:$0x1] }
  0x77   : > { %v4711_v24 = vsel %vm4395_vm7, %v885_v26, %v886_v39  ;;  %v4733_v26 = vrot.slane %v2159_v40, 5  ;;  %v4744_v21 = vld [vmem:[%s4201_s14 + $0x38] sm:$0x1]  ;;  %v1148_v28 = vsel %vm547_vm0, %v4575_v6, 0 }
  0x78   : > { %3647 = vmatmul.mubr.msk.bf16.vlgmr.msra.gmra.mrb[0].mxu0 %vm522_vm3, %v3922_v57  ;;  %v2153_v57 = vshll.u32 %v3344_v61, 16  ;;  %v3928_v40 = vld [vmem:[%s4201_s14 + $0x54] sm:$0xff]  }
  0x79   : > { %3663 = vmatpush3.bf16.msra.mxu0 %v2368_v18  ;;  %3650 = vmatprep.mubr.msk.bf16.mxu0 %vm522_vm3, %v3924_v4  ;;  %v2174_v18 = vshrl.u32 %v3347_v55, 16  ;;  %v3179_v4 = vrot.slane %v819_v44, 9 }
  0x7a   : > { %3565 = vmatmul.mubr.msk.bf16.gmra.mrb[8].mxu1 %vm522_vm3, %v3161_v22  ;;  %3837 = vmatprep.subr.msk.bf16.mxu0 %vm547_vm0, %v4674_v38  ;;  %v2150_v22 = vshrl.u32 %v3344_v61, 16  ;;  %v892_v61 = vrot.slane %v890_v15, 4  ;;  %v2155_v54 = vrot.slane %v2153_v57, 5  ;;  %v2189_v57 = vrot.slane %v2187_v34, 4  ;;  %v3353_v34 = vld [vmem:[%s4201_s14 + $0x48] sm:$0xf] }
  0x7b   : > { %3568 = vmatprep.mubr.msk.bf16.mxu1 %vm522_vm3, %v3162_v56  ;;  %v2177_v56 = vshll.u32 %v3347_v55, 16  ;;  %v4729_v19 = vsel %vm4395_vm7, %v3179_v4, %v890_v15  ;;  %v2165_v55 = vrot.slane %v2163_v43, 4  ;;  %v2176_v44 = vrot.slane %v2174_v18, 4  ;;  %v4755_v43 = vld [vmem:[%s4201_s14 + $0x40] sm:$0xf] }
  0x7c   : > { %v2152_v39 = vrot.slane %v2150_v22, 4  ;;  %v4746_v22 = vrot.slane %v2183_v48, 5  ;;  %v3929_v18 = vld [vmem:[%s4201_s14 + $0x60] sm:$0xff]   ;;  %v2148_v4 = vsel %vm4240_vm4, %v2143_v37, %v2147_v52  ;;  %v2169_v48 = vshll.u32 %v4737_v36, 16 }
  0x7d   : > { %v2222_v52 = vshrl.u32 %v3353_v34, 16  ;;  %v2225_v37 = vshll.u32 %v3353_v34, 16 }
  0x7e   : > { %v2156_v15 = vor.u32 %v2155_v54, %v2152_v39  ;;  %v2190_v63 = vor.u32 %v2189_v57, %v4746_v22  ;;  %v3356_v57 = vld [vmem:[%s4201_s14 + $0x54] sm:$0xf] }
  0x7f   : > { %v2224_v50 = vrot.slane %v2222_v52, 4  ;;  %v2249_v34 = vshll.u32 %v3356_v57, 16 }
  0x80   : > { %3651 = vmatmul.mubr.msk.bf16.gmra.mrb[4].mxu0 %vm522_vm3, %v3926_v20  ;;  %v2179_v20 = vrot.slane %v2177_v56, 5  ;;  %v2138_v56 = vsel %vm4240_vm4, %v2133_v53, %v4688_v11  ;;  %v2207_v11 = vshll.u32 %v4755_v43, 16  ;;  %v2211_v53 = vshrl.u32 %v4755_v43, 16 }
  0x81   : > { %3654 = vmatprep.mubr.msk.bf16.mxu0 %vm522_vm3, %v3927_v1  ;;  %v2193_v1 = vshll.u32 %v4744_v21, 16  ;;  %v3366_v54 = vcombine.low %v2138_v56, %v2148_v4  ;;  %v2191_v56 = vrot.slane %v2190_v63, 4  ;;  %v4802_v63 = vld [vmem:[%s4201_s14 + $0x50] sm:$0x1] }
  0x82   : > { %3569 = vmatmul.mubr.msk.bf16.gmra.mrb[12].mxu1 %vm522_vm3, %v3163_v10  ;;  %v4741_v10 = vsel %vm4395_vm7, %v892_v61, %v893_v16  ;;  %v4766_v16 = vld [vmem:[%s4201_s14 + $0x4c] sm:$0xf]  ;;  %v2166_v61 = vor.u32 %v2165_v55, %v4733_v26  ;;  %v2180_v6 = vor.u32 %v2179_v20, %v2176_v44  ;;  %v2157_v55 = vrot.slane %v2156_v15, 4 }
  0x83   : > { %3574 = vmatprep.mubr.msk.bf16.mxu1 %vm522_vm3, %v3181_v41  ;;  %v3350_v41 = vld [vmem:[%s4201_s14 + $0x3c] sm:$0xf]  ;;  %v2231_v39 = vshll.u32 %v4766_v16, 16  ;;  %v2171_v44 = vrot.slane %v2169_v48, 5  ;;  %v2235_v20 = vshrl.u32 %v4766_v16, 16  ;;  %v2195_v33 = vrot.slane %v2193_v1, 5 }
  0x84   : > { %v2198_v49 = vshrl.u32 %v3350_v41, 16  ;;  %v2201_v13 = vshll.u32 %v3350_v41, 16  ;;  %v2167_v41 = vrot.slane %v2166_v61, 4  ;;  %v4790_v15 = vrot.slane %v2207_v11, 5 }
  0x85   : > { %v2213_v48 = vrot.slane %v2211_v53, 4  ;;  %v2246_v1 = vshrl.u32 %v3356_v57, 16  ;;  %v1417_v11 = vshll.u32 %v4516_v59, 16  ;;  %v2162_v53 = vsel %vm4240_vm4, %v2157_v55, %v4733_v26 }
  0x86   : > { %v2200_v25 = vrot.slane %v2198_v49, 4  ;;  %v2203_v4 = vrot.slane %v2201_v13, 5  ;;  %v4799_v49 = vrot.slane %v2231_v39, 5  ;;  %v2237_v13 = vrot.slane %v2235_v20, 4 }
  0x87   : > { %v2172_v52 = vsel %vm4240_vm4, %v2167_v41, %v2171_v44  ;;  %v2214_v57 = vor.u32 %v2213_v48, %v4790_v15  ;;  %v2196_v26 = vsel %vm4240_vm4, %v2191_v56, %v2195_v33  ;;  %v2248_v44 = vrot.slane %v2246_v1, 4  ;;  %v4840_v56 = vld [vmem:[%s4201_s14 + $0x5c] sm:$0x1] }
  0x88   : > { %3655 = vmatmul.mubr.msk.bf16.gmra.mrb[8].mxu0 %vm522_vm3, %v3928_v40  ;;  %v2181_v40 = vrot.slane %v2180_v6, 4  ;;  %v2204_v20 = vor.u32 %v2203_v4, %v2200_v25  ;;  %v2238_v41 = vor.u32 %v2237_v13, %v4799_v49  ;;  %v5251_v33 = vcombine.low %v4626_v2, %v4641_v9 }
  0x89   : > { %3658 = vmatprep.mubr.msk.bf16.mxu0 %vm522_vm3, %v3929_v18  ;;  %v3930_v18 = vld [vmem:[%s4201_s14 + $0x6c] sm:$0xff]   ;;  %v2270_v4 = vshrl.u32 %v3359_v7, 16  ;;  %v1421_v48 = vshrl.u32 %v4516_v59, 16  ;;  %v3367_v13 = vcombine.low %v2162_v53, %v2172_v52 }
  0x8a   : > { %3575 = vmatmul.mubr.msk.bf16.vlgmr.msra.gmra.mrb[0].mxu1 %vm522_vm3, %v3182_v27  ;;  %v4787_v27 = vld [vmem:[%s4201_s14 + $0x58] sm:$0xf]  ;;  %v2186_v39 = vsel %vm4240_vm4, %v2181_v40, %v4746_v22  ;;  %v5250_v22 = vcombine.low %v4620_v58, %v4632_v23  ;;  %v2251_v40 = vrot.slane %v2249_v34, 5  ;;  %v2273_v58 = vshll.u32 %v3359_v7, 16 }
  0x8b   : > { %3591 = vmatpush3.bf16.msra.mxu1 %v1148_v28  ;;  %3578 = vmatprep.mubr.msk.bf16.mxu1 %vm522_vm3, %v3183_v29  ;;  %v3939_v28 = vld [vmem:[%s5229_s1 + $0x8] sm:$0x3]  ;;  %v2227_v29 = vrot.slane %v2225_v37, 5  ;;  %v2255_v61 = vshll.u32 %v4787_v27, 16  ;;  %v2259_v6 = vshrl.u32 %v4787_v27, 16  ;;  %v2622_v37 = vsel %vm547_vm0, %v4674_v38, 0 }
  0x8c   : > { %3833 = vmatprep.subr.msk.bf16.mxu1 %vm547_vm0, %v3939_v28  ;;  %v2217_v28 = vshll.u32 %v4797_v46, 16  ;;  %v2241_v38 = vshll.u32 %v4802_v63, 16  ;;  %v2279_v23 = vshll.u32 %v4821_v60, 16  ;;  %v3368_v34 = vcombine.low %v2186_v39, %v2196_v26 }
  0x8d   : > { %v2228_v55 = vor.u32 %v2227_v29, %v2224_v50  ;;  %v4833_v25 = vrot.slane %v2255_v61, 5  ;;  %v2205_v50 = vrot.slane %v2204_v20, 4  ;;  %v2215_v29 = vrot.slane %v2214_v57, 4 }
  0x8e   : > { %v2219_v1 = vrot.slane %v2217_v28, 5  ;;  %v2243_v9 = vrot.slane %v2241_v38, 5  ;;  %v2239_v61 = vrot.slane %v2238_v41, 4  ;;  %v2265_v7 = vshll.u32 %v4840_v56, 16  ;;  %v4861_v28 = vld [vmem:[%s4201_s14 + $0x68] sm:$0x1] }
  0x8f   : > { %v2229_v2 = vrot.slane %v2228_v55, 4  ;;  %v2272_v35 = vrot.slane %v2270_v4, 4  ;;  %v4851_v59 = vrot.slane %v2279_v23, 5  ;;  %v4853_v57 = vrot.slane %v1417_v11, 5 }
  0x90   : > { %3659 = vmatmul.mubr.msk.bf16.gmra.mrb[12].mxu0 %vm522_vm3, %v3930_v18  ;;  %v2261_v18 = vrot.slane %v2259_v6, 4  ;;  %v2252_v6 = vor.u32 %v2251_v40, %v2248_v44  ;;  %v1423_v53 = vrot.slane %v1421_v48, 4  ;;  %v2210_v52 = vsel %vm4240_vm4, %v2205_v50, %v4790_v15 }
  0x91   : > { %3664 = vmatprep.mubr.msk.bf16.mxu0 %vm522_vm3, %v3366_v54  ;;  %v2283_v54 = vshrl.u32 %v4821_v60, 16  ;;  %v2275_v60 = vrot.slane %v2273_v58, 5  ;;  %v2220_v39 = vsel %vm4240_vm4, %v2215_v29, %v2219_v1  ;;  %v2303_v38 = vshll.u32 %v4849_v12, 16  ;;  %v3931_v1 = vld [vmem:[%s4201_s14 + $0xc] sm:$0xff]  }
  0x92   : > { %3579 = vmatmul.mubr.msk.bf16.gmra.mrb[4].mxu1 %vm522_vm3, %v5250_v22  ;;  %v2262_v22 = vor.u32 %v2261_v18, %v4833_v25  ;;  %v2307_v44 = vshrl.u32 %v4849_v12, 16  ;;  %v5252_v11 = vcombine.low %v4660_v47, %v4678_v51  ;;  %v2234_v15 = vsel %vm4240_vm4, %v2229_v2, %v4799_v49 }
  0x93   : > { %3582 = vmatprep.mubr.msk.bf16.mxu1 %vm522_vm3, %v5251_v33  ;;  %v3362_v33 = vld [vmem:[%s4201_s14 + $0x6c] sm:$0xf]  ;;  %v2285_v20 = vrot.slane %v2283_v54, 4  ;;  %v2244_v41 = vsel %vm4240_vm4, %v2239_v61, %v2243_v9  ;;  %v2253_v40 = vrot.slane %v2252_v6, 4  ;;  %v2267_v18 = vrot.slane %v2265_v7, 5 }
  0x94   : > { %v2294_v26 = vshrl.u32 %v3362_v33, 16  ;;  %v2297_v55 = vshll.u32 %v3362_v33, 16  ;;  %v5253_v4 = vcombine.low %v4699_v62, %v4711_v24  ;;  %v2263_v47 = vrot.slane %v2262_v22, 4  ;;  %v3247_v22 = vld [vmem:[%s4201_s14 + $0x48] sm:$0xf] }
  0x95   : > { %v2276_v51 = vor.u32 %v2275_v60, %v2272_v35  ;;  %v2289_v49 = vshll.u32 %v4861_v28, 16  ;;  %v1424_v58 = vor.u32 %v1423_v53, %v4853_v57  ;;  %v1427_v23 = vshll.u32 %v4519_v0, 16  ;;  %v4890_v60 = vld [vmem:[%s4201_s14 + $0x74] sm:$0x1] }
  0x96   : > { %v3369_v54 = vcombine.low %v2210_v52, %v2220_v39  ;;  %v2296_v48 = vrot.slane %v2294_v26, 4  ;;  %v2299_v62 = vrot.slane %v2297_v55, 5  ;;  %v4884_v24 = vrot.slane %v2303_v38, 5 }
  0x97   : > { %v2309_v50 = vrot.slane %v2307_v44, 4  ;;  %v3370_v29 = vcombine.low %v2234_v15, %v2244_v41  ;;  %v2258_v35 = vsel %vm4240_vm4, %v2253_v40, %v4833_v25  ;;  %v2277_v0 = vrot.slane %v2276_v51, 4  ;;  %v3933_v51 = vld [vmem:[%s4201_s14 + $0x24] sm:$0xff]  }
  0x98   : > { %3665 = vmatmul.mubr.msk.bf16.vlgmr.msra.gmra.mrb[0].mxu0 %vm522_vm3, %v3367_v13  ;;  %v2268_v13 = vsel %vm4240_vm4, %v2263_v47, %v2267_v18  ;;  %v2291_v2 = vrot.slane %v2289_v49, 5  ;;  %v1425_v9 = vrot.slane %v1424_v58, 4  ;;  %v1429_v61 = vrot.slane %v1427_v23, 5 }
  0x99   : > { %3681 = vmatpush3.bf16.msra.mxu0 %v2622_v37  ;;  %3668 = vmatprep.mubr.msk.bf16.mxu0 %vm522_vm3, %v3368_v34  ;;  %v2286_v37 = vor.u32 %v2285_v20, %v4851_v59  ;;  %v2517_v6 = vrot.slane %v4648_v31, 5  ;;  %v2300_v7 = vor.u32 %v2299_v62, %v2296_v48  ;;  %v2310_v33 = vor.u32 %v2309_v50, %v4884_v24  ;;  %v3382_v20 = vld [vmem:[%s4201_s14 + $0x18] sm:$0xe]  ;;  %v3384_v62 = vld [vmem:[%s4201_s14 + $0x30] sm:$0xe] }
  0x9a   : > { %3583 = vmatmul.mubr.msk.bf16.gmra.mrb[8].mxu1 %vm522_vm3, %v5252_v11  ;;  %v2313_v25 = vshll.u32 %v4890_v60, 16  ;;  %v5254_v53 = vcombine.low %v4729_v19, %v4741_v10  ;;  %v3371_v52 = vcombine.low %v2258_v35, %v2268_v13  ;;  %v2282_v31 = vsel %vm4240_vm4, %v2277_v0, %v4851_v59  ;;  %v3932_v59 = vld [vmem:[%s4201_s14 + $0x18] sm:$0xff]  }
  0x9b   : > { %3586 = vmatprep.mubr.msk.bf16.mxu1 %vm522_vm3, %v5253_v4  ;;  %v2287_v34 = vrot.slane %v2286_v37, 4  ;;  %v1408_v26 = vshrl.u32 %v3247_v22, 16  ;;  %v1411_v55 = vshll.u32 %v3247_v22, 16  ;;  %v3390_v19 = vrot.slane %v3382_v20, 9  ;;  %v3244_v4 = vld [vmem:[%s4201_s14 + $0x3c] sm:$0xf] }
  0x9c   : > { %v2519_v10 = vrot.slane %v2517_v6, 4  ;;  %v2520_v38 = vrot.slane %v4682_v30, 5  ;;  %v1430_v44 = vsel %vm4240_vm4, %v1425_v9, %v1429_v61  ;;  %v2301_v11 = vrot.slane %v2300_v7, 4  ;;  %v3383_v30 = vld [vmem:[%s4201_s14 + $0x24] sm:$0xe]  ;;  %v3934_v22 = vld [vmem:[%s4201_s14 + $0x30] sm:$0xff]  }
  0x9d   : > { %v2292_v39 = vsel %vm4240_vm4, %v2287_v34, %v2291_v2  ;;  %v2311_v15 = vrot.slane %v2310_v33, 4  ;;  %v2315_v41 = vrot.slane %v2313_v25, 5  ;;  %v1410_v40 = vrot.slane %v1408_v26, 4  ;;  %v3935_v20 = vld [vmem:[%s4201_s14 + $0x3c] sm:$0xff]   ;;  %v3250_v26 = vld [vmem:[%s4201_s14 + $0x54] sm:$0xf] }
  0x9e   : > { %v3372_v18 = vcombine.low %v2282_v31, %v2292_v39  ;;  %v1413_v47 = vrot.slane %v1411_v55, 5  ;;  %v2518_v37 = vsel %vm4395_vm7, %v3390_v19, %v2517_v6  ;;  %v2521_v49 = vsel %vm4395_vm7, %v2519_v10, %v2520_v38  ;;  %v3386_v38 = vld [vmem:[%s4201_s14 + $0x48] sm:$0xe] }
  0x9f   : > { %v2524_v58 = vrot.slane %v4695_v14, 5  ;;  %v2316_v48 = vsel %vm4240_vm4, %v2311_v15, %v2315_v41  ;;  %v2531_v50 = vrot.slane %v4714_v8, 5  ;;  %v1387_v35 = vshll.u32 %v3244_v4, 16 }
  0xa0   : > { %3669 = vmatmul.mubr.msk.bf16.gmra.mrb[4].mxu0 %vm522_vm3, %v3369_v54  ;;  %v1414_v23 = vor.u32 %v1413_v47, %v1410_v40  ;;  %v2306_v54 = vsel %vm4240_vm4, %v2301_v11, %v4884_v24  ;;  %v1393_v14 = vshll.u32 %v4498_v42, 16  ;;  %v3391_v24 = vrot.slane %v3383_v30, 9 }
  0xa1   : > { %3672 = vmatprep.mubr.msk.bf16.mxu0 %vm522_vm3, %v3370_v29  ;;  %v1384_v29 = vshrl.u32 %v3244_v4, 16  ;;  %v2527_v8 = vrot.slane %v4737_v36, 5  ;;  %v3399_v0 = vcombine.low %v2518_v37, %v2521_v49  ;;  %v2526_v34 = vrot.slane %v2524_v58, 4  ;;  %v3936_v37 = vld [vmem:[%s4201_s14 + $0x48] sm:$0xff]  }
  0xa2   : > { %3587 = vmatmul.mubr.msk.bf16.gmra.mrb[12].mxu1 %vm522_vm3, %v5254_v53  ;;  %v1415_v13 = vrot.slane %v1414_v23, 4  ;;  %v3392_v2 = vrot.slane %v3384_v62, 9  ;;  %v3373_v61 = vcombine.low %v2306_v54, %v2316_v48  ;;  %v2533_v6 = vrot.slane %v2531_v50, 4  ;;  %v3937_v23 = vld [vmem:[%s4201_s14 + $0x54] sm:$0xff]  }
  0xa3   : > { %3592 = vmatprep.mubr.msk.bf16.mxu1 %vm522_vm3, %v3931_v1  ;;  %v1397_v1 = vshrl.u32 %v4498_v42, 16  ;;  %v2534_v42 = vrot.slane %v4744_v21, 5  ;;  %v1386_v7 = vrot.slane %v1384_v29, 4  ;;  %v1389_v33 = vrot.slane %v1387_v35, 5 }
  0xa4   : > { %v1420_v9 = vsel %vm4240_vm4, %v1415_v13, %v4853_v57  ;;  %v4946_v25 = vrot.slane %v1393_v14, 5  ;;  %v2525_v53 = vsel %vm4395_vm7, %v3391_v24, %v2524_v58  ;;  %v2528_v57 = vsel %vm4395_vm7, %v2526_v34, %v2527_v8  ;;  %v3387_v24 = vld [vmem:[%s4201_s14 + $0x54] sm:$0xe]  ;;  %v5255_v8 = vld [vmem:[#allocation11_spill] sm:$0xff] }
  0xa5   : > { %v1399_v36 = vrot.slane %v1397_v1, 4  ;;  %v2532_v21 = vsel %vm4395_vm7, %v3392_v2, %v2531_v50  ;;  %v2538_v31 = vrot.slane %v4755_v43, 5  ;;  %v1403_v39 = vshll.u32 %v4501_v45, 16  ;;  %v3253_v50 = vld [vmem:[%s4201_s14 + $0x60] sm:$0xf] }
  0xa6   : > { %v2535_v55 = vsel %vm4395_vm7, %v2533_v6, %v2534_v42  ;;  %v1390_v19 = vor.u32 %v1389_v33, %v1386_v7  ;;  %v3400_v43 = vcombine.low %v2525_v53, %v2528_v57  ;;  %v2541_v11 = vrot.slane %v4797_v46, 5  ;;  %v5257_v33 = vld [vmem:[#allocation8_spill] sm:$0xff] }
  0xa7   : > { %v1400_v10 = vor.u32 %v1399_v36, %v4946_v25  ;;  %v1432_v15 = vshrl.u32 %v3250_v26, 16  ;;  %v1435_v41 = vshll.u32 %v3250_v26, 16  ;;  %v1441_v40 = vshll.u32 %v4527_v17, 16 }
  0xa8   : > { %3673 = vmatmul.mubr.msk.bf16.gmra.mrb[8].mxu0 %vm522_vm3, %v3371_v52  ;;  %v3385_v52 = vld [vmem:[%s4201_s14 + $0x3c] sm:$0xe]  ;;  %v2540_v4 = vrot.slane %v2538_v31, 4  ;;  %v1405_v47 = vrot.slane %v1403_v39, 5  ;;  %v2548_v58 = vrot.slane %v4802_v63, 5  ;;  %v2552_v63 = vrot.slane %v4787_v27, 5 }
  0xa9   : > { %3676 = vmatprep.mubr.msk.bf16.mxu0 %vm522_vm3, %v3372_v18  ;;  %v3393_v45 = vrot.slane %v3385_v52, 9  ;;  %v3401_v18 = vcombine.low %v2532_v21, %v2535_v55  ;;  %v1401_v49 = vrot.slane %v1400_v10, 4  ;;  %v1434_v46 = vrot.slane %v1432_v15, 4  ;;  %v3388_v27 = vld [vmem:[%s4201_s14 + $0x60] sm:$0xe] }
  0xaa   : > { %3593 = vmatmul.mubr.msk.bf16.vlgmr.msra.gmra.mrb[0].mxu1 %vm522_vm3, %v3932_v59  ;;  %v1445_v59 = vshrl.u32 %v4527_v17, 16  ;;  %v1437_v54 = vrot.slane %v1435_v41, 5  ;;  %v1443_v48 = vrot.slane %v1441_v40, 5  ;;  %v2542_v29 = vsel %vm4395_vm7, %v2540_v4, %v2541_v11  ;;  %v3938_v52 = vld [vmem:[%s4201_s14 + $0x60] sm:$0xff]  }
  0xab   : > { %3699 = vmatpush3.bf16.msra.mxu1 %v4182_v3  ;;  %3596 = vmatprep.mubr.msk.bf16.mxu1 %vm522_vm3, %v3933_v51  ;;  %v4943_v3 = vcombine.low %v1420_v9, %v1430_v44  ;;  %v2545_v44 = vrot.slane %v4766_v16, 5  ;;  %v3394_v51 = vrot.slane %v3386_v38, 9  ;;  %v1391_v16 = vrot.slane %v1390_v19, 4  ;;  %v5256_v9 = vld [vmem:[#allocation9_spill] sm:$0xff] }
  0xac   : > { %v1447_v62 = vrot.slane %v1445_v59, 4  ;;  %v2539_v17 = vsel %vm4395_vm7, %v3393_v45, %v2538_v31  ;;  %v1406_v1 = vsel %vm4240_vm4, %v1401_v49, %v1405_v47  ;;  %v1456_v34 = vshrl.u32 %v3253_v50, 16  ;;  %v3389_v47 = vld [vmem:[%s4201_s14 + $0x6c] sm:$0xe]  ;;  %s3133_s14 = sshll.u32 %s4050_s21, 4 }
  0xad   : > { %v2547_v30 = vrot.slane %v2545_v44, 4  ;;  %v2546_v35 = vsel %vm4395_vm7, %v3394_v51, %v2545_v44  ;;  %v1396_v14 = vsel %vm4240_vm4, %v1391_v16, %v4946_v25  ;;  %v1459_v2 = vshll.u32 %v3253_v50, 16  ;;  %p264_p13 = scmp.lt.s32.totalorder %s3133_s14, 31 }
  0xae   : > { %v1469_v6 = vshrl.u32 %v5256_v9, 16  ;;  %v3402_v42 = vcombine.low %v2539_v17, %v2542_v29  ;;  %v1448_v7 = vor.u32 %v1447_v62, %v1443_v48  ;;  %v1451_v25 = vshll.u32 %v5257_v33, 16 }
  0xaf   : > { %v2549_v13 = vsel %vm4395_vm7, %v2547_v30, %v2548_v58  ;;  %v2554_v53 = vrot.slane %v2552_v63, 4  ;;  %v2555_v57 = vrot.slane %v4840_v56, 5  ;;  %v3261_v21 = vcombine.low %v1396_v14, %v1406_v1  ;;  %s5274_s14 = smov (!%p264_p13, %s3133_s14), 31 }
  0xb0   : > { %3677 = vmatmul.mubr.msk.bf16.gmra.mrb[12].mxu0 %vm522_vm3, %v3373_v61  ;;  %v1465_v61 = vshll.u32 %v5256_v9, 16  ;;  %v3403_v36 = vcombine.low %v2546_v35, %v2549_v13  ;;  %v3396_v31 = vrot.slane %v3388_v27, 9  ;;  %v2562_v26 = vrot.slane %v4861_v28, 5  ;;  %s267_s27 = sadd.s32 %s3134_s26, %s5274_s14  ;;  %s3433_s14 = sshll.u32 %s2963_s17, 4 }
  0xb1   : > { %3682 = vmatprep.mubr.msk.bf16.mxu0 %vm522_vm3, %v3399_v0  ;;  %v2559_v0 = vrot.slane %v5255_v8, 5  ;;  %v1458_v55 = vrot.slane %v1456_v34, 4  ;;  %v1461_v19 = vrot.slane %v1459_v2, 5  ;;  %v1471_v38 = vrot.slane %v1469_v6, 4  ;;  %s3135_s9 = sshll.u32 %s267_s27, 2  ;;  %s249_s26 = scalar_lea.vmem [#allocation2], %s5130_s13 }
  0xb2   : > { %3597 = vmatmul.mubr.msk.bf16.gmra.mrb[4].mxu1 %vm522_vm3, %v3934_v22  ;;  %v1438_v22 = vor.u32 %v1437_v54, %v1434_v46  ;;  %v1467_v10 = vrot.slane %v1465_v61, 5  ;;  %v1453_v45 = vrot.slane %v1451_v25, 5  ;;  %v2556_v28 = vsel %vm4395_vm7, %v2554_v53, %v2555_v57  ;;  %s5048_s16 = scalar_lea.vmem %s5231_s3, %s3135_s9  ;;  %s2967_s27 = sshll.u32 %s249_s26, 4  ;;  %s5143_s27 = int_to_ptr.vmem [resolvable:$true] %s2967_s27 }
  0xb3   : > { %3600 = vmatprep.mubr.msk.bf16.mxu1 %vm522_vm3, %v3935_v20  ;;  %v3395_v20 = vrot.slane %v3387_v24, 9  ;;  %v2561_v39 = vrot.slane %v2559_v0, 4  ;;  %v2560_v11 = vsel %vm4395_vm7, %v3396_v31, %v2559_v0  ;;  %v2566_v15 = vrot.slane %v4849_v12, 5  ;;  %v5042_v0 = vld [vmem:[%s5230_s2] ss:$0 sm:$0xff]  ;;  %s5141_s10 = scalar_lea.hbm %s5232_s4, %s3433_s14  ;;  %s3940_s17 = scalar_lea.vmem %s5143_s27, 16 }
  0xb4   : > { %v1439_v44 = vrot.slane %v1438_v22, 4  ;;  %v1462_v40 = vor.u32 %v1461_v19, %v1458_v55  ;;  %v1472_v59 = vor.u32 %v1471_v38, %v1467_v10  ;;  %v3397_v30 = vrot.slane %v3389_v47, 9  ;;  %p3941_p0 = scmp.ne.s32.totalorder %s5143_s27, %s3940_s17  ;;  %s3944_s9 = sshll.u32 %s4068_s8, 4  ;;  %s3945_s9 = int_to_ptr.vmem [resolvable:$false] %s3944_s9 }
  0xb5   : > { %v2553_v56 = vsel %vm4395_vm7, %v3395_v20, %v2552_v63  ;;  %v2563_v41 = vsel %vm4395_vm7, %v2561_v39, %v2562_v26  ;;  %v2568_v12 = vrot.slane %v2566_v15, 4  ;;  %v2569_v58 = vrot.slane %v4890_v60, 5  ;;  %s3946_s30 = scalar_lea.vmem %s3945_s9, 32  ;;  %p3947_p4 = scmp.lt.s32.totalorder %s5143_s27, %s3945_s9 }
  0xb6   : > { %v1444_v51 = vsel %vm4240_vm4, %v1439_v44, %v1443_v48  ;;  %v3404_v16 = vcombine.low %v2553_v56, %v2556_v28  ;;  %v3405_v49 = vcombine.low %v2560_v11, %v2563_v41  ;;  %v1463_v46 = vrot.slane %v1462_v40, 4  ;;  %p3942_p1 = pnand %p3941_p0, %p4151_p3  ;;  %p3948_p5 = scmp.lt.s32.totalorder %s3946_s30, %s3940_s17 }
  0xb7   : > { %v1473_v54 = vrot.slane %v1472_v59, 4  ;;  %v2567_v48 = vsel %vm4395_vm7, %v3397_v30, %v2566_v15  ;;  %v2570_v50 = vsel %vm4395_vm7, %v2568_v12, %v2569_v58 }
  0xb8   : > { %3683 = vmatmul.mubr.msk.bf16.vlgmr.msra.gmra.mrb[0].mxu0 %vm522_vm3, %v3400_v43  ;;  %v1449_v43 = vrot.slane %v1448_v7, 4  ;;  %v1468_v60 = vsel %vm4240_vm4, %v1463_v46, %v1467_v10  ;;  %v3406_v29 = vcombine.low %v2567_v48, %v2570_v50  ;;  %p3943_p2 = pneg %p3942_p1  ;;  %p3949_p6 = por %p3948_p5, %p3947_p4 }
  0xb9   : > { %3686 = vmatprep.mubr.msk.bf16.mxu0 %vm522_vm3, %v3401_v18  ;;  %v5258_v18 = vld [vmem:[#allocation10_spill] sm:$0xff] }
  0xba   : > { %3601 = vmatmul.mubr.msk.bf16.gmra.mrb[8].mxu1 %vm522_vm3, %v3936_v37  ;;  %v1475_v4 = vshll.u32 %v5258_v18, 16  ;;  %v1454_v37 = vsel %vm4240_vm4, %v1449_v43, %v1453_v45  ;;  %p3950_p7 = pnand %p3949_p6, %p3943_p2 }
  0xbb   : > { %3604 = vmatprep.mubr.msk.bf16.mxu1 %vm522_vm3, %v3937_v23  ;;  %v3263_v23 = vcombine.low %v1444_v51, %v1454_v37 }
  0xbc   : > { %v1477_v62 = vrot.slane %v1475_v4, 5 }
  0xbe   : > { %v1478_v17 = vsel %vm4240_vm4, %v1473_v54, %v1477_v62 }
  0xbf   : > { %v3264_v35 = vcombine.low %v1468_v60, %v1478_v17 }
  0xc0   : > { %3687 = vmatmul.mubr.msk.bf16.gmra.mrb[4].mxu0 %vm522_vm3, %v3402_v42 }
  0xc1   : > { %3690 = vmatprep.mubr.msk.bf16.mxu0 %vm522_vm3, %v3403_v36 }
  0xc2   : > { %3605 = vmatmul.mubr.msk.bf16.gmra.mrb[12].mxu1 %vm522_vm3, %v3938_v52 }
  0xc3   : > { %3618 = vmatprep.mubr.msk.bf16.mxu1 %vm522_vm3, %v3261_v21 }
  0xc8   : > { %3691 = vmatmul.mubr.msk.bf16.gmra.mrb[8].mxu0 %vm522_vm3, %v3404_v16 }
  0xc9   : > { %3694 = vmatprep.mubr.msk.bf16.mxu0 %vm522_vm3, %v3405_v49 }
  0xca   : > { %3619 = vmatmul.mubr.msk.bf16.vlgmr.msra.gmra.mrb[8].mxu1 %vm522_vm3, %v4943_v3 }
  0xcb   : > { %3622 = vmatprep.mubr.msk.bf16.mxu1 %vm522_vm3, %v3263_v23 }
  0xd0   : > { %3695 = vmatmul.mubr.msk.bf16.gmra.mrb[12].mxu0 %vm522_vm3, %v3406_v29 }
  0xd2   : > { %3623 = vmatmul.mubr.msk.bf16.gmra.mrb[12].mxu1 %vm522_vm3, %v3264_v35 }
 0x17d   : > { %v3594_v3 = vpop.f32.mrb[0].mxu1 }
 0x17e   : > { %v1184_v63 = vpop.f32.mrb[1].mxu1 }
 0x17f   : > { %v3595_v14 = vpop.f32.mrb[2].mxu1 }
 0x180   : > { %v1187_v5 = vpop.f32.mrb[3].mxu1 }
 0x185   : > { %v3598_v1 = vpop.f32.mrb[4].mxu1 }
 0x186   : > { %v1200_v13 = vpop.f32.mrb[5].mxu1 }
 0x187   : > { %v3599_v24 = vpop.f32.mrb[6].mxu1 }
 0x188   : > { %v1203_v32 = vpop.f32.mrb[7].mxu1 }
 0x18b   : > { %v3684_v8 = vpop.f32.mrb[0].mxu0 }
 0x18c   : > { %v3700_v27 = vadd.f32 %v3684_v8, %v3594_v3  ;;  %v2658_v34 = vpop.f32.mrb[1].mxu0 }
 0x18d   : > { %v3701_v2 = vadd.f32 %v2658_v34, %v1184_v63  ;;  %v3685_v9 = vpop.f32.mrb[2].mxu0 }
 0x18e   : > { %v2746_v61 = vadd.f32 %v3700_v27, %v5042_v0  ;;  %v3702_v6 = vadd.f32 %v3685_v9, %v3595_v14  ;;  %v2661_v42 = vpop.f32.mrb[3].mxu0 }
 0x18f   : > { %v2744_v22 = vadd.f32 %v3701_v2, %v5042_v0  ;;  %v3703_v7 = vadd.f32 %v2661_v42, %v1187_v5 }
 0x190   : > { %v3441_v33 = vpack.c.bf16 %v2746_v61, %v2746_v61  ;;  %v2747_v25 = vadd.f32 %v3702_v6, %v5042_v0  ;;  %v2883_v57 = vmul.f32 %v2746_v61, %v2746_v61  ;;  %v2845_v43 = vsel %vm2841_vm9, %v2746_v61, 0.0 }
 0x191   : > { %v3439_v36 = vpack.c.bf16 %v2744_v22, %v2744_v22  ;;  %v2881_v20 = vmul.f32 %v2744_v22, %v2744_v22  ;;  %v2745_v53 = vadd.f32 %v3703_v7, %v5042_v0  ;;  %v2842_v21 = vsel %vm2841_vm9, %v2744_v22, 0.0 }
 0x192   : > { %2827 = vst.msk [vmem:[%s5048_s16 + $0x8] sm:$0xf] %vm2824_vm8, %v3441_v33  ;;  %v3442_v52 = vpack.c.bf16 %v2747_v25, %v2747_v25  ;;  %v2884_v19 = vmul.f32 %v2747_v25, %v2747_v25  ;;  %v2900_v4 = vsel %vm2841_vm9, %v2883_v57, 0.0  ;;  %v2847_v37 = vsel %vm2841_vm9, %v2747_v25, 0.0 }
 0x193   : > { %2825 = vst.msk [vmem:[%s5048_s16] sm:$0xf] %vm2824_vm8, %v3439_v36  ;;  %v3440_v31 = vpack.c.bf16 %v2745_v53, %v2745_v53  ;;  %v2843_v39 = vsel %vm2841_vm9, %v2745_v53, 0.0  ;;  %v2882_v26 = vmul.f32 %v2745_v53, %v2745_v53  ;;  %v3688_v55 = vpop.f32.mrb[4].mxu0  ;;  %v2897_v45 = vsel %vm2841_vm9, %v2881_v20, 0.0 }
 0x194   : > { %2828 = vst.msk [vmem:[%s5048_s16 + $0xc] sm:$0xf] %vm2824_vm8, %v3442_v52  ;;  %v2844_v10 = vadd.f32 %v2843_v39, %v2842_v21  ;;  %v3704_v38 = vadd.f32 %v3688_v55, %v3598_v1  ;;  %v2674_v44 = vpop.f32.mrb[5].mxu0  ;;  %v2902_v16 = vsel %vm2841_vm9, %v2884_v19, 0.0 }
 0x195   : > { %2826 = vst.msk [vmem:[%s5048_s16 + $0x4] sm:$0xf] %vm2824_vm8, %v3440_v31  ;;  %v2898_v56 = vsel %vm2841_vm9, %v2882_v26, 0.0  ;;  %v3705_v28 = vadd.f32 %v2674_v44, %v1200_v13  ;;  %v3689_v11 = vpop.f32.mrb[6].mxu0 }
 0x196   : > { %v2846_v15 = vadd.f32 %v2845_v43, %v2844_v10  ;;  %v2899_v41 = vadd.f32 %v2898_v56, %v2897_v45  ;;  %v2750_v40 = vadd.f32 %v3704_v38, %v5042_v0  ;;  %v3706_v59 = vadd.f32 %v3689_v11, %v3599_v24  ;;  %v2677_v18 = vpop.f32.mrb[7].mxu0 }
 0x197   : > { %v2748_v47 = vadd.f32 %v3705_v28, %v5042_v0  ;;  %v3707_v51 = vadd.f32 %v2677_v18, %v1203_v32 }
 0x198   : > { %v2901_v49 = vadd.f32 %v2900_v4, %v2899_v41  ;;  %v3445_v30 = vpack.c.bf16 %v2750_v40, %v2750_v40  ;;  %v2848_v58 = vadd.f32 %v2847_v37, %v2846_v15  ;;  %v2751_v62 = vadd.f32 %v3706_v59, %v5042_v0 }
 0x199   : > { %v3443_v12 = vpack.c.bf16 %v2748_v47, %v2748_v47  ;;  %v2849_v23 = vsel %vm2841_vm9, %v2748_v47, 0.0  ;;  %v2885_v46 = vmul.f32 %v2748_v47, %v2748_v47  ;;  %v2749_v48 = vadd.f32 %v3707_v51, %v5042_v0 }
 0x19a   : > { %2831 = vst.msk [vmem:[%s5048_s16 + $0x18] sm:$0xf] %vm2824_vm8, %v3445_v30  ;;  %v2903_v54 = vadd.f32 %v2902_v16, %v2901_v49  ;;  %v2850_v50 = vadd.f32 %v2849_v23, %v2848_v58  ;;  %v2887_v29 = vmul.f32 %v2750_v40, %v2750_v40  ;;  %v3446_v3 = vpack.c.bf16 %v2751_v62, %v2751_v62 }
 0x19b   : > { %2829 = vst.msk [vmem:[%s5048_s16 + $0x10] sm:$0xf] %vm2824_vm8, %v3443_v12  ;;  %v2904_v60 = vsel %vm2841_vm9, %v2885_v46, 0.0  ;;  %v3692_v17 = vpop.f32.mrb[8].mxu0  ;;  %v3444_v5 = vpack.c.bf16 %v2749_v48, %v2749_v48  ;;  %v2851_v1 = vsel %vm2841_vm9, %v2749_v48, 0.0  ;;  %v2886_v13 = vmul.f32 %v2749_v48, %v2749_v48 }
 0x19c   : > { %v2905_v35 = vadd.f32 %v2904_v60, %v2903_v54  ;;  %v2690_v14 = vpop.f32.mrb[9].mxu0  ;;  %v2853_v27 = vsel %vm2841_vm9, %v2750_v40, 0.0  ;;  %2832 = vst.msk [vmem:[%s5048_s16 + $0x1c] sm:$0xf] %vm2824_vm8, %v3446_v3  ;;  %v2852_v34 = vadd.f32 %v2851_v1, %v2850_v50  ;;  %v2888_v6 = vmul.f32 %v2751_v62, %v2751_v62 }
 0x19d   : > { %v3620_v63 = vpop.f32.mrb[8].mxu1  ;;  %v3693_v8 = vpop.f32.mrb[10].mxu0  ;;  %2830 = vst.msk [vmem:[%s5048_s16 + $0x14] sm:$0xf] %vm2824_vm8, %v3444_v5  ;;  %v2906_v42 = vsel %vm2841_vm9, %v2886_v13, 0.0  ;;  %v2908_v57 = vsel %vm2841_vm9, %v2887_v29, 0.0 }
 0x19e   : > { %v3708_v24 = vadd.f32 %v3692_v17, %v3620_v63  ;;  %v1598_v32 = vpop.f32.mrb[9].mxu1  ;;  %v2693_v61 = vpop.f32.mrb[11].mxu0  ;;  %v2854_v25 = vadd.f32 %v2853_v27, %v2852_v34  ;;  %v2907_v36 = vadd.f32 %v2906_v42, %v2905_v35  ;;  %v2855_v52 = vsel %vm2841_vm9, %v2751_v62, 0.0 }
 0x19f   : > { %v3709_v2 = vadd.f32 %v2690_v14, %v1598_v32  ;;  %v3621_v9 = vpop.f32.mrb[10].mxu1  ;;  %v2910_v10 = vsel %vm2841_vm9, %v2888_v6, 0.0 }
 0x1a0   : > { %v2754_v22 = vadd.f32 %v3708_v24, %v5042_v0  ;;  %v3710_v7 = vadd.f32 %v3693_v8, %v3621_v9  ;;  %v1601_v33 = vpop.f32.mrb[11].mxu1  ;;  %v2909_v39 = vadd.f32 %v2908_v57, %v2907_v36  ;;  %v2856_v55 = vadd.f32 %v2855_v52, %v2854_v25 }
 0x1a1   : > { %v2752_v20 = vadd.f32 %v3709_v2, %v5042_v0  ;;  %v3711_v53 = vadd.f32 %v2693_v61, %v1601_v33 }
 0x1a2   : > { %v3449_v21 = vpack.c.bf16 %v2754_v22, %v2754_v22  ;;  %v2755_v31 = vadd.f32 %v3710_v7, %v5042_v0  ;;  %v2911_v56 = vadd.f32 %v2910_v10, %v2909_v39  ;;  %v2891_v4 = vmul.f32 %v2754_v22, %v2754_v22 }
 0x1a3   : > { %v3447_v26 = vpack.c.bf16 %v2752_v20, %v2752_v20  ;;  %v2857_v19 = vsel %vm2841_vm9, %v2752_v20, 0.0  ;;  %v2889_v38 = vmul.f32 %v2752_v20, %v2752_v20  ;;  %v3696_v43 = vpop.f32.mrb[12].mxu0  ;;  %v2753_v28 = vadd.f32 %v3711_v53, %v5042_v0 }
 0x1a4   : > { %2835 = vst.msk [vmem:[%s5048_s16 + $0x28] sm:$0xf] %vm2824_vm8, %v3449_v21  ;;  %v3450_v44 = vpack.c.bf16 %v2755_v31, %v2755_v31  ;;  %v2858_v45 = vadd.f32 %v2857_v19, %v2856_v55  ;;  %v2706_v15 = vpop.f32.mrb[13].mxu0  ;;  %v2861_v54 = vsel %vm2841_vm9, %v2754_v22, 0.0  ;;  %v2892_v50 = vmul.f32 %v2755_v31, %v2755_v31 }
 0x1a5   : > { %2833 = vst.msk [vmem:[%s5048_s16 + $0x20] sm:$0xf] %vm2824_vm8, %v3447_v26  ;;  %v3624_v11 = vpop.f32.mrb[12].mxu1  ;;  %v2912_v41 = vsel %vm2841_vm9, %v2889_v38, 0.0  ;;  %v3697_v18 = vpop.f32.mrb[14].mxu0  ;;  %v3448_v51 = vpack.c.bf16 %v2753_v28, %v2753_v28  ;;  %v2859_v37 = vsel %vm2841_vm9, %v2753_v28, 0.0  ;;  %v2890_v12 = vmul.f32 %v2753_v28, %v2753_v28 }
 0x1a6   : > { %2836 = vst.msk [vmem:[%s5048_s16 + $0x2c] sm:$0xf] %vm2824_vm8, %v3450_v44  ;;  %v3712_v40 = vadd.f32 %v3696_v43, %v3624_v11  ;;  %v1614_v59 = vpop.f32.mrb[13].mxu1  ;;  %v2913_v47 = vadd.f32 %v2912_v41, %v2911_v56  ;;  %v2709_v49 = vpop.f32.mrb[15].mxu0  ;;  %v2860_v30 = vadd.f32 %v2859_v37, %v2858_v45  ;;  %v2863_v35 = vsel %vm2841_vm9, %v2755_v31, 0.0 }
 0x1a7   : > { %v3625_v16 = vpop.f32.mrb[14].mxu1  ;;  %v3713_v23 = vadd.f32 %v2706_v15, %v1614_v59  ;;  %2834 = vst.msk [vmem:[%s5048_s16 + $0x24] sm:$0xf] %vm2824_vm8, %v3448_v51  ;;  %v2914_v17 = vsel %vm2841_vm9, %v2890_v12, 0.0  ;;  %v2916_v5 = vsel %vm2841_vm9, %v2891_v4, 0.0  ;;  %v2918_v27 = vsel %vm2841_vm9, %v2892_v50, 0.0 }
 0x1a8   : > { %v2758_v58 = vadd.f32 %v3712_v40, %v5042_v0  ;;  %v1617_v46 = vpop.f32.mrb[15].mxu1  ;;  %v3714_v62 = vadd.f32 %v3697_v18, %v3625_v16  ;;  %v2862_v60 = vadd.f32 %v2861_v54, %v2860_v30  ;;  %v2915_v3 = vadd.f32 %v2914_v17, %v2913_v47 }
 0x1a9   : > { %v3715_v48 = vadd.f32 %v2709_v49, %v1617_v46  ;;  %v2756_v63 = vadd.f32 %v3713_v23, %v5042_v0 }
 0x1aa   : > { %v3453_v29 = vpack.c.bf16 %v2758_v58, %v2758_v58  ;;  %v2759_v14 = vadd.f32 %v3714_v62, %v5042_v0  ;;  %v2864_v1 = vadd.f32 %v2863_v35, %v2862_v60  ;;  %v2917_v24 = vadd.f32 %v2916_v5, %v2915_v3 }
 0x1ab   : > { %v2757_v13 = vadd.f32 %v3715_v48, %v5042_v0  ;;  %v3451_v32 = vpack.c.bf16 %v2756_v63, %v2756_v63  ;;  %v2865_v8 = vsel %vm2841_vm9, %v2756_v63, 0.0  ;;  %v2893_v2 = vmul.f32 %v2756_v63, %v2756_v63 }
 0x1ac   : > { %2839 = vst.msk [vmem:[%s5048_s16 + $0x38] sm:$0xf] %vm2824_vm8, %v3453_v29  ;;  %v2866_v34 = vadd.f32 %v2865_v8, %v2864_v1  ;;  %v3454_v9 = vpack.c.bf16 %v2759_v14, %v2759_v14  ;;  %v2919_v61 = vadd.f32 %v2918_v27, %v2917_v24  ;;  %v2895_v22 = vmul.f32 %v2758_v58, %v2758_v58 }
 0x1ad   : > { %2837 = vst.msk [vmem:[%s5048_s16 + $0x30] sm:$0xf] %vm2824_vm8, %v3451_v32  ;;  %v3452_v6 = vpack.c.bf16 %v2757_v13, %v2757_v13  ;;  %v2867_v42 = vsel %vm2841_vm9, %v2757_v13, 0.0  ;;  %v2920_v7 = vsel %vm2841_vm9, %v2893_v2, 0.0  ;;  %v2894_v33 = vmul.f32 %v2757_v13, %v2757_v13 }
 0x1ae   : > { %2840 = vst.msk [vmem:[%s5048_s16 + $0x3c] sm:$0xf] %vm2824_vm8, %v3454_v9  ;;  %v2868_v0 = vadd.f32 %v2867_v42, %v2866_v34  ;;  %v2869_v25 = vsel %vm2841_vm9, %v2758_v58, 0.0  ;;  %v2921_v36 = vadd.f32 %v2920_v7, %v2919_v61  ;;  %v2896_v20 = vmul.f32 %v2759_v14, %v2759_v14 }
 0x1af   : > { %2838 = vst.msk [vmem:[%s5048_s16 + $0x34] sm:$0xf] %vm2824_vm8, %v3452_v6  ;;  %v2922_v57 = vsel %vm2841_vm9, %v2894_v33, 0.0  ;;  %v2871_v52 = vsel %vm2841_vm9, %v2759_v14, 0.0  ;;  %v2924_v31 = vsel %vm2841_vm9, %v2895_v22, 0.0  ;;  %s5149_s16 = scalar_lea.hbm %s5233_s5, %s3433_s14 }
 0x1b0   : > { %v2870_v53 = vadd.f32 %v2869_v25, %v2868_v0  ;;  %v2923_v21 = vadd.f32 %v2922_v57, %v2921_v36  ;;  %v2926_v55 = vsel %vm2841_vm9, %v2896_v20, 0.0 }
 0x1b2   : > { %v2872_v39 = vadd.f32 %v2871_v52, %v2870_v53  ;;  %v2925_v26 = vadd.f32 %v2924_v31, %v2923_v21 }
 0x1b4   : > { %v2873_v19 = vrot.slane %v2872_v39, 4  ;;  %v2927_v10 = vadd.f32 %v2926_v55, %v2925_v26 }
 0x1b6   : > { %v2874_v38 = vadd.f32 %v2873_v19, %v2872_v39  ;;  %v2928_v44 = vrot.slane %v2927_v10, 4 }
 0x1b8   : > { %v2875_v43 = vrot.slane %v2874_v38, 2  ;;  %v2929_v45 = vadd.f32 %v2928_v44, %v2927_v10 }
 0x1ba   : > { %v2876_v56 = vadd.f32 %v2875_v43, %v2874_v38  ;;  %v2930_v28 = vrot.slane %v2929_v45, 2 }
 0x1bc   : > { %v2877_v11 = vrot.slane %v2876_v56, 1  ;;  %v2931_v15 = vadd.f32 %v2930_v28, %v2929_v45 }
 0x1be   : > { %v2878_v41 = vadd.f32 %v2877_v11, %v2876_v56  ;;  %v2932_v40 = vrot.slane %v2931_v15, 1 }
 0x1c0   : > { %2880 = vst.msk [vmem:[%s249_s26] sm:$0x1] %vm2879_vm10, %v2878_v41 }
 0x1c1   : > { %3953 = shalt.err (!%p3950_p7)
}
 0x1c2   : > { %s3954_s14 = scalar_lea.hbm %s5141_s10, 16  ;;  %s3958_s12 = scalar_lea.hbm %s5232_s4, 64 }
 0x1c3   : > { %p3955_p9 = scmp.ne.s32.totalorder %s5141_s10, %s3954_s14  ;;  %p3959_p12 = scmp.lt.u32.totalorder %s5141_s10, %s5232_s4 }
 0x1c4   : > { %p3960_p13 = scmp.lt.u32.totalorder %s3958_s12, %s3954_s14  ;;  %p3962_p1 = scmp.lt.u32.totalorder %s3954_s14, %s5141_s10 }
 0x1c5   : > { %p3956_p10 = pnand %p3955_p9, %p4151_p3 }
 0x1c6   : > { %p3961_p0 = por %p3960_p13, %p3959_p12 }
 0x1c7   : > { %p3957_p11 = pneg %p3956_p10 }
 0x1c8   : > { %p3963_p2 = por %p3962_p1, %p3961_p0 }
 0x1ca   : > { %p3964_p4 = pnand %p3963_p2, %p3957_p11 }
 0x1cc   : > { %3967 = shalt.err (!%p3964_p4)
}
 0x1cd   : > { %3839 = dma.vmem_to_hbm [thread:$0]  (%p4151_p3), %s5143_s27, 16, %s5141_s10, %s2945_s15   ;;  %v2933_v59 = vadd.f32 %v2932_v40, %v2931_v15 }
 0x1ce   : > { %s5259_s30 = scalar_lea.vmem [#allocation4], %s5130_s13  ;;  %s2949_s17 = scalar_lea.sflag [#allocation5], %s5130_s13 }
 0x1cf   : > { %2934 = vst.msk [vmem:[%s5259_s30] sm:$0x1] %vm2879_vm10, %v2933_v59  ;;  %s3968_s14 = scalar_lea.vmem %s5151_s22, 16  ;;  %s4069_s26 = smov [#allocation4]  }
 0x1d0   : > { %p3969_p5 = scmp.ne.s32.totalorder %s5151_s22, %s3968_s14  ;;  %s3972_s21 = sshll.u32 %s4069_s26, 4  ;;  %s3973_s21 = int_to_ptr.vmem [resolvable:$false] %s3972_s21 }
 0x1d1   : > { %s3974_s12 = scalar_lea.vmem %s3973_s21, 32  ;;  %p3975_p9 = scmp.lt.s32.totalorder %s5151_s22, %s3973_s21 }
 0x1d2   : > { %p3970_p6 = pnand %p3969_p5, %p4151_p3  ;;  %p3976_p10 = scmp.lt.s32.totalorder %s3974_s12, %s3968_s14 }
 0x1d4   : > { %p3971_p7 = pneg %p3970_p6  ;;  %p3977_p11 = por %p3976_p10, %p3975_p9 }
 0x1d6   : > { %p3978_p12 = pnand %p3977_p11, %p3971_p7 }
 0x1d8   : > { %3981 = shalt.err (!%p3978_p12)
}
 0x1d9   : > { %s3982_s13 = scalar_lea.hbm %s5149_s16, 16  ;;  %s3986_s15 = scalar_lea.hbm %s5233_s5, 64 }
 0x1da   : > { %p3983_p13 = scmp.ne.s32.totalorder %s5149_s16, %s3982_s13  ;;  %p3987_p2 = scmp.lt.u32.totalorder %s5149_s16, %s5233_s5 }
 0x1db   : > { %p3988_p4 = scmp.lt.u32.totalorder %s3986_s15, %s3982_s13  ;;  %p3990_p6 = scmp.lt.u32.totalorder %s3982_s13, %s5149_s16 }
 0x1dc   : > { %p3984_p0 = pnand %p3983_p13, %p4151_p3 }
 0x1dd   : > { %p3989_p5 = por %p3988_p4, %p3987_p2 }
 0x1de   : > { %p3985_p1 = pneg %p3984_p0 }
 0x1df   : > { %p3991_p7 = por %p3990_p6, %p3989_p5 }
 0x1e1   : > { %p3992_p9 = pnand %p3991_p7, %p3985_p1 }
 0x1e3   : > { %3995 = shalt.err (!%p3992_p9)
}
 0x1e4   : > { %3840 = dma.vmem_to_hbm [thread:$0]  (%p4151_p3), %s5151_s22, 16, %s5149_s16, %s2949_s17  }
 0x1e5 PF: > { %p3850_p10 = scmp.ge.s32.totalorder %s4066_s25, 2  ;;  %s3006_s30 = sand.u32 1, %s4038_s18  }
 0x1e6   : > { %s3007_s14 = scalar_lea.sflag [#allocation3], %s3006_s30 }
 0x1e7   : > { %p3844_p11 = pnand %p3850_p10, %p4160_p8 }
 0x1e9   : > { %4029 = dma.done.wait (!%p3844_p11), %s3007_s14, 16  }
 0x1ea   : > { %4031 = vsyncadd (!%p3844_p11), %s3007_s14, 4294967280  ;;  %s3015_s26 = scalar_lea.sflag [#allocation5], %s3006_s30 }
 0x1eb   : > { %4033 = dma.done.wait (!%p3844_p11), %s3015_s26, 16  }
 0x1ec   : > { %4035 = vsyncadd (!%p3844_p11), %s3015_s26, 4294967280  ;;  %s22_s25 = sadd.s32 1, %s4066_s25   ;;  %s5260_s18 = smov %s4042_s19 }
 0x1ed   : > { %p19_p12 = scmp.ge.s32.totalorder %s22_s25, 6   ;;  %s5261_s19 = smov %s4046_s20 }
 0x1ee   : > { %s5262_s20 = smov %s4169_s11  ;;  %s5263_s21 = smov %s4058_s23 }
 0x1ef   : > { %s5264_s22 = smov %s4062_s24  ;;  %s5265_s23 = smov %s5268_s28 }
 0x1f0   : > { %s5266_s24 = smov %s5272_s29  ;;  %21 = sbr.rel (!%p19_p12) target bundleno = 7 (0x7), region = 107 }
 0x1f7   :  { %3019 = vsyncpa [#allocation3], 1 }
 0x1f8   :  { %3021 = vsyncpa [#allocation3 + $0x1], 1 }
 0x1f9   :  { %3022 = vsyncpa [#allocation5], 1 }
 0x1fa   :  { %3024 = vsyncpa [#allocation5 + $0x1], 1 }

</bundles_post_ra>
